<compile_context>
chip_gen: v7x
topology: tpu7x:2x2x1
jax: 0.10.0
libtpu: 0.0.40
codegen_flags: <defaults>
</compile_context>

<pallas_src>
import functools

import jax
import jax.numpy as jnp
import numpy as np
from jax.experimental import pallas as pl
from jax.experimental.pallas import tpu as pltpu

LANE = 128     # lane padding for features / gates / outputs
SUBLANE = 8    # sublane padding for batch


# ----------------------------------------------------------------------------
# Fused Generator kernel (single invocation, no grid).
# PyTorch GRU gate math (gate order r, z, n):
#   r = sigmoid(W_ir x + b_ir + W_hr h + b_hr)
#   z = sigmoid(W_iz x + b_iz + W_hz h + b_hz)
#   n = tanh  (W_in x + b_in + r * (W_hn h + b_hn))
#   h' = (1 - z) * n + z * h   ==   n + z * (h - n)
# ----------------------------------------------------------------------------
def _generator_kernel(x_ref, wx_ref, wh_ref, bx_ref, bhn_ref, fcw_ref, fcb_ref,
                      out_ref, seq_ref, gi_ref,
                      *, num_layers, seq_len, f_pad, unroll):
    """Shapes (p = padded):
      x_ref  : (T, Bp, Fp)      f32   input sequence (time-major)
      wx_ref : (L, Fp, 3Fp)     mmdt  input weights,  cols [r | z | n_in]
      wh_ref : (L, Fp, 3Fp)     mmdt  hidden weights, cols [r | z | n_hid]
      bx_ref : (L, 1, 3Fp)      f32   [b_ir+b_hr | b_iz+b_hz | b_in]
      bhn_ref: (L, 1, Fp)       f32   b_hn (added inside the r* term)
      fcw_ref: (Fp, Op) fcb_ref:(1, Op)
      out_ref: (T, Bp, Op)      f32
      seq_ref: (T, Bp, Fp)      f32   VMEM scratch: current layer's output seq
      gi_ref : (T, Bp, 3Fp)     f32   VMEM scratch: precomputed input gates
    """
    b_pad = seq_ref.shape[1]
    mm_dtype = wx_ref.dtype                       # bf16 (fast) or f32 (check)

    for layer in range(num_layers):               # static layer loop
        # ---- Non-recurrent part: ALL input-gate contributions in one matmul.
        if layer == 0:
            x_flat = x_ref[...].reshape(seq_len * b_pad, f_pad)
        else:
            x_flat = seq_ref[...].reshape(seq_len * b_pad, f_pad)
        gi_all = (jnp.dot(x_flat.astype(mm_dtype), wx_ref[layer],
                          preferred_element_type=jnp.float32)
                  + bx_ref[layer])                              # (T*Bp, 3Fp)
        gi_ref[...] = gi_all.reshape(seq_len, b_pad, 3 * f_pad)

        bhn_l = bhn_ref[layer]                                  # (1, Fp), hoisted

        # ---- Serial recurrence: tiny h @ Wh matmul per step, h in registers.
        def step(t, h_prev, layer=layer, bhn_l=bhn_l):
            gi = gi_ref[t]                                      # (Bp, 3Fp) f32
            gh = jnp.dot(h_prev.astype(mm_dtype), wh_ref[layer],
                         preferred_element_type=jnp.float32)    # (Bp, 3Fp) f32
            r = jax.nn.sigmoid(gi[:, 0:f_pad] + gh[:, 0:f_pad])
            z = jax.nn.sigmoid(gi[:, f_pad:2 * f_pad]
                               + gh[:, f_pad:2 * f_pad])
            n = jnp.tanh(gi[:, 2 * f_pad:3 * f_pad]
                         + r * (gh[:, 2 * f_pad:3 * f_pad] + bhn_l))
            h_new = n + z * (h_prev - n)                        # (1-z)*n + z*h
            seq_ref[t] = h_new
            return h_new

        h0 = jnp.zeros((b_pad, f_pad), jnp.float32)
        jax.lax.fori_loop(0, seq_len, step, h0, unroll=unroll)

    # ---- Fused FC + tanh epilogue on the full VMEM-resident hidden sequence.
    h_flat = seq_ref[...].reshape(seq_len * b_pad, f_pad)
    y = jnp.tanh(jnp.dot(h_flat.astype(mm_dtype), fcw_ref[...],
                         preferred_element_type=jnp.float32)
                 + fcb_ref[...])                                # (T*Bp, Op)
    out_ref[...] = y.reshape(seq_len, b_pad, -1)


# ----------------------------------------------------------------------------
# One-time parameter preparation (host side): transpose, split, stack, pad.
# ----------------------------------------------------------------------------
def prepare_generator_params(gru_params, fc_w, fc_b, f_pad=LANE, o_pad=LANE,
                             matmul_dtype=jnp.bfloat16):
    num_layers = len(gru_params)
    H = gru_params[0][1].shape[1]          # w_hh: (3H, H)
    O = fc_w.shape[0]
    assert H <= f_pad and O <= o_pad

    Wx = np.zeros((num_layers, f_pad, 3 * f_pad), np.float32)
    Wh = np.zeros((num_layers, f_pad, 3 * f_pad), np.float32)
    Bx = np.zeros((num_layers, 1, 3 * f_pad), np.float32)
    Bhn = np.zeros((num_layers, 1, f_pad), np.float32)

    for l, (w_ih, w_hh, b_ih, b_hh) in enumerate(gru_params):
        w_ih = np.asarray(w_ih, np.float32)    # (3H, in_sz)
        w_hh = np.asarray(w_hh, np.float32)    # (3H, H)
        b_ih = np.asarray(b_ih, np.float32)
        b_hh = np.asarray(b_hh, np.float32)
        in_sz = w_ih.shape[1]
        assert in_sz <= f_pad

        # Column blocks [r | z | n], each f_pad (=128) wide -> lane-aligned
        # gate slices inside the kernel (no masked lane ops).
        Wx[l, :in_sz, 0:H]                     = w_ih[:H].T
        Wx[l, :in_sz, f_pad:f_pad + H]         = w_ih[H:2 * H].T
        Wx[l, :in_sz, 2 * f_pad:2 * f_pad + H] = w_ih[2 * H:].T

        Wh[l, :H, 0:H]                         = w_hh[:H].T
        Wh[l, :H, f_pad:f_pad + H]             = w_hh[H:2 * H].T
        Wh[l, :H, 2 * f_pad:2 * f_pad + H]     = w_hh[2 * H:].T

        Bx[l, 0, 0:H]                          = b_ih[:H] + b_hh[:H]
        Bx[l, 0, f_pad:f_pad + H]              = b_ih[H:2 * H] + b_hh[H:2 * H]
        Bx[l, 0, 2 * f_pad:2 * f_pad + H]      = b_ih[2 * H:]
        Bhn[l, 0, :H]                          = b_hh[2 * H:]

    fcw = np.zeros((f_pad, o_pad), np.float32)
    fcw[:H, :O] = np.asarray(fc_w, np.float32).T
    fcb = np.zeros((1, o_pad), np.float32)
    fcb[0, :O] = np.asarray(fc_b, np.float32)

    meta = dict(num_layers=num_layers, H=H, O=O, f_pad=f_pad, o_pad=o_pad)
    # Matmul operands in matmul_dtype (bf16 fast path); biases stay f32
    # (post-accumulate adds, keeps gate math f32 on all generations).
    return (jnp.asarray(Wx, matmul_dtype), jnp.asarray(Wh, matmul_dtype),
            jnp.asarray(Bx, jnp.float32), jnp.asarray(Bhn, jnp.float32),
            jnp.asarray(fcw, matmul_dtype), jnp.asarray(fcb, jnp.float32),
            meta)


# ----------------------------------------------------------------------------
# Forward: x (B, T, input_size) -> (B, T, output_size)
# ----------------------------------------------------------------------------
def generator_forward(x, prepared):
    Wx, Wh, Bx, Bhn, fcw, fcb, meta = prepared
    B, T, I = x.shape
    f_pad, o_pad = meta["f_pad"], meta["o_pad"]
    num_layers, O = meta["num_layers"], meta["O"]
    b_pad = int(pl.cdiv(B, SUBLANE)) * SUBLANE

    # Pad to time-major (T, B_pad, F_pad); padded lanes/rows are zero.
    x_tm = jnp.transpose(x, (1, 0, 2)).astype(jnp.float32)        # (T, B, I)
    x_p = jnp.zeros((T, b_pad, f_pad), jnp.float32).at[:, :B, :I].set(x_tm)

    # Full unroll only for short sequences; partial unroll for long ones
    # (the recurrence is serial, so more unroll only buys scheduler slack).
    unroll = True if T <= 16 else 8

    kernel = functools.partial(
        _generator_kernel, num_layers=num_layers, seq_len=T, f_pad=f_pad,
        unroll=unroll)

    out_pad = pl.pallas_call(
        kernel,
        out_shape=jax.ShapeDtypeStruct((T, b_pad, o_pad), jnp.float32),
        scratch_shapes=[
            pltpu.VMEM((T, b_pad, f_pad), jnp.float32),      # layer output seq
            pltpu.VMEM((T, b_pad, 3 * f_pad), jnp.float32),  # precomputed gi
        ],
    )(x_p, Wx, Wh, Bx, Bhn, fcw, fcb)

    out = out_pad[:, :B, :O]                               # (T, B, O)
    return jnp.transpose(out, (1, 0, 2))                   # (B, T, O)


# ----------------------------------------------------------------------------
# Pure-JAX reference (uses original PyTorch-layout params).
# ----------------------------------------------------------------------------
def _gru_layer_ref(x_tm, w_ih, w_hh, b_ih, b_hh):
    H = w_hh.shape[1]
    B = x_tm.shape[1]

    def step(h, x_t):
        gi = x_t @ w_ih.T + b_ih
        gh = h @ w_hh.T + b_hh
        r = jax.nn.sigmoid(gi[:, :H] + gh[:, :H])
        z = jax.nn.sigmoid(gi[:, H:2 * H] + gh[:, H:2 * H])
        n = jnp.tanh(gi[:, 2 * H:] + r * gh[:, 2 * H:])
        h_new = (1.0 - z) * n + z * h
        return h_new, h_new

    h0 = jnp.zeros((B, H), jnp.float32)
    _, ys = jax.lax.scan(step, h0, x_tm)
    return ys


def generator_forward_ref(x, gru_params, fc_w, fc_b):
    h = jnp.transpose(x, (1, 0, 2)).astype(jnp.float32)
    for (w_ih, w_hh, b_ih, b_hh) in gru_params:
        h = _gru_layer_ref(h, w_ih, w_hh, b_ih, b_hh)
    out = jnp.tanh(h @ fc_w.T + fc_b)
    return jnp.transpose(out, (1, 0, 2))


# ----------------------------------------------------------------------------
# Deterministic PyTorch-shaped parameter init.
# ----------------------------------------------------------------------------
def init_generator_params(key, input_size, hidden_size, num_layers, output_size):
    k = 1.0 / np.sqrt(hidden_size)
    gru_params = []
    for layer in range(num_layers):
        in_sz = input_size if layer == 0 else hidden_size
        key, k1, k2, k3, k4 = jax.random.split(key, 5)
        w_ih = jax.random.uniform(k1, (3 * hidden_size, in_sz), jnp.float32, -k, k)
        w_hh = jax.random.uniform(k2, (3 * hidden_size, hidden_size), jnp.float32, -k, k)
        b_ih = jax.random.uniform(k3, (3 * hidden_size,), jnp.float32, -k, k)
        b_hh = jax.random.uniform(k4, (3 * hidden_size,), jnp.float32, -k, k)
        gru_params.append((w_ih, w_hh, b_ih, b_hh))
    key, k5, k6 = jax.random.split(key, 3)
    fc_w = jax.random.uniform(k5, (output_size, hidden_size), jnp.float32, -k, k)
    fc_b = jax.random.uniform(k6, (output_size,), jnp.float32, -k, k)
    return gru_params, fc_w, fc_b


if __name__ == "__main__":
    B, T = 2, 8
    input_size, hidden_size, num_layers, output_size = 16, 32, 2, 8

    key = jax.random.PRNGKey(0)
    key, kx = jax.random.split(key)
    x = jax.random.normal(kx, (B, T, input_size), jnp.float32)

    gru_params, fc_w, fc_b = init_generator_params(
        key, input_size, hidden_size, num_layers, output_size)

    ref = jax.block_until_ready(generator_forward_ref(x, gru_params, fc_w, fc_b))

    # --- f32-matmul mode: tighter correctness baseline.
    # (Not 1e-5: both the kernel's MXU dots and the XLA reference dots may use
    #  default MXU precision, so cross-path agreement is only ~1e-3-level.)
    prepared_f32 = prepare_generator_params(gru_params, fc_w, fc_b,
                                            matmul_dtype=jnp.float32)
    out_f32 = jax.block_until_ready(generator_forward(x, prepared_f32))
    assert out_f32.shape == (B, T, output_size), out_f32.shape
    np.testing.assert_allclose(np.asarray(out_f32), np.asarray(ref),
                               atol=1e-2, rtol=1e-2)

    # --- bf16-matmul fast path (default): f32 accumulate + f32 gate math.
    prepared_bf16 = prepare_generator_params(gru_params, fc_w, fc_b,
                                             matmul_dtype=jnp.bfloat16)
    out_bf16 = jax.block_until_ready(generator_forward(x, prepared_bf16))
    assert out_bf16.shape == (B, T, output_size), out_bf16.shape
    np.testing.assert_allclose(np.asarray(out_bf16), np.asarray(ref),
                               atol=5e-2, rtol=5e-2)

    print("KERNEL_OK")
</pallas_src>

<mosaic_0001>
module attributes {stable_mosaic.version = 11 : i64} {
  func.func @_generator_kernel(%arg0: memref<8x8x128xf32, #tpu.memory_space<vmem>>, %arg1: memref<2x128x384xf32, #tpu.memory_space<vmem>>, %arg2: memref<2x128x384xf32, #tpu.memory_space<vmem>>, %arg3: memref<2x1x384xf32, #tpu.memory_space<vmem>>, %arg4: memref<2x1x128xf32, #tpu.memory_space<vmem>>, %arg5: memref<128x128xf32, #tpu.memory_space<vmem>>, %arg6: memref<1x128xf32, #tpu.memory_space<vmem>>, %arg7: memref<8x8x128xf32, #tpu.memory_space<vmem>>, %arg8: memref<8x8x128xf32, #tpu.memory_space<vmem>>, %arg9: memref<8x8x384xf32, #tpu.memory_space<vmem>>) attributes {dimension_semantics = [], scalar_prefetch = 0 : i64, scratch_operands = 2 : i64, tpu.core_type = #tpu.core_type<tc>} {
    %c0 = arith.constant 0 : index
    %c0_0 = arith.constant 0 : index
    %c0_1 = arith.constant 0 : index
    %0 = vector.load %arg0[%c0, %c0_0, %c0_1] : memref<8x8x128xf32, #tpu.memory_space<vmem>>, vector<8x8x128xf32>
    %1 = vector.shape_cast %0 : vector<8x8x128xf32> to vector<64x128xf32>
    %c0_2 = arith.constant 0 : index
    %c0_3 = arith.constant 0 : index
    %c0_4 = arith.constant 0 : index
    %2 = vector.load %arg1[%c0_2, %c0_3, %c0_4] : memref<2x128x384xf32, #tpu.memory_space<vmem>>, vector<1x128x384xf32>
    %3 = vector.shape_cast %2 : vector<1x128x384xf32> to vector<128x384xf32>
    %cst = arith.constant dense<0.000000e+00> : vector<64x384xf32>
    %4 = tpu.matmul %1, %3, %cst {dimension_numbers = #tpu.dot_dimension_numbers<[1], [0], [0], [1], [0, 0, 1, 1], [], []>} : vector<64x128xf32>, vector<128x384xf32>, vector<64x384xf32> -> vector<64x384xf32>
    %c0_5 = arith.constant 0 : index
    %c0_6 = arith.constant 0 : index
    %c0_7 = arith.constant 0 : index
    %5 = vector.load %arg3[%c0_5, %c0_6, %c0_7] : memref<2x1x384xf32, #tpu.memory_space<vmem>>, vector<1x1x384xf32>
    %6 = vector.shape_cast %5 : vector<1x1x384xf32> to vector<1x384xf32>
    %7 = vector.broadcast %6 : vector<1x384xf32> to vector<64x384xf32>
    %8 = arith.addf %4, %7 : vector<64x384xf32>
    %9 = vector.shape_cast %8 : vector<64x384xf32> to vector<8x8x384xf32>
    %c0_8 = arith.constant 0 : index
    %c0_9 = arith.constant 0 : index
    %c0_10 = arith.constant 0 : index
    %10 = vector.load %arg9[%c0_8, %c0_9, %c0_10] : memref<8x8x384xf32, #tpu.memory_space<vmem>>, vector<8x8x384xf32>
    tpu.vector_store %arg9[%c0_8, %c0_9, %c0_10], %9 {strides = array<i32>} : memref<8x8x384xf32, #tpu.memory_space<vmem>>, vector<8x8x384xf32>,
    %c0_11 = arith.constant 0 : index
    %c0_12 = arith.constant 0 : index
    %c0_13 = arith.constant 0 : index
    %11 = vector.load %arg4[%c0_11, %c0_12, %c0_13] : memref<2x1x128xf32, #tpu.memory_space<vmem>>, vector<1x1x128xf32>
    %12 = vector.shape_cast %11 : vector<1x1x128xf32> to vector<1x128xf32>
    %cst_14 = arith.constant 0.000000e+00 : f32
    %13 = vector.broadcast %cst_14 : f32 to vector<8x128xf32>
    %c0_i32 = arith.constant 0 : i32
    %14 = arith.index_cast %c0_i32 : i32 to index
    %c0_15 = arith.constant 0 : index
    %c0_16 = arith.constant 0 : index
    %15 = vector.load %arg9[%14, %c0_15, %c0_16] : memref<8x8x384xf32, #tpu.memory_space<vmem>>, vector<1x8x384xf32>
    %16 = vector.shape_cast %15 : vector<1x8x384xf32> to vector<8x384xf32>
    %c0_17 = arith.constant 0 : index
    %c0_18 = arith.constant 0 : index
    %c0_19 = arith.constant 0 : index
    %17 = vector.load %arg2[%c0_17, %c0_18, %c0_19] : memref<2x128x384xf32, #tpu.memory_space<vmem>>, vector<1x128x384xf32>
    %18 = vector.shape_cast %17 : vector<1x128x384xf32> to vector<128x384xf32>
    %cst_20 = arith.constant dense<0.000000e+00> : vector<8x384xf32>
    %19 = tpu.matmul %13, %18, %cst_20 {dimension_numbers = #tpu.dot_dimension_numbers<[1], [0], [0], [1], [0, 0, 1, 1], [], []>} : vector<8x128xf32>, vector<128x384xf32>, vector<8x384xf32> -> vector<8x384xf32>
    %20 = vector.extract_strided_slice %16 {offsets = [0, 0], sizes = [8, 128], strides = [1, 1]} : vector<8x384xf32> to vector<8x128xf32>
    %21 = vector.extract_strided_slice %19 {offsets = [0, 0], sizes = [8, 128], strides = [1, 1]} : vector<8x384xf32> to vector<8x128xf32>
    %22 = arith.addf %20, %21 : vector<8x128xf32>
    %23 = arith.negf %22 : vector<8x128xf32>
    %24 = math.exp %23 : vector<8x128xf32>
    %cst_21 = arith.constant 1.000000e+00 : f32
    %25 = vector.broadcast %cst_21 : f32 to vector<8x128xf32>
    %26 = arith.addf %25, %24 : vector<8x128xf32>
    %27 = arith.divf %25, %26 : vector<8x128xf32>
    %28 = vector.extract_strided_slice %16 {offsets = [0, 128], sizes = [8, 128], strides = [1, 1]} : vector<8x384xf32> to vector<8x128xf32>
    %29 = vector.extract_strided_slice %19 {offsets = [0, 128], sizes = [8, 128], strides = [1, 1]} : vector<8x384xf32> to vector<8x128xf32>
    %30 = arith.addf %28, %29 : vector<8x128xf32>
    %31 = arith.negf %30 : vector<8x128xf32>
    %32 = math.exp %31 : vector<8x128xf32>
    %cst_22 = arith.constant 1.000000e+00 : f32
    %33 = vector.broadcast %cst_22 : f32 to vector<8x128xf32>
    %34 = arith.addf %33, %32 : vector<8x128xf32>
    %35 = arith.divf %33, %34 : vector<8x128xf32>
    %36 = vector.extract_strided_slice %16 {offsets = [0, 256], sizes = [8, 128], strides = [1, 1]} : vector<8x384xf32> to vector<8x128xf32>
    %37 = vector.extract_strided_slice %19 {offsets = [0, 256], sizes = [8, 128], strides = [1, 1]} : vector<8x384xf32> to vector<8x128xf32>
    %38 = vector.broadcast %12 : vector<1x128xf32> to vector<8x128xf32>
    %39 = arith.addf %37, %38 : vector<8x128xf32>
    %40 = arith.mulf %27, %39 : vector<8x128xf32>
    %41 = arith.addf %36, %40 : vector<8x128xf32>
    %42 = math.tanh %41 : vector<8x128xf32>
    %43 = arith.subf %13, %42 : vector<8x128xf32>
    %44 = arith.mulf %35, %43 : vector<8x128xf32>
    %45 = arith.addf %42, %44 : vector<8x128xf32>
    %46 = arith.index_cast %c0_i32 : i32 to index
    %c0_23 = arith.constant 0 : index
    %c0_24 = arith.constant 0 : index
    %47 = vector.load %arg8[%46, %c0_23, %c0_24] : memref<8x8x128xf32, #tpu.memory_space<vmem>>, vector<1x8x128xf32>
    %48 = vector.shape_cast %47 : vector<1x8x128xf32> to vector<8x128xf32>
    %49 = vector.shape_cast %45 : vector<8x128xf32> to vector<1x8x128xf32>
    tpu.vector_store %arg8[%46, %c0_23, %c0_24], %49 {strides = array<i32>} : memref<8x8x128xf32, #tpu.memory_space<vmem>>, vector<1x8x128xf32>,
    %c1_i32 = arith.constant 1 : i32
    %50 = arith.index_cast %c1_i32 : i32 to index
    %c0_25 = arith.constant 0 : index
    %c0_26 = arith.constant 0 : index
    %51 = vector.load %arg9[%50, %c0_25, %c0_26] : memref<8x8x384xf32, #tpu.memory_space<vmem>>, vector<1x8x384xf32>
    %52 = vector.shape_cast %51 : vector<1x8x384xf32> to vector<8x384xf32>
    %c0_27 = arith.constant 0 : index
    %c0_28 = arith.constant 0 : index
    %c0_29 = arith.constant 0 : index
    %53 = vector.load %arg2[%c0_27, %c0_28, %c0_29] : memref<2x128x384xf32, #tpu.memory_space<vmem>>, vector<1x128x384xf32>
    %54 = vector.shape_cast %53 : vector<1x128x384xf32> to vector<128x384xf32>
    %cst_30 = arith.constant dense<0.000000e+00> : vector<8x384xf32>
    %55 = tpu.matmul %45, %54, %cst_30 {dimension_numbers = #tpu.dot_dimension_numbers<[1], [0], [0], [1], [0, 0, 1, 1], [], []>} : vector<8x128xf32>, vector<128x384xf32>, vector<8x384xf32> -> vector<8x384xf32>
    %56 = vector.extract_strided_slice %52 {offsets = [0, 0], sizes = [8, 128], strides = [1, 1]} : vector<8x384xf32> to vector<8x128xf32>
    %57 = vector.extract_strided_slice %55 {offsets = [0, 0], sizes = [8, 128], strides = [1, 1]} : vector<8x384xf32> to vector<8x128xf32>
    %58 = arith.addf %56, %57 : vector<8x128xf32>
    %59 = arith.negf %58 : vector<8x128xf32>
    %60 = math.exp %59 : vector<8x128xf32>
    %cst_31 = arith.constant 1.000000e+00 : f32
    %61 = vector.broadcast %cst_31 : f32 to vector<8x128xf32>
    %62 = arith.addf %61, %60 : vector<8x128xf32>
    %63 = arith.divf %61, %62 : vector<8x128xf32>
    %64 = vector.extract_strided_slice %52 {offsets = [0, 128], sizes = [8, 128], strides = [1, 1]} : vector<8x384xf32> to vector<8x128xf32>
    %65 = vector.extract_strided_slice %55 {offsets = [0, 128], sizes = [8, 128], strides = [1, 1]} : vector<8x384xf32> to vector<8x128xf32>
    %66 = arith.addf %64, %65 : vector<8x128xf32>
    %67 = arith.negf %66 : vector<8x128xf32>
    %68 = math.exp %67 : vector<8x128xf32>
    %cst_32 = arith.constant 1.000000e+00 : f32
    %69 = vector.broadcast %cst_32 : f32 to vector<8x128xf32>
    %70 = arith.addf %69, %68 : vector<8x128xf32>
    %71 = arith.divf %69, %70 : vector<8x128xf32>
    %72 = vector.extract_strided_slice %52 {offsets = [0, 256], sizes = [8, 128], strides = [1, 1]} : vector<8x384xf32> to vector<8x128xf32>
    %73 = vector.extract_strided_slice %55 {offsets = [0, 256], sizes = [8, 128], strides = [1, 1]} : vector<8x384xf32> to vector<8x128xf32>
    %74 = vector.broadcast %12 : vector<1x128xf32> to vector<8x128xf32>
    %75 = arith.addf %73, %74 : vector<8x128xf32>
    %76 = arith.mulf %63, %75 : vector<8x128xf32>
    %77 = arith.addf %72, %76 : vector<8x128xf32>
    %78 = math.tanh %77 : vector<8x128xf32>
    %79 = arith.subf %45, %78 : vector<8x128xf32>
    %80 = arith.mulf %71, %79 : vector<8x128xf32>
    %81 = arith.addf %78, %80 : vector<8x128xf32>
    %82 = arith.index_cast %c1_i32 : i32 to index
    %c0_33 = arith.constant 0 : index
    %c0_34 = arith.constant 0 : index
    %83 = vector.load %arg8[%82, %c0_33, %c0_34] : memref<8x8x128xf32, #tpu.memory_space<vmem>>, vector<1x8x128xf32>
    %84 = vector.shape_cast %83 : vector<1x8x128xf32> to vector<8x128xf32>
    %85 = vector.shape_cast %81 : vector<8x128xf32> to vector<1x8x128xf32>
    tpu.vector_store %arg8[%82, %c0_33, %c0_34], %85 {strides = array<i32>} : memref<8x8x128xf32, #tpu.memory_space<vmem>>, vector<1x8x128xf32>,
    %c2_i32 = arith.constant 2 : i32
    %86 = arith.index_cast %c2_i32 : i32 to index
    %c0_35 = arith.constant 0 : index
    %c0_36 = arith.constant 0 : index
    %87 = vector.load %arg9[%86, %c0_35, %c0_36] : memref<8x8x384xf32, #tpu.memory_space<vmem>>, vector<1x8x384xf32>
    %88 = vector.shape_cast %87 : vector<1x8x384xf32> to vector<8x384xf32>
    %c0_37 = arith.constant 0 : index
    %c0_38 = arith.constant 0 : index
    %c0_39 = arith.constant 0 : index
    %89 = vector.load %arg2[%c0_37, %c0_38, %c0_39] : memref<2x128x384xf32, #tpu.memory_space<vmem>>, vector<1x128x384xf32>
    %90 = vector.shape_cast %89 : vector<1x128x384xf32> to vector<128x384xf32>
    %cst_40 = arith.constant dense<0.000000e+00> : vector<8x384xf32>
    %91 = tpu.matmul %81, %90, %cst_40 {dimension_numbers = #tpu.dot_dimension_numbers<[1], [0], [0], [1], [0, 0, 1, 1], [], []>} : vector<8x128xf32>, vector<128x384xf32>, vector<8x384xf32> -> vector<8x384xf32>
    %92 = vector.extract_strided_slice %88 {offsets = [0, 0], sizes = [8, 128], strides = [1, 1]} : vector<8x384xf32> to vector<8x128xf32>
    %93 = vector.extract_strided_slice %91 {offsets = [0, 0], sizes = [8, 128], strides = [1, 1]} : vector<8x384xf32> to vector<8x128xf32>
    %94 = arith.addf %92, %93 : vector<8x128xf32>
    %95 = arith.negf %94 : vector<8x128xf32>
    %96 = math.exp %95 : vector<8x128xf32>
    %cst_41 = arith.constant 1.000000e+00 : f32
    %97 = vector.broadcast %cst_41 : f32 to vector<8x128xf32>
    %98 = arith.addf %97, %96 : vector<8x128xf32>
    %99 = arith.divf %97, %98 : vector<8x128xf32>
    %100 = vector.extract_strided_slice %88 {offsets = [0, 128], sizes = [8, 128], strides = [1, 1]} : vector<8x384xf32> to vector<8x128xf32>
    %101 = vector.extract_strided_slice %91 {offsets = [0, 128], sizes = [8, 128], strides = [1, 1]} : vector<8x384xf32> to vector<8x128xf32>
    %102 = arith.addf %100, %101 : vector<8x128xf32>
    %103 = arith.negf %102 : vector<8x128xf32>
    %104 = math.exp %103 : vector<8x128xf32>
    %cst_42 = arith.constant 1.000000e+00 : f32
    %105 = vector.broadcast %cst_42 : f32 to vector<8x128xf32>
    %106 = arith.addf %105, %104 : vector<8x128xf32>
    %107 = arith.divf %105, %106 : vector<8x128xf32>
    %108 = vector.extract_strided_slice %88 {offsets = [0, 256], sizes = [8, 128], strides = [1, 1]} : vector<8x384xf32> to vector<8x128xf32>
    %109 = vector.extract_strided_slice %91 {offsets = [0, 256], sizes = [8, 128], strides = [1, 1]} : vector<8x384xf32> to vector<8x128xf32>
    %110 = vector.broadcast %12 : vector<1x128xf32> to vector<8x128xf32>
    %111 = arith.addf %109, %110 : vector<8x128xf32>
    %112 = arith.mulf %99, %111 : vector<8x128xf32>
    %113 = arith.addf %108, %112 : vector<8x128xf32>
    %114 = math.tanh %113 : vector<8x128xf32>
    %115 = arith.subf %81, %114 : vector<8x128xf32>
    %116 = arith.mulf %107, %115 : vector<8x128xf32>
    %117 = arith.addf %114, %116 : vector<8x128xf32>
    %118 = arith.index_cast %c2_i32 : i32 to index
    %c0_43 = arith.constant 0 : index
    %c0_44 = arith.constant 0 : index
    %119 = vector.load %arg8[%118, %c0_43, %c0_44] : memref<8x8x128xf32, #tpu.memory_space<vmem>>, vector<1x8x128xf32>
    %120 = vector.shape_cast %119 : vector<1x8x128xf32> to vector<8x128xf32>
    %121 = vector.shape_cast %117 : vector<8x128xf32> to vector<1x8x128xf32>
    tpu.vector_store %arg8[%118, %c0_43, %c0_44], %121 {strides = array<i32>} : memref<8x8x128xf32, #tpu.memory_space<vmem>>, vector<1x8x128xf32>,
    %c3_i32 = arith.constant 3 : i32
    %122 = arith.index_cast %c3_i32 : i32 to index
    %c0_45 = arith.constant 0 : index
    %c0_46 = arith.constant 0 : index
    %123 = vector.load %arg9[%122, %c0_45, %c0_46] : memref<8x8x384xf32, #tpu.memory_space<vmem>>, vector<1x8x384xf32>
    %124 = vector.shape_cast %123 : vector<1x8x384xf32> to vector<8x384xf32>
    %c0_47 = arith.constant 0 : index
    %c0_48 = arith.constant 0 : index
    %c0_49 = arith.constant 0 : index
    %125 = vector.load %arg2[%c0_47, %c0_48, %c0_49] : memref<2x128x384xf32, #tpu.memory_space<vmem>>, vector<1x128x384xf32>
    %126 = vector.shape_cast %125 : vector<1x128x384xf32> to vector<128x384xf32>
    %cst_50 = arith.constant dense<0.000000e+00> : vector<8x384xf32>
    %127 = tpu.matmul %117, %126, %cst_50 {dimension_numbers = #tpu.dot_dimension_numbers<[1], [0], [0], [1], [0, 0, 1, 1], [], []>} : vector<8x128xf32>, vector<128x384xf32>, vector<8x384xf32> -> vector<8x384xf32>
    %128 = vector.extract_strided_slice %124 {offsets = [0, 0], sizes = [8, 128], strides = [1, 1]} : vector<8x384xf32> to vector<8x128xf32>
    %129 = vector.extract_strided_slice %127 {offsets = [0, 0], sizes = [8, 128], strides = [1, 1]} : vector<8x384xf32> to vector<8x128xf32>
    %130 = arith.addf %128, %129 : vector<8x128xf32>
    %131 = arith.negf %130 : vector<8x128xf32>
    %132 = math.exp %131 : vector<8x128xf32>
    %cst_51 = arith.constant 1.000000e+00 : f32
    %133 = vector.broadcast %cst_51 : f32 to vector<8x128xf32>
    %134 = arith.addf %133, %132 : vector<8x128xf32>
    %135 = arith.divf %133, %134 : vector<8x128xf32>
    %136 = vector.extract_strided_slice %124 {offsets = [0, 128], sizes = [8, 128], strides = [1, 1]} : vector<8x384xf32> to vector<8x128xf32>
    %137 = vector.extract_strided_slice %127 {offsets = [0, 128], sizes = [8, 128], strides = [1, 1]} : vector<8x384xf32> to vector<8x128xf32>
    %138 = arith.addf %136, %137 : vector<8x128xf32>
    %139 = arith.negf %138 : vector<8x128xf32>
    %140 = math.exp %139 : vector<8x128xf32>
    %cst_52 = arith.constant 1.000000e+00 : f32
    %141 = vector.broadcast %cst_52 : f32 to vector<8x128xf32>
    %142 = arith.addf %141, %140 : vector<8x128xf32>
    %143 = arith.divf %141, %142 : vector<8x128xf32>
    %144 = vector.extract_strided_slice %124 {offsets = [0, 256], sizes = [8, 128], strides = [1, 1]} : vector<8x384xf32> to vector<8x128xf32>
    %145 = vector.extract_strided_slice %127 {offsets = [0, 256], sizes = [8, 128], strides = [1, 1]} : vector<8x384xf32> to vector<8x128xf32>
    %146 = vector.broadcast %12 : vector<1x128xf32> to vector<8x128xf32>
    %147 = arith.addf %145, %146 : vector<8x128xf32>
    %148 = arith.mulf %135, %147 : vector<8x128xf32>
    %149 = arith.addf %144, %148 : vector<8x128xf32>
    %150 = math.tanh %149 : vector<8x128xf32>
    %151 = arith.subf %117, %150 : vector<8x128xf32>
    %152 = arith.mulf %143, %151 : vector<8x128xf32>
    %153 = arith.addf %150, %152 : vector<8x128xf32>
    %154 = arith.index_cast %c3_i32 : i32 to index
    %c0_53 = arith.constant 0 : index
    %c0_54 = arith.constant 0 : index
    %155 = vector.load %arg8[%154, %c0_53, %c0_54] : memref<8x8x128xf32, #tpu.memory_space<vmem>>, vector<1x8x128xf32>
    %156 = vector.shape_cast %155 : vector<1x8x128xf32> to vector<8x128xf32>
    %157 = vector.shape_cast %153 : vector<8x128xf32> to vector<1x8x128xf32>
    tpu.vector_store %arg8[%154, %c0_53, %c0_54], %157 {strides = array<i32>} : memref<8x8x128xf32, #tpu.memory_space<vmem>>, vector<1x8x128xf32>,
    %c4_i32 = arith.constant 4 : i32
    %158 = arith.index_cast %c4_i32 : i32 to index
    %c0_55 = arith.constant 0 : index
    %c0_56 = arith.constant 0 : index
    %159 = vector.load %arg9[%158, %c0_55, %c0_56] : memref<8x8x384xf32, #tpu.memory_space<vmem>>, vector<1x8x384xf32>
    %160 = vector.shape_cast %159 : vector<1x8x384xf32> to vector<8x384xf32>
    %c0_57 = arith.constant 0 : index
    %c0_58 = arith.constant 0 : index
    %c0_59 = arith.constant 0 : index
    %161 = vector.load %arg2[%c0_57, %c0_58, %c0_59] : memref<2x128x384xf32, #tpu.memory_space<vmem>>, vector<1x128x384xf32>
    %162 = vector.shape_cast %161 : vector<1x128x384xf32> to vector<128x384xf32>
    %cst_60 = arith.constant dense<0.000000e+00> : vector<8x384xf32>
    %163 = tpu.matmul %153, %162, %cst_60 {dimension_numbers = #tpu.dot_dimension_numbers<[1], [0], [0], [1], [0, 0, 1, 1], [], []>} : vector<8x128xf32>, vector<128x384xf32>, vector<8x384xf32> -> vector<8x384xf32>
    %164 = vector.extract_strided_slice %160 {offsets = [0, 0], sizes = [8, 128], strides = [1, 1]} : vector<8x384xf32> to vector<8x128xf32>
    %165 = vector.extract_strided_slice %163 {offsets = [0, 0], sizes = [8, 128], strides = [1, 1]} : vector<8x384xf32> to vector<8x128xf32>
    %166 = arith.addf %164, %165 : vector<8x128xf32>
    %167 = arith.negf %166 : vector<8x128xf32>
    %168 = math.exp %167 : vector<8x128xf32>
    %cst_61 = arith.constant 1.000000e+00 : f32
    %169 = vector.broadcast %cst_61 : f32 to vector<8x128xf32>
    %170 = arith.addf %169, %168 : vector<8x128xf32>
    %171 = arith.divf %169, %170 : vector<8x128xf32>
    %172 = vector.extract_strided_slice %160 {offsets = [0, 128], sizes = [8, 128], strides = [1, 1]} : vector<8x384xf32> to vector<8x128xf32>
    %173 = vector.extract_strided_slice %163 {offsets = [0, 128], sizes = [8, 128], strides = [1, 1]} : vector<8x384xf32> to vector<8x128xf32>
    %174 = arith.addf %172, %173 : vector<8x128xf32>
    %175 = arith.negf %174 : vector<8x128xf32>
    %176 = math.exp %175 : vector<8x128xf32>
    %cst_62 = arith.constant 1.000000e+00 : f32
    %177 = vector.broadcast %cst_62 : f32 to vector<8x128xf32>
    %178 = arith.addf %177, %176 : vector<8x128xf32>
    %179 = arith.divf %177, %178 : vector<8x128xf32>
    %180 = vector.extract_strided_slice %160 {offsets = [0, 256], sizes = [8, 128], strides = [1, 1]} : vector<8x384xf32> to vector<8x128xf32>
    %181 = vector.extract_strided_slice %163 {offsets = [0, 256], sizes = [8, 128], strides = [1, 1]} : vector<8x384xf32> to vector<8x128xf32>
    %182 = vector.broadcast %12 : vector<1x128xf32> to vector<8x128xf32>
    %183 = arith.addf %181, %182 : vector<8x128xf32>
    %184 = arith.mulf %171, %183 : vector<8x128xf32>
    %185 = arith.addf %180, %184 : vector<8x128xf32>
    %186 = math.tanh %185 : vector<8x128xf32>
    %187 = arith.subf %153, %186 : vector<8x128xf32>
    %188 = arith.mulf %179, %187 : vector<8x128xf32>
    %189 = arith.addf %186, %188 : vector<8x128xf32>
    %190 = arith.index_cast %c4_i32 : i32 to index
    %c0_63 = arith.constant 0 : index
    %c0_64 = arith.constant 0 : index
    %191 = vector.load %arg8[%190, %c0_63, %c0_64] : memref<8x8x128xf32, #tpu.memory_space<vmem>>, vector<1x8x128xf32>
    %192 = vector.shape_cast %191 : vector<1x8x128xf32> to vector<8x128xf32>
    %193 = vector.shape_cast %189 : vector<8x128xf32> to vector<1x8x128xf32>
    tpu.vector_store %arg8[%190, %c0_63, %c0_64], %193 {strides = array<i32>} : memref<8x8x128xf32, #tpu.memory_space<vmem>>, vector<1x8x128xf32>,
    %c5_i32 = arith.constant 5 : i32
    %194 = arith.index_cast %c5_i32 : i32 to index
    %c0_65 = arith.constant 0 : index
    %c0_66 = arith.constant 0 : index
    %195 = vector.load %arg9[%194, %c0_65, %c0_66] : memref<8x8x384xf32, #tpu.memory_space<vmem>>, vector<1x8x384xf32>
    %196 = vector.shape_cast %195 : vector<1x8x384xf32> to vector<8x384xf32>
    %c0_67 = arith.constant 0 : index
    %c0_68 = arith.constant 0 : index
    %c0_69 = arith.constant 0 : index
    %197 = vector.load %arg2[%c0_67, %c0_68, %c0_69] : memref<2x128x384xf32, #tpu.memory_space<vmem>>, vector<1x128x384xf32>
    %198 = vector.shape_cast %197 : vector<1x128x384xf32> to vector<128x384xf32>
    %cst_70 = arith.constant dense<0.000000e+00> : vector<8x384xf32>
    %199 = tpu.matmul %189, %198, %cst_70 {dimension_numbers = #tpu.dot_dimension_numbers<[1], [0], [0], [1], [0, 0, 1, 1], [], []>} : vector<8x128xf32>, vector<128x384xf32>, vector<8x384xf32> -> vector<8x384xf32>
    %200 = vector.extract_strided_slice %196 {offsets = [0, 0], sizes = [8, 128], strides = [1, 1]} : vector<8x384xf32> to vector<8x128xf32>
    %201 = vector.extract_strided_slice %199 {offsets = [0, 0], sizes = [8, 128], strides = [1, 1]} : vector<8x384xf32> to vector<8x128xf32>
    %202 = arith.addf %200, %201 : vector<8x128xf32>
    %203 = arith.negf %202 : vector<8x128xf32>
    %204 = math.exp %203 : vector<8x128xf32>
    %cst_71 = arith.constant 1.000000e+00 : f32
    %205 = vector.broadcast %cst_71 : f32 to vector<8x128xf32>
    %206 = arith.addf %205, %204 : vector<8x128xf32>
    %207 = arith.divf %205, %206 : vector<8x128xf32>
    %208 = vector.extract_strided_slice %196 {offsets = [0, 128], sizes = [8, 128], strides = [1, 1]} : vector<8x384xf32> to vector<8x128xf32>
    %209 = vector.extract_strided_slice %199 {offsets = [0, 128], sizes = [8, 128], strides = [1, 1]} : vector<8x384xf32> to vector<8x128xf32>
    %210 = arith.addf %208, %209 : vector<8x128xf32>
    %211 = arith.negf %210 : vector<8x128xf32>
    %212 = math.exp %211 : vector<8x128xf32>
    %cst_72 = arith.constant 1.000000e+00 : f32
    %213 = vector.broadcast %cst_72 : f32 to vector<8x128xf32>
    %214 = arith.addf %213, %212 : vector<8x128xf32>
    %215 = arith.divf %213, %214 : vector<8x128xf32>
    %216 = vector.extract_strided_slice %196 {offsets = [0, 256], sizes = [8, 128], strides = [1, 1]} : vector<8x384xf32> to vector<8x128xf32>
    %217 = vector.extract_strided_slice %199 {offsets = [0, 256], sizes = [8, 128], strides = [1, 1]} : vector<8x384xf32> to vector<8x128xf32>
    %218 = vector.broadcast %12 : vector<1x128xf32> to vector<8x128xf32>
    %219 = arith.addf %217, %218 : vector<8x128xf32>
    %220 = arith.mulf %207, %219 : vector<8x128xf32>
    %221 = arith.addf %216, %220 : vector<8x128xf32>
    %222 = math.tanh %221 : vector<8x128xf32>
    %223 = arith.subf %189, %222 : vector<8x128xf32>
    %224 = arith.mulf %215, %223 : vector<8x128xf32>
    %225 = arith.addf %222, %224 : vector<8x128xf32>
    %226 = arith.index_cast %c5_i32 : i32 to index
    %c0_73 = arith.constant 0 : index
    %c0_74 = arith.constant 0 : index
    %227 = vector.load %arg8[%226, %c0_73, %c0_74] : memref<8x8x128xf32, #tpu.memory_space<vmem>>, vector<1x8x128xf32>
    %228 = vector.shape_cast %227 : vector<1x8x128xf32> to vector<8x128xf32>
    %229 = vector.shape_cast %225 : vector<8x128xf32> to vector<1x8x128xf32>
    tpu.vector_store %arg8[%226, %c0_73, %c0_74], %229 {strides = array<i32>} : memref<8x8x128xf32, #tpu.memory_space<vmem>>, vector<1x8x128xf32>,
    %c6_i32 = arith.constant 6 : i32
    %230 = arith.index_cast %c6_i32 : i32 to index
    %c0_75 = arith.constant 0 : index
    %c0_76 = arith.constant 0 : index
    %231 = vector.load %arg9[%230, %c0_75, %c0_76] : memref<8x8x384xf32, #tpu.memory_space<vmem>>, vector<1x8x384xf32>
    %232 = vector.shape_cast %231 : vector<1x8x384xf32> to vector<8x384xf32>
    %c0_77 = arith.constant 0 : index
    %c0_78 = arith.constant 0 : index
    %c0_79 = arith.constant 0 : index
    %233 = vector.load %arg2[%c0_77, %c0_78, %c0_79] : memref<2x128x384xf32, #tpu.memory_space<vmem>>, vector<1x128x384xf32>
    %234 = vector.shape_cast %233 : vector<1x128x384xf32> to vector<128x384xf32>
    %cst_80 = arith.constant dense<0.000000e+00> : vector<8x384xf32>
    %235 = tpu.matmul %225, %234, %cst_80 {dimension_numbers = #tpu.dot_dimension_numbers<[1], [0], [0], [1], [0, 0, 1, 1], [], []>} : vector<8x128xf32>, vector<128x384xf32>, vector<8x384xf32> -> vector<8x384xf32>
    %236 = vector.extract_strided_slice %232 {offsets = [0, 0], sizes = [8, 128], strides = [1, 1]} : vector<8x384xf32> to vector<8x128xf32>
    %237 = vector.extract_strided_slice %235 {offsets = [0, 0], sizes = [8, 128], strides = [1, 1]} : vector<8x384xf32> to vector<8x128xf32>
    %238 = arith.addf %236, %237 : vector<8x128xf32>
    %239 = arith.negf %238 : vector<8x128xf32>
    %240 = math.exp %239 : vector<8x128xf32>
    %cst_81 = arith.constant 1.000000e+00 : f32
    %241 = vector.broadcast %cst_81 : f32 to vector<8x128xf32>
    %242 = arith.addf %241, %240 : vector<8x128xf32>
    %243 = arith.divf %241, %242 : vector<8x128xf32>
    %244 = vector.extract_strided_slice %232 {offsets = [0, 128], sizes = [8, 128], strides = [1, 1]} : vector<8x384xf32> to vector<8x128xf32>
    %245 = vector.extract_strided_slice %235 {offsets = [0, 128], sizes = [8, 128], strides = [1, 1]} : vector<8x384xf32> to vector<8x128xf32>
    %246 = arith.addf %244, %245 : vector<8x128xf32>
    %247 = arith.negf %246 : vector<8x128xf32>
    %248 = math.exp %247 : vector<8x128xf32>
    %cst_82 = arith.constant 1.000000e+00 : f32
    %249 = vector.broadcast %cst_82 : f32 to vector<8x128xf32>
    %250 = arith.addf %249, %248 : vector<8x128xf32>
    %251 = arith.divf %249, %250 : vector<8x128xf32>
    %252 = vector.extract_strided_slice %232 {offsets = [0, 256], sizes = [8, 128], strides = [1, 1]} : vector<8x384xf32> to vector<8x128xf32>
    %253 = vector.extract_strided_slice %235 {offsets = [0, 256], sizes = [8, 128], strides = [1, 1]} : vector<8x384xf32> to vector<8x128xf32>
    %254 = vector.broadcast %12 : vector<1x128xf32> to vector<8x128xf32>
    %255 = arith.addf %253, %254 : vector<8x128xf32>
    %256 = arith.mulf %243, %255 : vector<8x128xf32>
    %257 = arith.addf %252, %256 : vector<8x128xf32>
    %258 = math.tanh %257 : vector<8x128xf32>
    %259 = arith.subf %225, %258 : vector<8x128xf32>
    %260 = arith.mulf %251, %259 : vector<8x128xf32>
    %261 = arith.addf %258, %260 : vector<8x128xf32>
    %262 = arith.index_cast %c6_i32 : i32 to index
    %c0_83 = arith.constant 0 : index
    %c0_84 = arith.constant 0 : index
    %263 = vector.load %arg8[%262, %c0_83, %c0_84] : memref<8x8x128xf32, #tpu.memory_space<vmem>>, vector<1x8x128xf32>
    %264 = vector.shape_cast %263 : vector<1x8x128xf32> to vector<8x128xf32>
    %265 = vector.shape_cast %261 : vector<8x128xf32> to vector<1x8x128xf32>
    tpu.vector_store %arg8[%262, %c0_83, %c0_84], %265 {strides = array<i32>} : memref<8x8x128xf32, #tpu.memory_space<vmem>>, vector<1x8x128xf32>,
    %c7_i32 = arith.constant 7 : i32
    %266 = arith.index_cast %c7_i32 : i32 to index
    %c0_85 = arith.constant 0 : index
    %c0_86 = arith.constant 0 : index
    %267 = vector.load %arg9[%266, %c0_85, %c0_86] : memref<8x8x384xf32, #tpu.memory_space<vmem>>, vector<1x8x384xf32>
    %268 = vector.shape_cast %267 : vector<1x8x384xf32> to vector<8x384xf32>
    %c0_87 = arith.constant 0 : index
    %c0_88 = arith.constant 0 : index
    %c0_89 = arith.constant 0 : index
    %269 = vector.load %arg2[%c0_87, %c0_88, %c0_89] : memref<2x128x384xf32, #tpu.memory_space<vmem>>, vector<1x128x384xf32>
    %270 = vector.shape_cast %269 : vector<1x128x384xf32> to vector<128x384xf32>
    %cst_90 = arith.constant dense<0.000000e+00> : vector<8x384xf32>
    %271 = tpu.matmul %261, %270, %cst_90 {dimension_numbers = #tpu.dot_dimension_numbers<[1], [0], [0], [1], [0, 0, 1, 1], [], []>} : vector<8x128xf32>, vector<128x384xf32>, vector<8x384xf32> -> vector<8x384xf32>
    %272 = vector.extract_strided_slice %268 {offsets = [0, 0], sizes = [8, 128], strides = [1, 1]} : vector<8x384xf32> to vector<8x128xf32>
    %273 = vector.extract_strided_slice %271 {offsets = [0, 0], sizes = [8, 128], strides = [1, 1]} : vector<8x384xf32> to vector<8x128xf32>
    %274 = arith.addf %272, %273 : vector<8x128xf32>
    %275 = arith.negf %274 : vector<8x128xf32>
    %276 = math.exp %275 : vector<8x128xf32>
    %cst_91 = arith.constant 1.000000e+00 : f32
    %277 = vector.broadcast %cst_91 : f32 to vector<8x128xf32>
    %278 = arith.addf %277, %276 : vector<8x128xf32>
    %279 = arith.divf %277, %278 : vector<8x128xf32>
    %280 = vector.extract_strided_slice %268 {offsets = [0, 128], sizes = [8, 128], strides = [1, 1]} : vector<8x384xf32> to vector<8x128xf32>
    %281 = vector.extract_strided_slice %271 {offsets = [0, 128], sizes = [8, 128], strides = [1, 1]} : vector<8x384xf32> to vector<8x128xf32>
    %282 = arith.addf %280, %281 : vector<8x128xf32>
    %283 = arith.negf %282 : vector<8x128xf32>
    %284 = math.exp %283 : vector<8x128xf32>
    %cst_92 = arith.constant 1.000000e+00 : f32
    %285 = vector.broadcast %cst_92 : f32 to vector<8x128xf32>
    %286 = arith.addf %285, %284 : vector<8x128xf32>
    %287 = arith.divf %285, %286 : vector<8x128xf32>
    %288 = vector.extract_strided_slice %268 {offsets = [0, 256], sizes = [8, 128], strides = [1, 1]} : vector<8x384xf32> to vector<8x128xf32>
    %289 = vector.extract_strided_slice %271 {offsets = [0, 256], sizes = [8, 128], strides = [1, 1]} : vector<8x384xf32> to vector<8x128xf32>
    %290 = vector.broadcast %12 : vector<1x128xf32> to vector<8x128xf32>
    %291 = arith.addf %289, %290 : vector<8x128xf32>
    %292 = arith.mulf %279, %291 : vector<8x128xf32>
    %293 = arith.addf %288, %292 : vector<8x128xf32>
    %294 = math.tanh %293 : vector<8x128xf32>
    %295 = arith.subf %261, %294 : vector<8x128xf32>
    %296 = arith.mulf %287, %295 : vector<8x128xf32>
    %297 = arith.addf %294, %296 : vector<8x128xf32>
    %298 = arith.index_cast %c7_i32 : i32 to index
    %c0_93 = arith.constant 0 : index
    %c0_94 = arith.constant 0 : index
    %299 = vector.load %arg8[%298, %c0_93, %c0_94] : memref<8x8x128xf32, #tpu.memory_space<vmem>>, vector<1x8x128xf32>
    %300 = vector.shape_cast %299 : vector<1x8x128xf32> to vector<8x128xf32>
    %301 = vector.shape_cast %297 : vector<8x128xf32> to vector<1x8x128xf32>
    tpu.vector_store %arg8[%298, %c0_93, %c0_94], %301 {strides = array<i32>} : memref<8x8x128xf32, #tpu.memory_space<vmem>>, vector<1x8x128xf32>,
    %c8_i32 = arith.constant 8 : i32
    %c0_95 = arith.constant 0 : index
    %c0_96 = arith.constant 0 : index
    %c0_97 = arith.constant 0 : index
    %302 = vector.load %arg8[%c0_95, %c0_96, %c0_97] : memref<8x8x128xf32, #tpu.memory_space<vmem>>, vector<8x8x128xf32>
    %303 = vector.shape_cast %302 : vector<8x8x128xf32> to vector<64x128xf32>
    %c1 = arith.constant 1 : index
    %c0_98 = arith.constant 0 : index
    %c0_99 = arith.constant 0 : index
    %304 = vector.load %arg1[%c1, %c0_98, %c0_99] : memref<2x128x384xf32, #tpu.memory_space<vmem>>, vector<1x128x384xf32>
    %305 = vector.shape_cast %304 : vector<1x128x384xf32> to vector<128x384xf32>
    %cst_100 = arith.constant dense<0.000000e+00> : vector<64x384xf32>
    %306 = tpu.matmul %303, %305, %cst_100 {dimension_numbers = #tpu.dot_dimension_numbers<[1], [0], [0], [1], [0, 0, 1, 1], [], []>} : vector<64x128xf32>, vector<128x384xf32>, vector<64x384xf32> -> vector<64x384xf32>
    %c1_101 = arith.constant 1 : index
    %c0_102 = arith.constant 0 : index
    %c0_103 = arith.constant 0 : index
    %307 = vector.load %arg3[%c1_101, %c0_102, %c0_103] : memref<2x1x384xf32, #tpu.memory_space<vmem>>, vector<1x1x384xf32>
    %308 = vector.shape_cast %307 : vector<1x1x384xf32> to vector<1x384xf32>
    %309 = vector.broadcast %308 : vector<1x384xf32> to vector<64x384xf32>
    %310 = arith.addf %306, %309 : vector<64x384xf32>
    %311 = vector.shape_cast %310 : vector<64x384xf32> to vector<8x8x384xf32>
    %c0_104 = arith.constant 0 : index
    %c0_105 = arith.constant 0 : index
    %c0_106 = arith.constant 0 : index
    %312 = vector.load %arg9[%c0_104, %c0_105, %c0_106] : memref<8x8x384xf32, #tpu.memory_space<vmem>>, vector<8x8x384xf32>
    tpu.vector_store %arg9[%c0_104, %c0_105, %c0_106], %311 {strides = array<i32>} : memref<8x8x384xf32, #tpu.memory_space<vmem>>, vector<8x8x384xf32>,
    %c1_107 = arith.constant 1 : index
    %c0_108 = arith.constant 0 : index
    %c0_109 = arith.constant 0 : index
    %313 = vector.load %arg4[%c1_107, %c0_108, %c0_109] : memref<2x1x128xf32, #tpu.memory_space<vmem>>, vector<1x1x128xf32>
    %314 = vector.shape_cast %313 : vector<1x1x128xf32> to vector<1x128xf32>
    %cst_110 = arith.constant 0.000000e+00 : f32
    %315 = vector.broadcast %cst_110 : f32 to vector<8x128xf32>
    %c0_i32_111 = arith.constant 0 : i32
    %316 = arith.index_cast %c0_i32_111 : i32 to index
    %c0_112 = arith.constant 0 : index
    %c0_113 = arith.constant 0 : index
    %317 = vector.load %arg9[%316, %c0_112, %c0_113] : memref<8x8x384xf32, #tpu.memory_space<vmem>>, vector<1x8x384xf32>
    %318 = vector.shape_cast %317 : vector<1x8x384xf32> to vector<8x384xf32>
    %c1_114 = arith.constant 1 : index
    %c0_115 = arith.constant 0 : index
    %c0_116 = arith.constant 0 : index
    %319 = vector.load %arg2[%c1_114, %c0_115, %c0_116] : memref<2x128x384xf32, #tpu.memory_space<vmem>>, vector<1x128x384xf32>
    %320 = vector.shape_cast %319 : vector<1x128x384xf32> to vector<128x384xf32>
    %cst_117 = arith.constant dense<0.000000e+00> : vector<8x384xf32>
    %321 = tpu.matmul %315, %320, %cst_117 {dimension_numbers = #tpu.dot_dimension_numbers<[1], [0], [0], [1], [0, 0, 1, 1], [], []>} : vector<8x128xf32>, vector<128x384xf32>, vector<8x384xf32> -> vector<8x384xf32>
    %322 = vector.extract_strided_slice %318 {offsets = [0, 0], sizes = [8, 128], strides = [1, 1]} : vector<8x384xf32> to vector<8x128xf32>
    %323 = vector.extract_strided_slice %321 {offsets = [0, 0], sizes = [8, 128], strides = [1, 1]} : vector<8x384xf32> to vector<8x128xf32>
    %324 = arith.addf %322, %323 : vector<8x128xf32>
    %325 = arith.negf %324 : vector<8x128xf32>
    %326 = math.exp %325 : vector<8x128xf32>
    %cst_118 = arith.constant 1.000000e+00 : f32
    %327 = vector.broadcast %cst_118 : f32 to vector<8x128xf32>
    %328 = arith.addf %327, %326 : vector<8x128xf32>
    %329 = arith.divf %327, %328 : vector<8x128xf32>
    %330 = vector.extract_strided_slice %318 {offsets = [0, 128], sizes = [8, 128], strides = [1, 1]} : vector<8x384xf32> to vector<8x128xf32>
    %331 = vector.extract_strided_slice %321 {offsets = [0, 128], sizes = [8, 128], strides = [1, 1]} : vector<8x384xf32> to vector<8x128xf32>
    %332 = arith.addf %330, %331 : vector<8x128xf32>
    %333 = arith.negf %332 : vector<8x128xf32>
    %334 = math.exp %333 : vector<8x128xf32>
    %cst_119 = arith.constant 1.000000e+00 : f32
    %335 = vector.broadcast %cst_119 : f32 to vector<8x128xf32>
    %336 = arith.addf %335, %334 : vector<8x128xf32>
    %337 = arith.divf %335, %336 : vector<8x128xf32>
    %338 = vector.extract_strided_slice %318 {offsets = [0, 256], sizes = [8, 128], strides = [1, 1]} : vector<8x384xf32> to vector<8x128xf32>
    %339 = vector.extract_strided_slice %321 {offsets = [0, 256], sizes = [8, 128], strides = [1, 1]} : vector<8x384xf32> to vector<8x128xf32>
    %340 = vector.broadcast %314 : vector<1x128xf32> to vector<8x128xf32>
    %341 = arith.addf %339, %340 : vector<8x128xf32>
    %342 = arith.mulf %329, %341 : vector<8x128xf32>
    %343 = arith.addf %338, %342 : vector<8x128xf32>
    %344 = math.tanh %343 : vector<8x128xf32>
    %345 = arith.subf %315, %344 : vector<8x128xf32>
    %346 = arith.mulf %337, %345 : vector<8x128xf32>
    %347 = arith.addf %344, %346 : vector<8x128xf32>
    %348 = arith.index_cast %c0_i32_111 : i32 to index
    %c0_120 = arith.constant 0 : index
    %c0_121 = arith.constant 0 : index
    %349 = vector.load %arg8[%348, %c0_120, %c0_121] : memref<8x8x128xf32, #tpu.memory_space<vmem>>, vector<1x8x128xf32>
    %350 = vector.shape_cast %349 : vector<1x8x128xf32> to vector<8x128xf32>
    %351 = vector.shape_cast %347 : vector<8x128xf32> to vector<1x8x128xf32>
    tpu.vector_store %arg8[%348, %c0_120, %c0_121], %351 {strides = array<i32>} : memref<8x8x128xf32, #tpu.memory_space<vmem>>, vector<1x8x128xf32>,
    %c1_i32_122 = arith.constant 1 : i32
    %352 = arith.index_cast %c1_i32_122 : i32 to index
    %c0_123 = arith.constant 0 : index
    %c0_124 = arith.constant 0 : index
    %353 = vector.load %arg9[%352, %c0_123, %c0_124] : memref<8x8x384xf32, #tpu.memory_space<vmem>>, vector<1x8x384xf32>
    %354 = vector.shape_cast %353 : vector<1x8x384xf32> to vector<8x384xf32>
    %c1_125 = arith.constant 1 : index
    %c0_126 = arith.constant 0 : index
    %c0_127 = arith.constant 0 : index
    %355 = vector.load %arg2[%c1_125, %c0_126, %c0_127] : memref<2x128x384xf32, #tpu.memory_space<vmem>>, vector<1x128x384xf32>
    %356 = vector.shape_cast %355 : vector<1x128x384xf32> to vector<128x384xf32>
    %cst_128 = arith.constant dense<0.000000e+00> : vector<8x384xf32>
    %357 = tpu.matmul %347, %356, %cst_128 {dimension_numbers = #tpu.dot_dimension_numbers<[1], [0], [0], [1], [0, 0, 1, 1], [], []>} : vector<8x128xf32>, vector<128x384xf32>, vector<8x384xf32> -> vector<8x384xf32>
    %358 = vector.extract_strided_slice %354 {offsets = [0, 0], sizes = [8, 128], strides = [1, 1]} : vector<8x384xf32> to vector<8x128xf32>
    %359 = vector.extract_strided_slice %357 {offsets = [0, 0], sizes = [8, 128], strides = [1, 1]} : vector<8x384xf32> to vector<8x128xf32>
    %360 = arith.addf %358, %359 : vector<8x128xf32>
    %361 = arith.negf %360 : vector<8x128xf32>
    %362 = math.exp %361 : vector<8x128xf32>
    %cst_129 = arith.constant 1.000000e+00 : f32
    %363 = vector.broadcast %cst_129 : f32 to vector<8x128xf32>
    %364 = arith.addf %363, %362 : vector<8x128xf32>
    %365 = arith.divf %363, %364 : vector<8x128xf32>
    %366 = vector.extract_strided_slice %354 {offsets = [0, 128], sizes = [8, 128], strides = [1, 1]} : vector<8x384xf32> to vector<8x128xf32>
    %367 = vector.extract_strided_slice %357 {offsets = [0, 128], sizes = [8, 128], strides = [1, 1]} : vector<8x384xf32> to vector<8x128xf32>
    %368 = arith.addf %366, %367 : vector<8x128xf32>
    %369 = arith.negf %368 : vector<8x128xf32>
    %370 = math.exp %369 : vector<8x128xf32>
    %cst_130 = arith.constant 1.000000e+00 : f32
    %371 = vector.broadcast %cst_130 : f32 to vector<8x128xf32>
    %372 = arith.addf %371, %370 : vector<8x128xf32>
    %373 = arith.divf %371, %372 : vector<8x128xf32>
    %374 = vector.extract_strided_slice %354 {offsets = [0, 256], sizes = [8, 128], strides = [1, 1]} : vector<8x384xf32> to vector<8x128xf32>
    %375 = vector.extract_strided_slice %357 {offsets = [0, 256], sizes = [8, 128], strides = [1, 1]} : vector<8x384xf32> to vector<8x128xf32>
    %376 = vector.broadcast %314 : vector<1x128xf32> to vector<8x128xf32>
    %377 = arith.addf %375, %376 : vector<8x128xf32>
    %378 = arith.mulf %365, %377 : vector<8x128xf32>
    %379 = arith.addf %374, %378 : vector<8x128xf32>
    %380 = math.tanh %379 : vector<8x128xf32>
    %381 = arith.subf %347, %380 : vector<8x128xf32>
    %382 = arith.mulf %373, %381 : vector<8x128xf32>
    %383 = arith.addf %380, %382 : vector<8x128xf32>
    %384 = arith.index_cast %c1_i32_122 : i32 to index
    %c0_131 = arith.constant 0 : index
    %c0_132 = arith.constant 0 : index
    %385 = vector.load %arg8[%384, %c0_131, %c0_132] : memref<8x8x128xf32, #tpu.memory_space<vmem>>, vector<1x8x128xf32>
    %386 = vector.shape_cast %385 : vector<1x8x128xf32> to vector<8x128xf32>
    %387 = vector.shape_cast %383 : vector<8x128xf32> to vector<1x8x128xf32>
    tpu.vector_store %arg8[%384, %c0_131, %c0_132], %387 {strides = array<i32>} : memref<8x8x128xf32, #tpu.memory_space<vmem>>, vector<1x8x128xf32>,
    %c2_i32_133 = arith.constant 2 : i32
    %388 = arith.index_cast %c2_i32_133 : i32 to index
    %c0_134 = arith.constant 0 : index
    %c0_135 = arith.constant 0 : index
    %389 = vector.load %arg9[%388, %c0_134, %c0_135] : memref<8x8x384xf32, #tpu.memory_space<vmem>>, vector<1x8x384xf32>
    %390 = vector.shape_cast %389 : vector<1x8x384xf32> to vector<8x384xf32>
    %c1_136 = arith.constant 1 : index
    %c0_137 = arith.constant 0 : index
    %c0_138 = arith.constant 0 : index
    %391 = vector.load %arg2[%c1_136, %c0_137, %c0_138] : memref<2x128x384xf32, #tpu.memory_space<vmem>>, vector<1x128x384xf32>
    %392 = vector.shape_cast %391 : vector<1x128x384xf32> to vector<128x384xf32>
    %cst_139 = arith.constant dense<0.000000e+00> : vector<8x384xf32>
    %393 = tpu.matmul %383, %392, %cst_139 {dimension_numbers = #tpu.dot_dimension_numbers<[1], [0], [0], [1], [0, 0, 1, 1], [], []>} : vector<8x128xf32>, vector<128x384xf32>, vector<8x384xf32> -> vector<8x384xf32>
    %394 = vector.extract_strided_slice %390 {offsets = [0, 0], sizes = [8, 128], strides = [1, 1]} : vector<8x384xf32> to vector<8x128xf32>
    %395 = vector.extract_strided_slice %393 {offsets = [0, 0], sizes = [8, 128], strides = [1, 1]} : vector<8x384xf32> to vector<8x128xf32>
    %396 = arith.addf %394, %395 : vector<8x128xf32>
    %397 = arith.negf %396 : vector<8x128xf32>
    %398 = math.exp %397 : vector<8x128xf32>
    %cst_140 = arith.constant 1.000000e+00 : f32
    %399 = vector.broadcast %cst_140 : f32 to vector<8x128xf32>
    %400 = arith.addf %399, %398 : vector<8x128xf32>
    %401 = arith.divf %399, %400 : vector<8x128xf32>
    %402 = vector.extract_strided_slice %390 {offsets = [0, 128], sizes = [8, 128], strides = [1, 1]} : vector<8x384xf32> to vector<8x128xf32>
    %403 = vector.extract_strided_slice %393 {offsets = [0, 128], sizes = [8, 128], strides = [1, 1]} : vector<8x384xf32> to vector<8x128xf32>
    %404 = arith.addf %402, %403 : vector<8x128xf32>
    %405 = arith.negf %404 : vector<8x128xf32>
    %406 = math.exp %405 : vector<8x128xf32>
    %cst_141 = arith.constant 1.000000e+00 : f32
    %407 = vector.broadcast %cst_141 : f32 to vector<8x128xf32>
    %408 = arith.addf %407, %406 : vector<8x128xf32>
    %409 = arith.divf %407, %408 : vector<8x128xf32>
    %410 = vector.extract_strided_slice %390 {offsets = [0, 256], sizes = [8, 128], strides = [1, 1]} : vector<8x384xf32> to vector<8x128xf32>
    %411 = vector.extract_strided_slice %393 {offsets = [0, 256], sizes = [8, 128], strides = [1, 1]} : vector<8x384xf32> to vector<8x128xf32>
    %412 = vector.broadcast %314 : vector<1x128xf32> to vector<8x128xf32>
    %413 = arith.addf %411, %412 : vector<8x128xf32>
    %414 = arith.mulf %401, %413 : vector<8x128xf32>
    %415 = arith.addf %410, %414 : vector<8x128xf32>
    %416 = math.tanh %415 : vector<8x128xf32>
    %417 = arith.subf %383, %416 : vector<8x128xf32>
    %418 = arith.mulf %409, %417 : vector<8x128xf32>
    %419 = arith.addf %416, %418 : vector<8x128xf32>
    %420 = arith.index_cast %c2_i32_133 : i32 to index
    %c0_142 = arith.constant 0 : index
    %c0_143 = arith.constant 0 : index
    %421 = vector.load %arg8[%420, %c0_142, %c0_143] : memref<8x8x128xf32, #tpu.memory_space<vmem>>, vector<1x8x128xf32>
    %422 = vector.shape_cast %421 : vector<1x8x128xf32> to vector<8x128xf32>
    %423 = vector.shape_cast %419 : vector<8x128xf32> to vector<1x8x128xf32>
    tpu.vector_store %arg8[%420, %c0_142, %c0_143], %423 {strides = array<i32>} : memref<8x8x128xf32, #tpu.memory_space<vmem>>, vector<1x8x128xf32>,
    %c3_i32_144 = arith.constant 3 : i32
    %424 = arith.index_cast %c3_i32_144 : i32 to index
    %c0_145 = arith.constant 0 : index
    %c0_146 = arith.constant 0 : index
    %425 = vector.load %arg9[%424, %c0_145, %c0_146] : memref<8x8x384xf32, #tpu.memory_space<vmem>>, vector<1x8x384xf32>
    %426 = vector.shape_cast %425 : vector<1x8x384xf32> to vector<8x384xf32>
    %c1_147 = arith.constant 1 : index
    %c0_148 = arith.constant 0 : index
    %c0_149 = arith.constant 0 : index
    %427 = vector.load %arg2[%c1_147, %c0_148, %c0_149] : memref<2x128x384xf32, #tpu.memory_space<vmem>>, vector<1x128x384xf32>
    %428 = vector.shape_cast %427 : vector<1x128x384xf32> to vector<128x384xf32>
    %cst_150 = arith.constant dense<0.000000e+00> : vector<8x384xf32>
    %429 = tpu.matmul %419, %428, %cst_150 {dimension_numbers = #tpu.dot_dimension_numbers<[1], [0], [0], [1], [0, 0, 1, 1], [], []>} : vector<8x128xf32>, vector<128x384xf32>, vector<8x384xf32> -> vector<8x384xf32>
    %430 = vector.extract_strided_slice %426 {offsets = [0, 0], sizes = [8, 128], strides = [1, 1]} : vector<8x384xf32> to vector<8x128xf32>
    %431 = vector.extract_strided_slice %429 {offsets = [0, 0], sizes = [8, 128], strides = [1, 1]} : vector<8x384xf32> to vector<8x128xf32>
    %432 = arith.addf %430, %431 : vector<8x128xf32>
    %433 = arith.negf %432 : vector<8x128xf32>
    %434 = math.exp %433 : vector<8x128xf32>
    %cst_151 = arith.constant 1.000000e+00 : f32
    %435 = vector.broadcast %cst_151 : f32 to vector<8x128xf32>
    %436 = arith.addf %435, %434 : vector<8x128xf32>
    %437 = arith.divf %435, %436 : vector<8x128xf32>
    %438 = vector.extract_strided_slice %426 {offsets = [0, 128], sizes = [8, 128], strides = [1, 1]} : vector<8x384xf32> to vector<8x128xf32>
    %439 = vector.extract_strided_slice %429 {offsets = [0, 128], sizes = [8, 128], strides = [1, 1]} : vector<8x384xf32> to vector<8x128xf32>
    %440 = arith.addf %438, %439 : vector<8x128xf32>
    %441 = arith.negf %440 : vector<8x128xf32>
    %442 = math.exp %441 : vector<8x128xf32>
    %cst_152 = arith.constant 1.000000e+00 : f32
    %443 = vector.broadcast %cst_152 : f32 to vector<8x128xf32>
    %444 = arith.addf %443, %442 : vector<8x128xf32>
    %445 = arith.divf %443, %444 : vector<8x128xf32>
    %446 = vector.extract_strided_slice %426 {offsets = [0, 256], sizes = [8, 128], strides = [1, 1]} : vector<8x384xf32> to vector<8x128xf32>
    %447 = vector.extract_strided_slice %429 {offsets = [0, 256], sizes = [8, 128], strides = [1, 1]} : vector<8x384xf32> to vector<8x128xf32>
    %448 = vector.broadcast %314 : vector<1x128xf32> to vector<8x128xf32>
    %449 = arith.addf %447, %448 : vector<8x128xf32>
    %450 = arith.mulf %437, %449 : vector<8x128xf32>
    %451 = arith.addf %446, %450 : vector<8x128xf32>
    %452 = math.tanh %451 : vector<8x128xf32>
    %453 = arith.subf %419, %452 : vector<8x128xf32>
    %454 = arith.mulf %445, %453 : vector<8x128xf32>
    %455 = arith.addf %452, %454 : vector<8x128xf32>
    %456 = arith.index_cast %c3_i32_144 : i32 to index
    %c0_153 = arith.constant 0 : index
    %c0_154 = arith.constant 0 : index
    %457 = vector.load %arg8[%456, %c0_153, %c0_154] : memref<8x8x128xf32, #tpu.memory_space<vmem>>, vector<1x8x128xf32>
    %458 = vector.shape_cast %457 : vector<1x8x128xf32> to vector<8x128xf32>
    %459 = vector.shape_cast %455 : vector<8x128xf32> to vector<1x8x128xf32>
    tpu.vector_store %arg8[%456, %c0_153, %c0_154], %459 {strides = array<i32>} : memref<8x8x128xf32, #tpu.memory_space<vmem>>, vector<1x8x128xf32>,
    %c4_i32_155 = arith.constant 4 : i32
    %460 = arith.index_cast %c4_i32_155 : i32 to index
    %c0_156 = arith.constant 0 : index
    %c0_157 = arith.constant 0 : index
    %461 = vector.load %arg9[%460, %c0_156, %c0_157] : memref<8x8x384xf32, #tpu.memory_space<vmem>>, vector<1x8x384xf32>
    %462 = vector.shape_cast %461 : vector<1x8x384xf32> to vector<8x384xf32>
    %c1_158 = arith.constant 1 : index
    %c0_159 = arith.constant 0 : index
    %c0_160 = arith.constant 0 : index
    %463 = vector.load %arg2[%c1_158, %c0_159, %c0_160] : memref<2x128x384xf32, #tpu.memory_space<vmem>>, vector<1x128x384xf32>
    %464 = vector.shape_cast %463 : vector<1x128x384xf32> to vector<128x384xf32>
    %cst_161 = arith.constant dense<0.000000e+00> : vector<8x384xf32>
    %465 = tpu.matmul %455, %464, %cst_161 {dimension_numbers = #tpu.dot_dimension_numbers<[1], [0], [0], [1], [0, 0, 1, 1], [], []>} : vector<8x128xf32>, vector<128x384xf32>, vector<8x384xf32> -> vector<8x384xf32>
    %466 = vector.extract_strided_slice %462 {offsets = [0, 0], sizes = [8, 128], strides = [1, 1]} : vector<8x384xf32> to vector<8x128xf32>
    %467 = vector.extract_strided_slice %465 {offsets = [0, 0], sizes = [8, 128], strides = [1, 1]} : vector<8x384xf32> to vector<8x128xf32>
    %468 = arith.addf %466, %467 : vector<8x128xf32>
    %469 = arith.negf %468 : vector<8x128xf32>
    %470 = math.exp %469 : vector<8x128xf32>
    %cst_162 = arith.constant 1.000000e+00 : f32
    %471 = vector.broadcast %cst_162 : f32 to vector<8x128xf32>
    %472 = arith.addf %471, %470 : vector<8x128xf32>
    %473 = arith.divf %471, %472 : vector<8x128xf32>
    %474 = vector.extract_strided_slice %462 {offsets = [0, 128], sizes = [8, 128], strides = [1, 1]} : vector<8x384xf32> to vector<8x128xf32>
    %475 = vector.extract_strided_slice %465 {offsets = [0, 128], sizes = [8, 128], strides = [1, 1]} : vector<8x384xf32> to vector<8x128xf32>
    %476 = arith.addf %474, %475 : vector<8x128xf32>
    %477 = arith.negf %476 : vector<8x128xf32>
    %478 = math.exp %477 : vector<8x128xf32>
    %cst_163 = arith.constant 1.000000e+00 : f32
    %479 = vector.broadcast %cst_163 : f32 to vector<8x128xf32>
    %480 = arith.addf %479, %478 : vector<8x128xf32>
    %481 = arith.divf %479, %480 : vector<8x128xf32>
    %482 = vector.extract_strided_slice %462 {offsets = [0, 256], sizes = [8, 128], strides = [1, 1]} : vector<8x384xf32> to vector<8x128xf32>
    %483 = vector.extract_strided_slice %465 {offsets = [0, 256], sizes = [8, 128], strides = [1, 1]} : vector<8x384xf32> to vector<8x128xf32>
    %484 = vector.broadcast %314 : vector<1x128xf32> to vector<8x128xf32>
    %485 = arith.addf %483, %484 : vector<8x128xf32>
    %486 = arith.mulf %473, %485 : vector<8x128xf32>
    %487 = arith.addf %482, %486 : vector<8x128xf32>
    %488 = math.tanh %487 : vector<8x128xf32>
    %489 = arith.subf %455, %488 : vector<8x128xf32>
    %490 = arith.mulf %481, %489 : vector<8x128xf32>
    %491 = arith.addf %488, %490 : vector<8x128xf32>
    %492 = arith.index_cast %c4_i32_155 : i32 to index
    %c0_164 = arith.constant 0 : index
    %c0_165 = arith.constant 0 : index
    %493 = vector.load %arg8[%492, %c0_164, %c0_165] : memref<8x8x128xf32, #tpu.memory_space<vmem>>, vector<1x8x128xf32>
    %494 = vector.shape_cast %493 : vector<1x8x128xf32> to vector<8x128xf32>
    %495 = vector.shape_cast %491 : vector<8x128xf32> to vector<1x8x128xf32>
    tpu.vector_store %arg8[%492, %c0_164, %c0_165], %495 {strides = array<i32>} : memref<8x8x128xf32, #tpu.memory_space<vmem>>, vector<1x8x128xf32>,
    %c5_i32_166 = arith.constant 5 : i32
    %496 = arith.index_cast %c5_i32_166 : i32 to index
    %c0_167 = arith.constant 0 : index
    %c0_168 = arith.constant 0 : index
    %497 = vector.load %arg9[%496, %c0_167, %c0_168] : memref<8x8x384xf32, #tpu.memory_space<vmem>>, vector<1x8x384xf32>
    %498 = vector.shape_cast %497 : vector<1x8x384xf32> to vector<8x384xf32>
    %c1_169 = arith.constant 1 : index
    %c0_170 = arith.constant 0 : index
    %c0_171 = arith.constant 0 : index
    %499 = vector.load %arg2[%c1_169, %c0_170, %c0_171] : memref<2x128x384xf32, #tpu.memory_space<vmem>>, vector<1x128x384xf32>
    %500 = vector.shape_cast %499 : vector<1x128x384xf32> to vector<128x384xf32>
    %cst_172 = arith.constant dense<0.000000e+00> : vector<8x384xf32>
    %501 = tpu.matmul %491, %500, %cst_172 {dimension_numbers = #tpu.dot_dimension_numbers<[1], [0], [0], [1], [0, 0, 1, 1], [], []>} : vector<8x128xf32>, vector<128x384xf32>, vector<8x384xf32> -> vector<8x384xf32>
    %502 = vector.extract_strided_slice %498 {offsets = [0, 0], sizes = [8, 128], strides = [1, 1]} : vector<8x384xf32> to vector<8x128xf32>
    %503 = vector.extract_strided_slice %501 {offsets = [0, 0], sizes = [8, 128], strides = [1, 1]} : vector<8x384xf32> to vector<8x128xf32>
    %504 = arith.addf %502, %503 : vector<8x128xf32>
    %505 = arith.negf %504 : vector<8x128xf32>
    %506 = math.exp %505 : vector<8x128xf32>
    %cst_173 = arith.constant 1.000000e+00 : f32
    %507 = vector.broadcast %cst_173 : f32 to vector<8x128xf32>
    %508 = arith.addf %507, %506 : vector<8x128xf32>
    %509 = arith.divf %507, %508 : vector<8x128xf32>
    %510 = vector.extract_strided_slice %498 {offsets = [0, 128], sizes = [8, 128], strides = [1, 1]} : vector<8x384xf32> to vector<8x128xf32>
    %511 = vector.extract_strided_slice %501 {offsets = [0, 128], sizes = [8, 128], strides = [1, 1]} : vector<8x384xf32> to vector<8x128xf32>
    %512 = arith.addf %510, %511 : vector<8x128xf32>
    %513 = arith.negf %512 : vector<8x128xf32>
    %514 = math.exp %513 : vector<8x128xf32>
    %cst_174 = arith.constant 1.000000e+00 : f32
    %515 = vector.broadcast %cst_174 : f32 to vector<8x128xf32>
    %516 = arith.addf %515, %514 : vector<8x128xf32>
    %517 = arith.divf %515, %516 : vector<8x128xf32>
    %518 = vector.extract_strided_slice %498 {offsets = [0, 256], sizes = [8, 128], strides = [1, 1]} : vector<8x384xf32> to vector<8x128xf32>
    %519 = vector.extract_strided_slice %501 {offsets = [0, 256], sizes = [8, 128], strides = [1, 1]} : vector<8x384xf32> to vector<8x128xf32>
    %520 = vector.broadcast %314 : vector<1x128xf32> to vector<8x128xf32>
    %521 = arith.addf %519, %520 : vector<8x128xf32>
    %522 = arith.mulf %509, %521 : vector<8x128xf32>
    %523 = arith.addf %518, %522 : vector<8x128xf32>
    %524 = math.tanh %523 : vector<8x128xf32>
    %525 = arith.subf %491, %524 : vector<8x128xf32>
    %526 = arith.mulf %517, %525 : vector<8x128xf32>
    %527 = arith.addf %524, %526 : vector<8x128xf32>
    %528 = arith.index_cast %c5_i32_166 : i32 to index
    %c0_175 = arith.constant 0 : index
    %c0_176 = arith.constant 0 : index
    %529 = vector.load %arg8[%528, %c0_175, %c0_176] : memref<8x8x128xf32, #tpu.memory_space<vmem>>, vector<1x8x128xf32>
    %530 = vector.shape_cast %529 : vector<1x8x128xf32> to vector<8x128xf32>
    %531 = vector.shape_cast %527 : vector<8x128xf32> to vector<1x8x128xf32>
    tpu.vector_store %arg8[%528, %c0_175, %c0_176], %531 {strides = array<i32>} : memref<8x8x128xf32, #tpu.memory_space<vmem>>, vector<1x8x128xf32>,
    %c6_i32_177 = arith.constant 6 : i32
    %532 = arith.index_cast %c6_i32_177 : i32 to index
    %c0_178 = arith.constant 0 : index
    %c0_179 = arith.constant 0 : index
    %533 = vector.load %arg9[%532, %c0_178, %c0_179] : memref<8x8x384xf32, #tpu.memory_space<vmem>>, vector<1x8x384xf32>
    %534 = vector.shape_cast %533 : vector<1x8x384xf32> to vector<8x384xf32>
    %c1_180 = arith.constant 1 : index
    %c0_181 = arith.constant 0 : index
    %c0_182 = arith.constant 0 : index
    %535 = vector.load %arg2[%c1_180, %c0_181, %c0_182] : memref<2x128x384xf32, #tpu.memory_space<vmem>>, vector<1x128x384xf32>
    %536 = vector.shape_cast %535 : vector<1x128x384xf32> to vector<128x384xf32>
    %cst_183 = arith.constant dense<0.000000e+00> : vector<8x384xf32>
    %537 = tpu.matmul %527, %536, %cst_183 {dimension_numbers = #tpu.dot_dimension_numbers<[1], [0], [0], [1], [0, 0, 1, 1], [], []>} : vector<8x128xf32>, vector<128x384xf32>, vector<8x384xf32> -> vector<8x384xf32>
    %538 = vector.extract_strided_slice %534 {offsets = [0, 0], sizes = [8, 128], strides = [1, 1]} : vector<8x384xf32> to vector<8x128xf32>
    %539 = vector.extract_strided_slice %537 {offsets = [0, 0], sizes = [8, 128], strides = [1, 1]} : vector<8x384xf32> to vector<8x128xf32>
    %540 = arith.addf %538, %539 : vector<8x128xf32>
    %541 = arith.negf %540 : vector<8x128xf32>
    %542 = math.exp %541 : vector<8x128xf32>
    %cst_184 = arith.constant 1.000000e+00 : f32
    %543 = vector.broadcast %cst_184 : f32 to vector<8x128xf32>
    %544 = arith.addf %543, %542 : vector<8x128xf32>
    %545 = arith.divf %543, %544 : vector<8x128xf32>
    %546 = vector.extract_strided_slice %534 {offsets = [0, 128], sizes = [8, 128], strides = [1, 1]} : vector<8x384xf32> to vector<8x128xf32>
    %547 = vector.extract_strided_slice %537 {offsets = [0, 128], sizes = [8, 128], strides = [1, 1]} : vector<8x384xf32> to vector<8x128xf32>
    %548 = arith.addf %546, %547 : vector<8x128xf32>
    %549 = arith.negf %548 : vector<8x128xf32>
    %550 = math.exp %549 : vector<8x128xf32>
    %cst_185 = arith.constant 1.000000e+00 : f32
    %551 = vector.broadcast %cst_185 : f32 to vector<8x128xf32>
    %552 = arith.addf %551, %550 : vector<8x128xf32>
    %553 = arith.divf %551, %552 : vector<8x128xf32>
    %554 = vector.extract_strided_slice %534 {offsets = [0, 256], sizes = [8, 128], strides = [1, 1]} : vector<8x384xf32> to vector<8x128xf32>
    %555 = vector.extract_strided_slice %537 {offsets = [0, 256], sizes = [8, 128], strides = [1, 1]} : vector<8x384xf32> to vector<8x128xf32>
    %556 = vector.broadcast %314 : vector<1x128xf32> to vector<8x128xf32>
    %557 = arith.addf %555, %556 : vector<8x128xf32>
    %558 = arith.mulf %545, %557 : vector<8x128xf32>
    %559 = arith.addf %554, %558 : vector<8x128xf32>
    %560 = math.tanh %559 : vector<8x128xf32>
    %561 = arith.subf %527, %560 : vector<8x128xf32>
    %562 = arith.mulf %553, %561 : vector<8x128xf32>
    %563 = arith.addf %560, %562 : vector<8x128xf32>
    %564 = arith.index_cast %c6_i32_177 : i32 to index
    %c0_186 = arith.constant 0 : index
    %c0_187 = arith.constant 0 : index
    %565 = vector.load %arg8[%564, %c0_186, %c0_187] : memref<8x8x128xf32, #tpu.memory_space<vmem>>, vector<1x8x128xf32>
    %566 = vector.shape_cast %565 : vector<1x8x128xf32> to vector<8x128xf32>
    %567 = vector.shape_cast %563 : vector<8x128xf32> to vector<1x8x128xf32>
    tpu.vector_store %arg8[%564, %c0_186, %c0_187], %567 {strides = array<i32>} : memref<8x8x128xf32, #tpu.memory_space<vmem>>, vector<1x8x128xf32>,
    %c7_i32_188 = arith.constant 7 : i32
    %568 = arith.index_cast %c7_i32_188 : i32 to index
    %c0_189 = arith.constant 0 : index
    %c0_190 = arith.constant 0 : index
    %569 = vector.load %arg9[%568, %c0_189, %c0_190] : memref<8x8x384xf32, #tpu.memory_space<vmem>>, vector<1x8x384xf32>
    %570 = vector.shape_cast %569 : vector<1x8x384xf32> to vector<8x384xf32>
    %c1_191 = arith.constant 1 : index
    %c0_192 = arith.constant 0 : index
    %c0_193 = arith.constant 0 : index
    %571 = vector.load %arg2[%c1_191, %c0_192, %c0_193] : memref<2x128x384xf32, #tpu.memory_space<vmem>>, vector<1x128x384xf32>
    %572 = vector.shape_cast %571 : vector<1x128x384xf32> to vector<128x384xf32>
    %cst_194 = arith.constant dense<0.000000e+00> : vector<8x384xf32>
    %573 = tpu.matmul %563, %572, %cst_194 {dimension_numbers = #tpu.dot_dimension_numbers<[1], [0], [0], [1], [0, 0, 1, 1], [], []>} : vector<8x128xf32>, vector<128x384xf32>, vector<8x384xf32> -> vector<8x384xf32>
    %574 = vector.extract_strided_slice %570 {offsets = [0, 0], sizes = [8, 128], strides = [1, 1]} : vector<8x384xf32> to vector<8x128xf32>
    %575 = vector.extract_strided_slice %573 {offsets = [0, 0], sizes = [8, 128], strides = [1, 1]} : vector<8x384xf32> to vector<8x128xf32>
    %576 = arith.addf %574, %575 : vector<8x128xf32>
    %577 = arith.negf %576 : vector<8x128xf32>
    %578 = math.exp %577 : vector<8x128xf32>
    %cst_195 = arith.constant 1.000000e+00 : f32
    %579 = vector.broadcast %cst_195 : f32 to vector<8x128xf32>
    %580 = arith.addf %579, %578 : vector<8x128xf32>
    %581 = arith.divf %579, %580 : vector<8x128xf32>
    %582 = vector.extract_strided_slice %570 {offsets = [0, 128], sizes = [8, 128], strides = [1, 1]} : vector<8x384xf32> to vector<8x128xf32>
    %583 = vector.extract_strided_slice %573 {offsets = [0, 128], sizes = [8, 128], strides = [1, 1]} : vector<8x384xf32> to vector<8x128xf32>
    %584 = arith.addf %582, %583 : vector<8x128xf32>
    %585 = arith.negf %584 : vector<8x128xf32>
    %586 = math.exp %585 : vector<8x128xf32>
    %cst_196 = arith.constant 1.000000e+00 : f32
    %587 = vector.broadcast %cst_196 : f32 to vector<8x128xf32>
    %588 = arith.addf %587, %586 : vector<8x128xf32>
    %589 = arith.divf %587, %588 : vector<8x128xf32>
    %590 = vector.extract_strided_slice %570 {offsets = [0, 256], sizes = [8, 128], strides = [1, 1]} : vector<8x384xf32> to vector<8x128xf32>
    %591 = vector.extract_strided_slice %573 {offsets = [0, 256], sizes = [8, 128], strides = [1, 1]} : vector<8x384xf32> to vector<8x128xf32>
    %592 = vector.broadcast %314 : vector<1x128xf32> to vector<8x128xf32>
    %593 = arith.addf %591, %592 : vector<8x128xf32>
    %594 = arith.mulf %581, %593 : vector<8x128xf32>
    %595 = arith.addf %590, %594 : vector<8x128xf32>
    %596 = math.tanh %595 : vector<8x128xf32>
    %597 = arith.subf %563, %596 : vector<8x128xf32>
    %598 = arith.mulf %589, %597 : vector<8x128xf32>
    %599 = arith.addf %596, %598 : vector<8x128xf32>
    %600 = arith.index_cast %c7_i32_188 : i32 to index
    %c0_197 = arith.constant 0 : index
    %c0_198 = arith.constant 0 : index
    %601 = vector.load %arg8[%600, %c0_197, %c0_198] : memref<8x8x128xf32, #tpu.memory_space<vmem>>, vector<1x8x128xf32>
    %602 = vector.shape_cast %601 : vector<1x8x128xf32> to vector<8x128xf32>
    %603 = vector.shape_cast %599 : vector<8x128xf32> to vector<1x8x128xf32>
    tpu.vector_store %arg8[%600, %c0_197, %c0_198], %603 {strides = array<i32>} : memref<8x8x128xf32, #tpu.memory_space<vmem>>, vector<1x8x128xf32>,
    %c8_i32_199 = arith.constant 8 : i32
    %c0_200 = arith.constant 0 : index
    %c0_201 = arith.constant 0 : index
    %c0_202 = arith.constant 0 : index
    %604 = vector.load %arg8[%c0_200, %c0_201, %c0_202] : memref<8x8x128xf32, #tpu.memory_space<vmem>>, vector<8x8x128xf32>
    %605 = vector.shape_cast %604 : vector<8x8x128xf32> to vector<64x128xf32>
    %c0_203 = arith.constant 0 : index
    %c0_204 = arith.constant 0 : index
    %606 = vector.load %arg5[%c0_203, %c0_204] : memref<128x128xf32, #tpu.memory_space<vmem>>, vector<128x128xf32>
    %cst_205 = arith.constant dense<0.000000e+00> : vector<64x128xf32>
    %607 = tpu.matmul %605, %606, %cst_205 {dimension_numbers = #tpu.dot_dimension_numbers<[1], [0], [0], [1], [0, 0, 1, 1], [], []>} : vector<64x128xf32>, vector<128x128xf32>, vector<64x128xf32> -> vector<64x128xf32>
    %c0_206 = arith.constant 0 : index
    %c0_207 = arith.constant 0 : index
    %608 = vector.load %arg6[%c0_206, %c0_207] : memref<1x128xf32, #tpu.memory_space<vmem>>, vector<1x128xf32>
    %609 = vector.broadcast %608 : vector<1x128xf32> to vector<64x128xf32>
    %610 = arith.addf %607, %609 : vector<64x128xf32>
    %611 = math.tanh %610 : vector<64x128xf32>
    %612 = vector.shape_cast %611 : vector<64x128xf32> to vector<8x8x128xf32>
    %c0_208 = arith.constant 0 : index
    %c0_209 = arith.constant 0 : index
    %c0_210 = arith.constant 0 : index
    %613 = vector.load %arg7[%c0_208, %c0_209, %c0_210] : memref<8x8x128xf32, #tpu.memory_space<vmem>>, vector<8x8x128xf32>
    tpu.vector_store %arg7[%c0_208, %c0_209, %c0_210], %612 {strides = array<i32>} : memref<8x8x128xf32, #tpu.memory_space<vmem>>, vector<8x8x128xf32>,
    return
  }
}

</mosaic_0001>

<bundles_post_ra>
// kernel: tpu_custom_call.1
= control target key start
LH: loop header
LB: loop body
LE: loop exit
PB: predicated region body
PF: predicated region fallthrough
CT: control target
= control target key end

     0   :  { %12 = vsyncpa [#allocation5], 0  ;;  %s8006_s0 = inlined_call_operand.hbm [shape: f32[8,8,128], index: 0, kind: input, shape index: {}]   ;;  %s8007_s1 = inlined_call_operand.hbm [shape: f32[2,128,384], index: 1, kind: input, shape index: {}]   ;;  %s8008_s2 = inlined_call_operand.hbm [shape: f32[2,128,384], index: 2, kind: input, shape index: {}]   ;;  %s8009_s3 = inlined_call_operand.vmem [shape: f32[2,1,384], index: 3, kind: input, shape index: {}]   ;;  %s8010_s4 = inlined_call_operand.vmem [shape: f32[2,1,128], index: 4, kind: input, shape index: {}]   ;;  %s8011_s5 = inlined_call_operand.hbm [shape: f32[128,128], index: 5, kind: input, shape index: {}]   ;;  %s8012_s6 = inlined_call_operand.vmem [shape: f32[1,128], index: 6, kind: input, shape index: {}]   ;;  %s8013_s7 = inlined_call_operand.hbm [shape: f32[8,8,128], index: 7, kind: output, shape index: {}]  }
   0x1   :  { %13 = vsyncpa [#allocation8], 0 }
   0x2   :  { %14 = vsyncpa [#allocation11], 0 }
   0x3   :  { %15 = vsyncpa [#allocation6], 0  ;;  %s6840_s24 = smov [#allocation7]   ;;  %s6722_s28 = scalar_lea.hbm %s8007_s1, 12288 }
   0x4   :  { %s33_s25 = sshll.u32 %s6840_s24, 4  ;;  %p6723_p0 = scmp.ne.s32.totalorder %s8007_s1, %s6722_s28  ;;  %s34_s25 = int_to_ptr.vmem [resolvable:$true] %s33_s25 }
   0x5   :  { %p6726_p1 = scmp.lt.u32.totalorder %s6722_s28, %s8007_s1 }
   0x7   :  { %p6728_p2 = pnand %p6726_p1, %p6723_p0 }
   0x9   :  { %6731 = shalt.err (!%p6728_p2)
}
   0xa   :  { %s6732_s10 = scalar_lea.vmem %s34_s25, 12288  ;;  %p6737_p4 = scmp.lt.s32.totalorder %s34_s25, %s34_s25 }
   0xb   :  { %p6733_p3 = scmp.ne.s32.totalorder %s34_s25, %s6732_s10  ;;  %p6738_p5 = scmp.lt.s32.totalorder %s6732_s10, %s6732_s10 }
   0xd   :  { %p6739_p6 = por %p6738_p5, %p6737_p4 }
   0xf   :  { %p6740_p7 = pnand %p6739_p6, %p6733_p3 }
  0x11   :  { %6743 = shalt.err (!%p6740_p7)
}
  0x12   :  { %s6841_s11 = smov 384   ;;  %s6842_s12 = smov 24  }
  0x13   :  { %39 = dma.hbm_to_vmem [thread:$0]  %s8007_s1, 12288, %s34_s25, [#allocation8], %s6841_s11, %s6841_s11, %s6842_s12  }
  0x14   :  { %s6843_s15 = smov [#allocation4]   ;;  %s6744_s19 = scalar_lea.hbm %s8006_s0, 1024 }
  0x15   :  { %s21_s16 = sshll.u32 %s6843_s15, 4  ;;  %p6745_p8 = scmp.ne.s32.totalorder %s8006_s0, %s6744_s19  ;;  %s22_s16 = int_to_ptr.vmem [resolvable:$true] %s21_s16 }
  0x16   :  { %p6748_p9 = scmp.lt.u32.totalorder %s6744_s19, %s8006_s0 }
  0x18   :  { %p6750_p10 = pnand %p6748_p9, %p6745_p8 }
  0x1a   :  { %6753 = shalt.err (!%p6750_p10)
}
  0x1b   :  { %s6754_s24 = scalar_lea.vmem %s22_s16, 1024  ;;  %p6759_p12 = scmp.lt.s32.totalorder %s22_s16, %s22_s16 }
  0x1c   :  { %p6755_p11 = scmp.ne.s32.totalorder %s22_s16, %s6754_s24  ;;  %p6760_p13 = scmp.lt.s32.totalorder %s6754_s24, %s6754_s24 }
  0x1e   :  { %p6761_p0 = por %p6760_p13, %p6759_p12 }
  0x20   :  { %p6762_p1 = pnand %p6761_p0, %p6755_p11 }
  0x22   :  { %6765 = shalt.err (!%p6762_p1)
}
  0x23   :  { %s6844_s1 = smov 128   ;;  %s6845_s25 = smov 8  }
  0x24   :  { %27 = dma.hbm_to_vmem [thread:$0]  %s8006_s0, 1024, %s22_s16, [#allocation5], %s6844_s1, %s6844_s1, %s6845_s25  }
  0x25   :  { %s6846_s28 = smov [#allocation9]   ;;  %s6847_s30 = smov [#allocation10]  }
  0x26   :  { %s45_s29 = sshll.u32 %s6846_s28, 4  ;;  %s61_s8 = sshll.u32 %s6847_s30, 4  ;;  %s46_s29 = int_to_ptr.vmem [resolvable:$true] %s45_s29  ;;  %s6922_s8 = int_to_ptr.vmem [resolvable:$true] %s61_s8 }
  0x27   :  { %s6766_s13 = scalar_lea.hbm %s8008_s2, 12288 }
  0x28   :  { %p6767_p2 = scmp.ne.s32.totalorder %s8008_s2, %s6766_s13  ;;  %p6770_p3 = scmp.lt.u32.totalorder %s6766_s13, %s8008_s2 }
  0x2a   :  { %p6772_p4 = pnand %p6770_p3, %p6767_p2 }
  0x2c   :  { %6775 = shalt.err (!%p6772_p4)
}
  0x2d   :  { %s6776_s0 = scalar_lea.vmem %s46_s29, 12288  ;;  %p6781_p6 = scmp.lt.s32.totalorder %s46_s29, %s46_s29 }
  0x2e   :  { %p6777_p5 = scmp.ne.s32.totalorder %s46_s29, %s6776_s0  ;;  %p6782_p7 = scmp.lt.s32.totalorder %s6776_s0, %s6776_s0 }
  0x30   :  { %p6783_p8 = por %p6782_p7, %p6781_p6 }
  0x32   :  { %p6784_p9 = pnand %p6783_p8, %p6777_p5 }
  0x34   :  { %6787 = shalt.err (!%p6784_p9)
}
  0x35   :  { %51 = dma.hbm_to_vmem [thread:$0]  %s8008_s2, 12288, %s46_s29, [#allocation8], %s6841_s11, %s6841_s11, %s6842_s12  }
  0x36   :  { %s6788_s22 = scalar_lea.hbm %s8011_s5, 2048 }
  0x37   :  { %p6789_p10 = scmp.ne.s32.totalorder %s8011_s5, %s6788_s22  ;;  %p6792_p11 = scmp.lt.u32.totalorder %s6788_s22, %s8011_s5 }
  0x39   :  { %p6794_p12 = pnand %p6792_p11, %p6789_p10 }
  0x3b   :  { %6797 = shalt.err (!%p6794_p12)
}
  0x3c   :  { %s6798_s28 = scalar_lea.vmem %s6922_s8, 2048  ;;  %p6803_p0 = scmp.lt.s32.totalorder %s6922_s8, %s6922_s8 }
  0x3d   :  { %p6799_p13 = scmp.ne.s32.totalorder %s6922_s8, %s6798_s28  ;;  %p6804_p1 = scmp.lt.s32.totalorder %s6798_s28, %s6798_s28 }
  0x3f   :  { %p6805_p2 = por %p6804_p1, %p6803_p0 }
  0x41   :  { %p6806_p3 = pnand %p6805_p2, %p6799_p13 }
  0x43   :  { %6809 = shalt.err (!%p6806_p3)
}
  0x44   :  { %67 = dma.hbm_to_vmem [thread:$0]  %s8011_s5, 2048, %s6922_s8, [#allocation11], %s6844_s1, %s6844_s1, %s6845_s25  }
  0x45   :  { %6832 = dma.done.wait [#allocation5], 1024  }
  0x46   :  { %6833 = vsyncadd [#allocation5], 4294966272 }
  0x47   :  { %6834 = dma.done.wait [#allocation8], 24576  }
  0x48   :  { %6835 = vsyncadd [#allocation8], 4294942720 }
  0x49   :  { %6836 = dma.done.wait [#allocation11], 2048  }
  0x4a   :  { %6837 = vsyncadd [#allocation11], 4294965248  ;;  %v6848_v0 = vmov 0.0   ;;  %v91_v1 = vld [vmem:[#allocation7 + $0x8] sm:$0xff]  ;;  %v94_v2 = vld [vmem:[#allocation7 + $0x20] sm:$0xff]  ;;  %vm6850_vm0 = vmmov 0  }
  0x4b   :  { %219 = vmatprep.mubr.f32.mxu1 %v6848_v0  ;;  %513 = vmatprep.mubr.f32.mxu0 %v6848_v0  ;;  %v90_v3 = vld [vmem:[#allocation7] sm:$0xff]  ;;  %v5412_v4 = vpack.c.bf16 %v94_v2, %v91_v1  ;;  %v93_v5 = vld [vmem:[#allocation7 + $0x18] sm:$0xff]  ;;  %v402_v6 = vld [vmem:[#allocation9 + $0x8] sm:$0xff] }
  0x4c   :  { %v405_v7 = vld [vmem:[#allocation9 + $0x20] sm:$0xff]  ;;  %v5414_v8 = vpack.c.bf16 %v93_v5, %v90_v3  ;;  %v404_v11 = vld [vmem:[#allocation9 + $0x18] sm:$0xff]  ;;  %v100_v14 = vld [vmem:[#allocation7 + $0x50] sm:$0xff] }
  0x4d   :  { %v6961_v9 = vpack.c.bf16 %v405_v7, %v402_v6  ;;  %v401_v10 = vld [vmem:[#allocation9] sm:$0xff]  ;;  %v97_v12 = vld [vmem:[#allocation7 + $0x38] sm:$0xff]  ;;  %5413 = vmatprep.subr.bf16.mxu1 %v5412_v4  ;;  %v96_v15 = vld [vmem:[#allocation7 + $0x30] sm:$0xff] }
  0x4e   :  { %v6963_v13 = vpack.c.bf16 %v404_v11, %v401_v10  ;;  %v99_v16 = vld [vmem:[#allocation7 + $0x48] sm:$0xff]  ;;  %5415 = vmatpush1.bf16.msra.mxu1 %v5414_v8  ;;  %v5416_v17 = vpack.c.bf16 %v100_v14, %v97_v12  ;;  %v408_v19 = vld [vmem:[#allocation9 + $0x38] sm:$0xff]  ;;  %v411_v20 = vld [vmem:[#allocation9 + $0x50] sm:$0xff] }
  0x4f   :  { %5477 = vmatprep.subr.bf16.mxu0 %v6961_v9  ;;  %v5418_v18 = vpack.c.bf16 %v99_v16, %v96_v15  ;;  %v407_v21 = vld [vmem:[#allocation9 + $0x30] sm:$0xff]  ;;  %v6967_v22 = vpack.c.bf16 %v411_v20, %v408_v19  ;;  %v410_v23 = vld [vmem:[#allocation9 + $0x48] sm:$0xff]  ;;  %v106_v25 = vld [vmem:[#allocation7 + $0x80] sm:$0xff] }
  0x50   :  { %5479 = vmatpush1.bf16.msra.mxu0 %v6963_v13  ;;  %v103_v24 = vld [vmem:[#allocation7 + $0x68] sm:$0xff]  ;;  %5417 = vmatprep.subr.bf16.mxu1 %v5416_v17  ;;  %v6969_v26 = vpack.c.bf16 %v410_v23, %v407_v21  ;;  %v102_v28 = vld [vmem:[#allocation7 + $0x60] sm:$0xff]  ;;  %v105_v29 = vld [vmem:[#allocation7 + $0x78] sm:$0xff] }
  0x51   :  { %v5420_v27 = vpack.c.bf16 %v106_v25, %v103_v24  ;;  %v414_v30 = vld [vmem:[#allocation9 + $0x68] sm:$0xff]  ;;  %5481 = vmatprep.subr.bf16.mxu0 %v6967_v22  ;;  %v417_v31 = vld [vmem:[#allocation9 + $0x80] sm:$0xff]  ;;  %v416_v33 = vld [vmem:[#allocation9 + $0x78] sm:$0xff]  ;;  %v5422_v34 = vpack.c.bf16 %v105_v29, %v102_v28 }
  0x52   :  { %v413_v32 = vld [vmem:[#allocation9 + $0x60] sm:$0xff]  ;;  %5419 = vmatpush1.bf16.msra.mxu1 %v5418_v18  ;;  %v6972_v35 = vpack.c.bf16 %v417_v31, %v414_v30  ;;  %v109_v36 = vld [vmem:[#allocation7 + $0x98] sm:$0xff]  ;;  %v112_v37 = vld [vmem:[#allocation7 + $0xb0] sm:$0xff] }
  0x53   :  { %v108_v38 = vld [vmem:[#allocation7 + $0x90] sm:$0xff]  ;;  %5421 = vmatprep.subr.bf16.mxu1 %v5420_v27  ;;  %v6975_v39 = vpack.c.bf16 %v416_v33, %v413_v32  ;;  %v5424_v40 = vpack.c.bf16 %v112_v37, %v109_v36  ;;  %v111_v41 = vld [vmem:[#allocation7 + $0xa8] sm:$0xff]  ;;  %v420_v42 = vld [vmem:[#allocation9 + $0x98] sm:$0xff] }
  0x54   :  { %5483 = vmatpush1.bf16.msra.mxu0 %v6969_v26  ;;  %v423_v43 = vld [vmem:[#allocation9 + $0xb0] sm:$0xff]  ;;  %v422_v46 = vld [vmem:[#allocation9 + $0xa8] sm:$0xff]  ;;  %v118_v48 = vld [vmem:[#allocation7 + $0xe0] sm:$0xff]  ;;  %v5426_v49 = vpack.c.bf16 %v111_v41, %v108_v38 }
  0x55   :  { %5485 = vmatprep.subr.bf16.mxu0 %v6972_v35  ;;  %v6978_v44 = vpack.c.bf16 %v423_v43, %v420_v42  ;;  %v419_v45 = vld [vmem:[#allocation9 + $0x90] sm:$0xff]  ;;  %v115_v47 = vld [vmem:[#allocation7 + $0xc8] sm:$0xff]  ;;  %v429_v51 = vld [vmem:[#allocation9 + $0xe0] sm:$0xff] }
  0x56   :  { %5423 = vmatpush1.bf16.msra.mxu1 %v5422_v34  ;;  %v426_v50 = vld [vmem:[#allocation9 + $0xc8] sm:$0xff]  ;;  %v6981_v52 = vpack.c.bf16 %v422_v46, %v419_v45  ;;  %v5428_v53 = vpack.c.bf16 %v118_v48, %v115_v47  ;;  %v114_v54 = vld [vmem:[#allocation7 + $0xc0] sm:$0xff]  ;;  %v117_v55 = vld [vmem:[#allocation7 + $0xd8] sm:$0xff] }
  0x57   :  { %5425 = vmatprep.subr.bf16.mxu1 %v5424_v40  ;;  %v425_v56 = vld [vmem:[#allocation9 + $0xc0] sm:$0xff]  ;;  %v6984_v57 = vpack.c.bf16 %v429_v51, %v426_v50  ;;  %v428_v58 = vld [vmem:[#allocation9 + $0xd8] sm:$0xff]  ;;  %v124_v60 = vld [vmem:[#allocation7 + $0x110] sm:$0xff]  ;;  %v5430_v63 = vpack.c.bf16 %v117_v55, %v114_v54 }
  0x58   :  { %5487 = vmatpush1.bf16.msra.mxu0 %v6975_v39  ;;  %v121_v59 = vld [vmem:[#allocation7 + $0xf8] sm:$0xff]  ;;  %v435_v62 = vld [vmem:[#allocation9 + $0x110] sm:$0xff]  ;;  %v6987_v1 = vpack.c.bf16 %v428_v58, %v425_v56  ;;  %v123_v4 = vld [vmem:[#allocation7 + $0x108] sm:$0xff] }
  0x59   :  { %5489 = vmatprep.subr.bf16.mxu0 %v6978_v44  ;;  %v432_v61 = vld [vmem:[#allocation9 + $0xf8] sm:$0xff]  ;;  %v5432_v2 = vpack.c.bf16 %v124_v60, %v121_v59  ;;  %v120_v3 = vld [vmem:[#allocation7 + $0xf0] sm:$0xff]  ;;  %v434_v7 = vld [vmem:[#allocation9 + $0x108] sm:$0xff] }
  0x5a   :  { %5427 = vmatpush1.bf16.msra.mxu1 %v5426_v49  ;;  %v431_v5 = vld [vmem:[#allocation9 + $0xf0] sm:$0xff]  ;;  %v6990_v6 = vpack.c.bf16 %v435_v62, %v432_v61  ;;  %v127_v8 = vld [vmem:[#allocation7 + $0x128] sm:$0xff]  ;;  %v130_v10 = vld [vmem:[#allocation7 + $0x140] sm:$0xff]  ;;  %v5434_v14 = vpack.c.bf16 %v123_v4, %v120_v3 }
  0x5b   :  { %5429 = vmatprep.subr.bf16.mxu1 %v5428_v53  ;;  %v438_v11 = vld [vmem:[#allocation9 + $0x128] sm:$0xff]  ;;  %v441_v12 = vld [vmem:[#allocation9 + $0x140] sm:$0xff]  ;;  %v6993_v15 = vpack.c.bf16 %v434_v7, %v431_v5  ;;  %v5436_v16 = vpack.c.bf16 %v130_v10, %v127_v8  ;;  %v129_v18 = vld [vmem:[#allocation7 + $0x138] sm:$0xff] }
  0x5c   :  { %5491 = vmatpush1.bf16.msra.mxu0 %v6981_v52  ;;  %v126_v17 = vld [vmem:[#allocation7 + $0x120] sm:$0xff]  ;;  %v6996_v20 = vpack.c.bf16 %v441_v12, %v438_v11  ;;  %v440_v21 = vld [vmem:[#allocation9 + $0x138] sm:$0xff]  ;;  %v136_v24 = vld [vmem:[#allocation7 + $0x170] sm:$0xff] }
  0x5d   :  { %5493 = vmatprep.subr.bf16.mxu0 %v6984_v57  ;;  %v437_v19 = vld [vmem:[#allocation9 + $0x120] sm:$0xff]  ;;  %v133_v23 = vld [vmem:[#allocation7 + $0x158] sm:$0xff]  ;;  %v447_v27 = vld [vmem:[#allocation9 + $0x170] sm:$0xff]  ;;  %v5438_v28 = vpack.c.bf16 %v129_v18, %v126_v17 }
  0x5e   :  { %5431 = vmatpush1.bf16.msra.mxu1 %v5430_v63  ;;  %v444_v25 = vld [vmem:[#allocation9 + $0x158] sm:$0xff]  ;;  %v6999_v29 = vpack.c.bf16 %v440_v21, %v437_v19  ;;  %v5440_v30 = vpack.c.bf16 %v136_v24, %v133_v23  ;;  %v132_v31 = vld [vmem:[#allocation7 + $0x150] sm:$0xff]  ;;  %v135_v32 = vld [vmem:[#allocation7 + $0x168] sm:$0xff]  ;;  %v6849_v21 = vmov 0.0|0.0  }
  0x5f   :  { %5433 = vmatprep.subr.bf16.mxu1 %v5432_v2  ;;  %v443_v33 = vld [vmem:[#allocation9 + $0x150] sm:$0xff]  ;;  %v7002_v34 = vpack.c.bf16 %v447_v27, %v444_v25  ;;  %v446_v36 = vld [vmem:[#allocation9 + $0x168] sm:$0xff]  ;;  %v5442_v40 = vpack.c.bf16 %v135_v32, %v132_v31  ;;  %v98_v43 = vld [vmem:[#allocation7 + $0x40] sm:$0xff] }
  0x60   :  { %5495 = vmatpush1.bf16.msra.mxu0 %v6987_v1  ;;  %v92_v37 = vld [vmem:[#allocation7 + $0x10] sm:$0xff]  ;;  %v95_v38 = vld [vmem:[#allocation7 + $0x28] sm:$0xff]  ;;  %v7005_v41 = vpack.c.bf16 %v446_v36, %v443_v33  ;;  %v101_v45 = vld [vmem:[#allocation7 + $0x58] sm:$0xff] }
  0x61   :  { %5497 = vmatprep.subr.bf16.mxu0 %v6990_v6  ;;  %v5444_v42 = vpack.c.bf16 %v95_v38, %v92_v37  ;;  %v7008_v46 = vld [vmem:[#allocation4] sm:$0xff]  ;;  %v5448_v47 = vpack.c.bf16 %v101_v45, %v98_v43  ;;  %v104_v48 = vld [vmem:[#allocation7 + $0x70] sm:$0xff]  ;;  %v107_v49 = vld [vmem:[#allocation7 + $0x88] sm:$0xff] }
  0x62   :  { %5435 = vmatpush1.bf16.msra.mxu1 %v5434_v14  ;;  %v7014_v50 = vld [vmem:[#allocation4 + $0x8] sm:$0xff]  ;;  %v5452_v51 = vpack.c.bf16 %v107_v49, %v104_v48  ;;  %v110_v53 = vld [vmem:[#allocation7 + $0xa0] sm:$0xff]  ;;  %v113_v54 = vld [vmem:[#allocation7 + $0xb8] sm:$0xff] }
  0x63   :  { %5437 = vmatprep.subr.bf16.mxu1 %v5436_v16  ;;  %v7022_v55 = vld [vmem:[#allocation4 + $0x10] sm:$0xff]  ;;  %v5456_v56 = vpack.c.bf16 %v113_v54, %v110_v53  ;;  %v119_v59 = vld [vmem:[#allocation7 + $0xe8] sm:$0xff]  ;;  %v85_v60 = vld [vmem:[#allocation4 + $0x18] sm:$0xff] }
  0x64   :  { %5499 = vmatpush1.bf16.msra.mxu0 %v6993_v15  ;;  %v116_v58 = vld [vmem:[#allocation7 + $0xd0] sm:$0xff]  ;;  %v122_v62 = vld [vmem:[#allocation7 + $0x100] sm:$0xff]  ;;  %v125_v63 = vld [vmem:[#allocation7 + $0x118] sm:$0xff] }
  0x65   :  { %5501 = vmatprep.subr.bf16.mxu0 %v6996_v20  ;;  %v5460_v61 = vpack.c.bf16 %v119_v59, %v116_v58  ;;  %v86_v2 = vld [vmem:[#allocation4 + $0x20] sm:$0xff]  ;;  %v5464_v3 = vpack.c.bf16 %v125_v63, %v122_v62  ;;  %v128_v4 = vld [vmem:[#allocation7 + $0x130] sm:$0xff]  ;;  %v131_v5 = vld [vmem:[#allocation7 + $0x148] sm:$0xff] }
  0x66   :  { %5439 = vmatpush1.bf16.msra.mxu1 %v5438_v28  ;;  %v87_v7 = vld [vmem:[#allocation4 + $0x28] sm:$0xff]  ;;  %v5468_v8 = vpack.c.bf16 %v131_v5, %v128_v4  ;;  %v134_v10 = vld [vmem:[#allocation7 + $0x160] sm:$0xff]  ;;  %v137_v11 = vld [vmem:[#allocation7 + $0x178] sm:$0xff] }
  0x67   :  { %5441 = vmatprep.subr.bf16.mxu1 %v5440_v30  ;;  %v88_v12 = vld [vmem:[#allocation4 + $0x30] sm:$0xff]  ;;  %v5472_v14 = vpack.c.bf16 %v137_v11, %v134_v10  ;;  %v89_v16 = vld [vmem:[#allocation4 + $0x38] sm:$0xff]  ;;  %v406_v18 = vld [vmem:[#allocation9 + $0x28] sm:$0xff] }
  0x68   :  { %5503 = vmatpush1.bf16.msra.mxu0 %v6999_v29  ;;  %v403_v17 = vld [vmem:[#allocation9 + $0x10] sm:$0xff]  ;;  %v409_v23 = vld [vmem:[#allocation9 + $0x40] sm:$0xff]  ;;  %v412_v24 = vld [vmem:[#allocation9 + $0x58] sm:$0xff] }
  0x69   :  { %5505 = vmatprep.subr.bf16.mxu0 %v7002_v34  ;;  %v7043_v19 = vpack.c.bf16 %v406_v18, %v403_v17  ;;  %v7050_v25 = vpack.c.bf16 %v412_v24, %v409_v23  ;;  %v415_v27 = vld [vmem:[#allocation9 + $0x70] sm:$0xff]  ;;  %v418_v28 = vld [vmem:[#allocation9 + $0x88] sm:$0xff]  ;;  %v421_v31 = vld [vmem:[#allocation9 + $0xa0] sm:$0xff] }
  0x6a   :  { %5443 = vmatpush1.bf16.msra.mxu1 %v5442_v40  ;;  %v7055_v30 = vpack.c.bf16 %v418_v28, %v415_v27  ;;  %v427_v33 = vld [vmem:[#allocation9 + $0xd0] sm:$0xff]  ;;  %v430_v36 = vld [vmem:[#allocation9 + $0xe8] sm:$0xff]  ;;  %v433_v38 = vld [vmem:[#allocation9 + $0x100] sm:$0xff] }
  0x6b   :  { %5445 = vmatprep.subr.bf16.mxu1 %v5444_v42  ;;  %v7063_v37 = vpack.c.bf16 %v430_v36, %v427_v33  ;;  %v436_v40 = vld [vmem:[#allocation9 + $0x118] sm:$0xff]  ;;  %v439_v43 = vld [vmem:[#allocation9 + $0x130] sm:$0xff]  ;;  %v442_v45 = vld [vmem:[#allocation9 + $0x148] sm:$0xff] }
  0x6c   :  { %5507 = vmatpush1.bf16.msra.mxu0 %v7005_v41  ;;  %v448_v48 = vld [vmem:[#allocation9 + $0x178] sm:$0xff]  ;;  %v138_v54 = vld [vmem:[%s8009_s3] sm:$0x7] }
  0x6d   :  { %5533 = vmatprep.subr.bf16.mxu0 %v6961_v9  ;;  %220 = vmatmul.mubr.f32.vlgmr.msra.gmra.mrb[0].mxu1 %v7008_v46 }
  0x6e   :  { %5447 = vmatpush3.bf16.msra.mxu1 %v5444_v42  ;;  %225 = vmatprep.mubr.f32.mxu1 %v6848_v0  ;;  %v7069_v42 = vpack.c.bf16 %v436_v40, %v433_v38 }
  0x6f   :  { %514 = vmatmul.mubr.f32.vlgmr.msra.gmra.mrb[0].mxu0 %v6848_v0  ;;  %5449 = vmatprep.subr.bf16.mxu1 %v5448_v47 }
  0x70   :  { %5535 = vmatpush1.bf16.msra.mxu0 %v6963_v13  ;;  %734 = vmatprep.mubr.f32.mxu0 %v6848_v0 }
  0x71   :  { %226 = vmatmul.mubr.f32.gmra.mrb[2].mxu1 %v7014_v50  ;;  %5537 = vmatprep.subr.bf16.mxu0 %v6967_v22 }
  0x72   :  { %5451 = vmatpush3.bf16.msra.mxu1 %v5448_v47  ;;  %231 = vmatprep.mubr.f32.mxu1 %v6848_v0  ;;  %v445_v47 = vld [vmem:[#allocation9 + $0x160] sm:$0xff] }
  0x73   :  { %5453 = vmatprep.subr.bf16.mxu1 %v5452_v51  ;;  %v7077_v49 = vpack.c.bf16 %v448_v48, %v445_v47 }
  0x74   :  { %5539 = vmatpush1.bf16.msra.mxu0 %v6969_v26 }
  0x75   :  { %232 = vmatmul.mubr.f32.gmra.mrb[4].mxu1 %v7022_v55  ;;  %5541 = vmatprep.subr.bf16.mxu0 %v6972_v35 }
  0x76   :  { %5455 = vmatpush3.bf16.msra.mxu1 %v5452_v51  ;;  %237 = vmatprep.mubr.f32.mxu1 %v6848_v0 }
  0x77   :  { %5457 = vmatprep.subr.bf16.mxu1 %v5456_v56 }
  0x78   :  { %5543 = vmatpush1.bf16.msra.mxu0 %v6975_v39 }
  0x79   :  { %238 = vmatmul.mubr.f32.gmra.mrb[6].mxu1 %v85_v60  ;;  %5545 = vmatprep.subr.bf16.mxu0 %v6978_v44 }
  0x7a   :  { %5459 = vmatpush3.bf16.msra.mxu1 %v5456_v56  ;;  %243 = vmatprep.mubr.f32.mxu1 %v6848_v0 }
  0x7b   :  { %5461 = vmatprep.subr.bf16.mxu1 %v5460_v61 }
  0x7c   :  { %5547 = vmatpush1.bf16.msra.mxu0 %v6981_v52 }
  0x7d   :  { %244 = vmatmul.mubr.f32.gmra.mrb[8].mxu1 %v86_v2  ;;  %5549 = vmatprep.subr.bf16.mxu0 %v6984_v57 }
  0x7e   :  { %5463 = vmatpush3.bf16.msra.mxu1 %v5460_v61  ;;  %249 = vmatprep.mubr.f32.mxu1 %v6848_v0 }
  0x7f   :  { %5465 = vmatprep.subr.bf16.mxu1 %v5464_v3 }
  0x80   :  { %5551 = vmatpush1.bf16.msra.mxu0 %v6987_v1 }
  0x81   :  { %250 = vmatmul.mubr.f32.gmra.mrb[10].mxu1 %v87_v7  ;;  %5553 = vmatprep.subr.bf16.mxu0 %v6990_v6 }
  0x82   :  { %5467 = vmatpush3.bf16.msra.mxu1 %v5464_v3  ;;  %255 = vmatprep.mubr.f32.mxu1 %v6848_v0 }
  0x83   :  { %5469 = vmatprep.subr.bf16.mxu1 %v5468_v8 }
  0x84   :  { %5555 = vmatpush1.bf16.msra.mxu0 %v6993_v15 }
  0x85   :  { %256 = vmatmul.mubr.f32.gmra.mrb[12].mxu1 %v88_v12  ;;  %5557 = vmatprep.subr.bf16.mxu0 %v6996_v20 }
  0x86   :  { %5471 = vmatpush3.bf16.msra.mxu1 %v5468_v8  ;;  %261 = vmatprep.mubr.f32.mxu1 %v6848_v0 }
  0x87   :  { %5473 = vmatprep.subr.bf16.mxu1 %v5472_v14 }
  0x88   :  { %5559 = vmatpush1.bf16.msra.mxu0 %v6999_v29 }
  0x89   :  { %262 = vmatmul.mubr.f32.gmra.mrb[14].mxu1 %v89_v16  ;;  %5561 = vmatprep.subr.bf16.mxu0 %v7002_v34 }
  0x8a   :  { %5475 = vmatpush3.bf16.msra.mxu1 %v5472_v14  ;;  %4752 = vmatprep.mubr.f32.mxu1 %v7008_v46  ;;  %v7073_v46 = vpack.c.bf16 %v442_v45, %v439_v43 }
  0x8b   :  { %5508 = vmatprep.subr.bf16.mxu1 %v6849_v21 }
  0x8c   :  { %5563 = vmatpush1.bf16.msra.mxu0 %v7005_v41 }
  0x8d   :  { %4753 = vmatmul.mubr.f32.vlgmr.msra.gmra.mrb[16].mxu1 %v7014_v50  ;;  %5589 = vmatprep.subr.bf16.mxu0 %v6961_v9  ;;  %v424_v9 = vld [vmem:[#allocation9 + $0xb8] sm:$0xff]  ;;  %v140_v50 = vlaneseq }
  0x8e   :  { %5510 = vmatpush3.bf16.msra.mxu1 %v7043_v19  ;;  %4755 = vmatprep.mubr.f32.mxu1 %v7022_v55  ;;  %v7059_v32 = vpack.c.bf16 %v424_v9, %v421_v31 }
  0x8f   :  { %5511 = vmatprep.subr.bf16.mxu1 %v6849_v21  ;;  %v7101_v51 = vshrl.u32 %v140_v50, 7 }
  0x91   :  { %4756 = vmatmul.mubr.f32.gmra.mrb[18].mxu1 %v85_v60  ;;  %v8016_v53 = vsub.s32 0, %v7101_v51  ;;  %v8015_v55 = vsub.s32 1, %v7101_v51  ;;  %v8014_v48 = vsub.s32 2, %v7101_v51 }
  0x92   :  { %5513 = vmatpush3.bf16.msra.mxu1 %v7050_v25  ;;  %4758 = vmatprep.mubr.f32.mxu1 %v86_v2 }
  0x93   :  { %5514 = vmatprep.subr.bf16.mxu1 %v6849_v21  ;;  %v143_v56 = vrot.slane %v138_v54, %v8016_v53  ;;  %v147_v58 = vrot.slane %v138_v54, %v8015_v55 }
  0x95   :  { %4759 = vmatmul.mubr.f32.gmra.mrb[20].mxu1 %v87_v7 }
  0x96   :  { %5516 = vmatpush3.bf16.msra.mxu1 %v7055_v30  ;;  %4761 = vmatprep.mubr.f32.mxu1 %v88_v12 }
  0x97   :  { %5517 = vmatprep.subr.bf16.mxu1 %v6849_v21 }
  0x99   :  { %4762 = vmatmul.mubr.f32.gmra.mrb[22].mxu1 %v89_v16 }
  0x9a   :  { %5519 = vmatpush3.bf16.msra.mxu1 %v7059_v32  ;;  %4796 = vmatprep.mubr.msk.f32.mxu1 %vm6850_vm0, %v6848_v0 }
  0x9b   :  { %5520 = vmatprep.subr.bf16.mxu1 %v6849_v21 }
  0x9e   :  { %5522 = vmatpush3.bf16.msra.mxu1 %v7063_v37 }
  0x9f   :  { %5523 = vmatprep.subr.bf16.mxu1 %v6849_v21 }
  0xa2   :  { %5525 = vmatpush3.bf16.msra.mxu1 %v7069_v42 }
  0xa3   :  { %5526 = vmatprep.subr.bf16.mxu1 %v6849_v21 }
  0xa6   :  { %5528 = vmatpush3.bf16.msra.mxu1 %v7073_v46 }
  0xa7   :  { %5529 = vmatprep.subr.bf16.mxu1 %v6849_v21 }
  0xaa   :  { %5531 = vmatpush3.bf16.msra.mxu1 %v7077_v49 }
  0xab   :  { %5564 = vmatprep.subr.bf16.mxu1 %v6849_v21 }
  0xad   :  { %4797 = vmatmul.mubr.f32.vlgmr.msra.gmra.mrb[24].mxu1 %v6848_v0 }
  0xae   :  { %5566 = vmatpush3.bf16.msra.mxu1 %v7043_v19  ;;  %4831 = vmatprep.mubr.msk.f32.mxu1 %vm6850_vm0, %v6848_v0 }
  0xaf   :  { %5567 = vmatprep.subr.bf16.mxu1 %v6849_v21 }
  0xb2   :  { %5569 = vmatpush3.bf16.msra.mxu1 %v7050_v25 }
  0xb3   :  { %5570 = vmatprep.subr.bf16.mxu1 %v6849_v21 }
  0xb6   :  { %5572 = vmatpush3.bf16.msra.mxu1 %v7055_v30 }
  0xb7   :  { %5573 = vmatprep.subr.bf16.mxu1 %v6849_v21 }
  0xba   :  { %5575 = vmatpush3.bf16.msra.mxu1 %v7059_v32 }
  0xbb   :  { %5576 = vmatprep.subr.bf16.mxu1 %v6849_v21 }
  0xbe   :  { %5578 = vmatpush3.bf16.msra.mxu1 %v7063_v37 }
  0xbf   :  { %5579 = vmatprep.subr.bf16.mxu1 %v6849_v21 }
  0xc2   :  { %5581 = vmatpush3.bf16.msra.mxu1 %v7069_v42 }
  0xc3   :  { %5582 = vmatprep.subr.bf16.mxu1 %v6849_v21 }
  0xc6   :  { %5584 = vmatpush3.bf16.msra.mxu1 %v7073_v46 }
  0xc7   :  { %5585 = vmatprep.subr.bf16.mxu1 %v6849_v21 }
  0xca   :  { %5587 = vmatpush3.bf16.msra.mxu1 %v7077_v49 }
  0xcb   :  { %5620 = vmatprep.subr.bf16.mxu1 %v6849_v21 }
 0x140   :  { %v221_v59 = vpop.f32.mrb[0].mxu1 }
 0x141   :  { %v222_v60 = vadd.f32 %v221_v59, %v143_v56  ;;  %v223_v61 = vpop.f32.mrb[1].mxu1 }
 0x142   :  { %v515_v62 = vpop.f32.mrb[0].mxu0  ;;  %v224_v63 = vadd.f32 %v223_v61, %v147_v58 }
 0x143   :  { %v517_v2 = vpop.f32.mrb[1].mxu0  ;;  %v590_v3 = vadd.f32 %v515_v62, %v222_v60  ;;  %v151_v62 = vrot.slane %v138_v54, %v8014_v48 }
 0x144   :  { %v597_v4 = vadd.f32 %v517_v2, %v224_v63  ;;  %v227_v5 = vpop.f32.mrb[2].mxu1 }
 0x145   :  { %v7112_v7 = vadd.f32 %v227_v5, %v143_v56  ;;  %v229_v8 = vpop.f32.mrb[3].mxu1 }
 0x146   :  { %v7114_v10 = vadd.f32 %v229_v8, %v147_v58 }
 0x148   :  { %v233_v11 = vpop.f32.mrb[4].mxu1 }
 0x149   :  { %v7116_v12 = vadd.f32 %v233_v11, %v143_v56  ;;  %v235_v14 = vpop.f32.mrb[5].mxu1  ;;  %v4339_v11 = vmul.f32 -1.442695, %v590_v3 }
 0x14a   :  { %v7118_v16 = vadd.f32 %v235_v14, %v147_v58 }
 0x14b   :  { %6544 = vpow2.f32 %v4339_v11 }
 0x14c   :  { %v239_v17 = vpop.f32.mrb[6].mxu1 }
 0x14d   :  { %v7120_v18 = vadd.f32 %v239_v17, %v143_v56  ;;  %v241_v23 = vpop.f32.mrb[7].mxu1 }
 0x14e   :  { %v7122_v24 = vadd.f32 %v241_v23, %v147_v58 }
 0x150   :  { %v245_v27 = vpop.f32.mrb[8].mxu1 }
 0x151   :  { %v7124_v28 = vadd.f32 %v245_v27, %v143_v56  ;;  %v247_v31 = vpop.f32.mrb[9].mxu1 }
 0x152   :  { %v7126_v9 = vadd.f32 %v247_v31, %v147_v58 }
 0x154   :  { %v251_v33 = vpop.f32.mrb[10].mxu1 }
 0x155   :  { %v7128_v36 = vadd.f32 %v251_v33, %v143_v56  ;;  %v253_v38 = vpop.f32.mrb[11].mxu1  ;;  %v6545_v3 = vpop.eup %6544 }
 0x156   :  { %v7130_v40 = vadd.f32 %v253_v38, %v147_v58 }
 0x158   :  { %v257_v43 = vpop.f32.mrb[12].mxu1 }
 0x159   :  { %v7132_v45 = vadd.f32 %v257_v43, %v143_v56  ;;  %v259_v47 = vpop.f32.mrb[13].mxu1 }
 0x15a   :  { %v7135_v50 = vadd.f32 %v259_v47, %v147_v58 }
 0x15c   :  { %v263_v59 = vpop.f32.mrb[14].mxu1 }
 0x15d   :  { %v7137_v60 = vadd.f32 %v263_v59, %v143_v56  ;;  %v265_v61 = vpop.f32.mrb[15].mxu1  ;;  %v4340_v59 = vmul.f32 -1.442695, %v597_v4 }
 0x15e   :  { %v7141_v63 = vadd.f32 %v265_v61, %v147_v58  ;;  %v594_v61 = vadd.f32 1.0, %v6545_v3 }
 0x15f   :  { %6546 = vpow2.f32 %v4340_v59 }
 0x160   :  { %v4754_v2 = vpop.f32.mrb[16].mxu1  ;;  %6548 = vrcp.f32 %v594_v61 }
 0x161   :  { %v7143_v5 = vadd.f32 %v4754_v2, %v151_v62  ;;  %v334_v8 = vpop.f32.mrb[17].mxu1  ;;  %v7160_v2 = vld [vmem:[%s8010_s4] ss:$0 sm:$0xff] }
 0x164   :  { %v4757_v14 = vpop.f32.mrb[18].mxu1 }
 0x165   :  { %v7145_v17 = vadd.f32 %v4757_v14, %v151_v62  ;;  %v344_v23 = vpop.f32.mrb[19].mxu1 }
 0x166   :  { %v7147_v27 = vadd.f32 %v344_v23, %v151_v62 }
 0x168   :  { %v4760_v56 = vpop.f32.mrb[20].mxu1 }
 0x169   :  { %v7149_v31 = vadd.f32 %v4760_v56, %v151_v62  ;;  %v354_v33 = vpop.f32.mrb[21].mxu1  ;;  %v6547_v14 = vpop.eup %6546 }
 0x16a   :  { %v7151_v38 = vadd.f32 %v354_v33, %v151_v62  ;;  %v6549_v33 = vpop.eup %6548 }
 0x16c   :  { %v4763_v54 = vpop.f32.mrb[22].mxu1 }
 0x16d   :  { %v7153_v58 = vadd.f32 %v4763_v54, %v151_v62  ;;  %v364_v43 = vpop.f32.mrb[23].mxu1  ;;  %v335_v54 = vadd.f32 %v334_v8, %v151_v62 }
 0x16e   :  { %v7155_v47 = vadd.f32 %v364_v43, %v151_v62  ;;  %v601_v43 = vadd.f32 1.0, %v6547_v14  ;;  %v1060_v14 = vld [vmem:[#allocation9 + $0x30] sm:$0xff] }
 0x180   :  { %v586_v11 = vpop.f32.mrb[24].mxu1 }
 0x181   :  { %v610_v23 = vadd.f32 %v7160_v2, %v586_v11  ;;  %v4798_v56 = vpop.f32.mrb[25].mxu1 }
 0x182   :  { %v1067_v56 = vld [vmem:[#allocation9 + $0x68] sm:$0xff] }
 0x183   :  { %v611_v48 = vmul.f32 %v6549_v33, %v610_v23  ;;  %v1070_v33 = vld [vmem:[#allocation9 + $0x80] sm:$0xff] }
 0x185   :  { %v612_v55 = vadd.f32 %v611_v48, %v335_v54  ;;  %v7241_v54 = vpack.c.bf16 %v1070_v33, %v1067_v56 }
 0x187   :  { %6550 = vtanh.f32 %v612_v55 }
 0x188   :  { %6552 = vrcp.f32 %v601_v43  ;;  %v1066_v43 = vld [vmem:[#allocation9 + $0x60] sm:$0xff] }
 0x191   :  { %v6551_v4 = vpop.eup %6550 }
 0x192   :  { %v614_v3 = vsub.f32 0.0, %v6551_v4  ;;  %v6553_v59 = vpop.eup %6552 }
 0x194   :  { %v615_v61 = vmul.f32 %v6553_v59, %v614_v3  ;;  %v1073_v59 = vld [vmem:[#allocation9 + $0x98] sm:$0xff] }
 0x196   :  { %v7163_v53 = vadd.f32 %v6551_v4, %v615_v61  ;;  %v1069_v4 = vld [vmem:[#allocation9 + $0x78] sm:$0xff]  ;;  %v1076_v61 = vld [vmem:[#allocation9 + $0xb0] sm:$0xff] }
 0x197   :  { %v7243_v3 = vpack.c.bf16 %v1069_v4, %v1066_v43 }
 0x198   :  { %735 = vmatmul.mubr.f32.vlgmr.msra.gmra.mrb[2].mxu0 %v7163_v53  ;;  %4832 = vmatmul.mubr.f32.vlgmr.msra.gmra.mrb[26].mxu1 %v7163_v53 }
 0x199   :  { %5591 = vmatpush1.bf16.msra.mxu0 %v6963_v13  ;;  %5622 = vmatpush3.bf16.msra.mxu1 %v7043_v19 }
 0x19a   :  { %5593 = vmatprep.subr.bf16.mxu0 %v6967_v22  ;;  %5623 = vmatprep.subr.bf16.mxu1 %v6849_v21 }
 0x19b   :  { %950 = vmatprep.mubr.f32.mxu0 %v6848_v0  ;;  %4866 = vmatprep.mubr.msk.f32.mxu1 %vm6850_vm0, %v6848_v0 }
 0x19d   :  { %5595 = vmatpush1.bf16.msra.mxu0 %v6969_v26  ;;  %5625 = vmatpush3.bf16.msra.mxu1 %v7050_v25 }
 0x19e   :  { %5597 = vmatprep.subr.bf16.mxu0 %v6972_v35  ;;  %5626 = vmatprep.subr.bf16.mxu1 %v6849_v21 }
 0x1a1   :  { %5599 = vmatpush1.bf16.msra.mxu0 %v6975_v39  ;;  %5628 = vmatpush3.bf16.msra.mxu1 %v7055_v30 }
 0x1a2   :  { %5601 = vmatprep.subr.bf16.mxu0 %v6978_v44  ;;  %5629 = vmatprep.subr.bf16.mxu1 %v6849_v21 }
 0x1a5   :  { %5603 = vmatpush1.bf16.msra.mxu0 %v6981_v52  ;;  %5631 = vmatpush3.bf16.msra.mxu1 %v7059_v32 }
 0x1a6   :  { %5605 = vmatprep.subr.bf16.mxu0 %v6984_v57  ;;  %5632 = vmatprep.subr.bf16.mxu1 %v6849_v21 }
 0x1a9   :  { %5607 = vmatpush1.bf16.msra.mxu0 %v6987_v1  ;;  %5634 = vmatpush3.bf16.msra.mxu1 %v7063_v37 }
 0x1aa   :  { %5609 = vmatprep.subr.bf16.mxu0 %v6990_v6  ;;  %5635 = vmatprep.subr.bf16.mxu1 %v6849_v21 }
 0x1ad   :  { %5611 = vmatpush1.bf16.msra.mxu0 %v6993_v15  ;;  %5637 = vmatpush3.bf16.msra.mxu1 %v7069_v42 }
 0x1ae   :  { %5613 = vmatprep.subr.bf16.mxu0 %v6996_v20  ;;  %5638 = vmatprep.subr.bf16.mxu1 %v6849_v21 }
 0x1b1   :  { %5615 = vmatpush1.bf16.msra.mxu0 %v6999_v29  ;;  %5640 = vmatpush3.bf16.msra.mxu1 %v7073_v46 }
 0x1b2   :  { %5617 = vmatprep.subr.bf16.mxu0 %v7002_v34  ;;  %5641 = vmatprep.subr.bf16.mxu1 %v6849_v21 }
 0x1b5   :  { %5619 = vmatpush1.bf16.msra.mxu0 %v7005_v41  ;;  %5643 = vmatpush3.bf16.msra.mxu1 %v7077_v49 }
 0x1b6   :  { %5676 = vmatprep.subr.bf16.mxu1 %v6849_v21 }
 0x26b   :  { %v736_v13 = vpop.f32.mrb[2].mxu0  ;;  %v807_v22 = vpop.f32.mrb[26].mxu1 }
 0x26c   :  { %v811_v26 = vadd.f32 %v736_v13, %v7112_v7  ;;  %v738_v35 = vpop.f32.mrb[3].mxu0  ;;  %v4833_v39 = vpop.f32.mrb[27].mxu1  ;;  %v825_v20 = vadd.f32 %v7160_v2, %v807_v22  ;;  %v7247_v13 = vpack.c.bf16 %v1076_v61, %v1073_v59  ;;  %v1072_v22 = vld [vmem:[#allocation9 + $0x90] sm:$0xff] }
 0x26d   :  { %v818_v44 = vadd.f32 %v738_v35, %v7114_v10  ;;  %v1079_v39 = vld [vmem:[#allocation9 + $0xc8] sm:$0xff] }
 0x26e   :  { %v4342_v52 = vmul.f32 -1.442695, %v811_v26  ;;  %v1075_v26 = vld [vmem:[#allocation9 + $0xa8] sm:$0xff] }
 0x26f   :  { %v4343_v57 = vmul.f32 -1.442695, %v818_v44  ;;  %v7249_v35 = vpack.c.bf16 %v1075_v26, %v1072_v22  ;;  %v1082_v44 = vld [vmem:[#allocation9 + $0xe0] sm:$0xff] }
 0x270   :  { %6554 = vpow2.f32 %v4342_v52  ;;  %v7253_v52 = vpack.c.bf16 %v1082_v44, %v1079_v39 }
 0x271   :  { %6556 = vpow2.f32 %v4343_v57  ;;  %v1078_v57 = vld [vmem:[#allocation9 + $0xc0] sm:$0xff] }
 0x27a   :  { %v6555_v1 = vpop.eup %6554 }
 0x27b   :  { %v815_v6 = vadd.f32 1.0, %v6555_v1  ;;  %v6557_v15 = vpop.eup %6556  ;;  %v1081_v1 = vld [vmem:[#allocation9 + $0xd8] sm:$0xff] }
 0x27c   :  { %v822_v55 = vadd.f32 1.0, %v6557_v15  ;;  %v1085_v15 = vld [vmem:[#allocation9 + $0xf8] sm:$0xff] }
 0x27d   :  { %6558 = vrcp.f32 %v815_v6  ;;  %v7255_v6 = vpack.c.bf16 %v1081_v1, %v1078_v57 }
 0x287   :  { %v6559_v29 = vpop.eup %6558 }
 0x288   :  { %v826_v34 = vmul.f32 %v6559_v29, %v825_v20  ;;  %v1088_v20 = vld [vmem:[#allocation9 + $0x110] sm:$0xff] }
 0x289   :  { %v1084_v29 = vld [vmem:[#allocation9 + $0xf0] sm:$0xff] }
 0x28a   :  { %v827_v41 = vadd.f32 %v826_v34, %v7143_v5  ;;  %v7258_v34 = vpack.c.bf16 %v1088_v20, %v1085_v15 }
 0x28c   :  { %6560 = vtanh.f32 %v827_v41  ;;  %v1087_v41 = vld [vmem:[#allocation9 + $0x108] sm:$0xff] }
 0x28d   :  { %6562 = vrcp.f32 %v822_v55  ;;  %v1091_v55 = vld [vmem:[#allocation9 + $0x128] sm:$0xff] }
 0x296   :  { %v6561_v7 = vpop.eup %6560 }
 0x297   :  { %v829_v10 = vsub.f32 %v7163_v53, %v6561_v7  ;;  %v6563_v48 = vpop.eup %6562 }
 0x299   :  { %v830_v62 = vmul.f32 %v6563_v48, %v829_v10  ;;  %v7261_v10 = vpack.c.bf16 %v1087_v41, %v1084_v29 }
 0x29b   :  { %v7206_v8 = vadd.f32 %v6561_v7, %v830_v62  ;;  %v1094_v7 = vld [vmem:[#allocation9 + $0x140] sm:$0xff] }
 0x29c   :  { %v7264_v48 = vpack.c.bf16 %v1094_v7, %v1091_v55  ;;  %v1090_v62 = vld [vmem:[#allocation9 + $0x120] sm:$0xff] }
 0x29d   :  { %951 = vmatmul.mubr.f32.vlgmr.msra.gmra.mrb[4].mxu0 %v7206_v8  ;;  %4867 = vmatmul.mubr.f32.vlgmr.msra.gmra.mrb[28].mxu1 %v7206_v8 }
 0x29e   :  { %5678 = vmatpush3.bf16.msra.mxu1 %v7043_v19  ;;  %1166 = vmatprep.mubr.f32.mxu0 %v6848_v0  ;;  %v1055_v19 = vld [vmem:[#allocation9 + $0x8] sm:$0xff] }
 0x29f   :  { %5679 = vmatprep.subr.bf16.mxu1 %v6849_v21  ;;  %4901 = vmatprep.mubr.msk.f32.mxu1 %vm6850_vm0, %v6848_v0 }
 0x2a2   :  { %5681 = vmatpush3.bf16.msra.mxu1 %v7050_v25  ;;  %v1058_v25 = vld [vmem:[#allocation9 + $0x20] sm:$0xff] }
 0x2a3   :  { %5682 = vmatprep.subr.bf16.mxu1 %v6849_v21 }
 0x2a6   :  { %5684 = vmatpush3.bf16.msra.mxu1 %v7055_v30  ;;  %v7229_v30 = vpack.c.bf16 %v1058_v25, %v1055_v19  ;;  %v1093_v19 = vld [vmem:[#allocation9 + $0x138] sm:$0xff] }
 0x2a7   :  { %5685 = vmatprep.subr.bf16.mxu1 %v6849_v21  ;;  %v1097_v25 = vld [vmem:[#allocation9 + $0x158] sm:$0xff] }
 0x2a8   :  { %5645 = vmatprep.subr.bf16.mxu0 %v7229_v30 }
 0x2aa   :  { %5687 = vmatpush3.bf16.msra.mxu1 %v7059_v32  ;;  %v1054_v32 = vld [vmem:[#allocation9] sm:$0xff] }
 0x2ab   :  { %5688 = vmatprep.subr.bf16.mxu1 %v6849_v21 }
 0x2ae   :  { %5690 = vmatpush3.bf16.msra.mxu1 %v7063_v37  ;;  %v1057_v37 = vld [vmem:[#allocation9 + $0x18] sm:$0xff] }
 0x2af   :  { %5691 = vmatprep.subr.bf16.mxu1 %v6849_v21  ;;  %v7231_v5 = vpack.c.bf16 %v1057_v37, %v1054_v32  ;;  %v1100_v32 = vld [vmem:[#allocation9 + $0x170] sm:$0xff]  ;;  %v7267_v37 = vpack.c.bf16 %v1093_v19, %v1090_v62  ;;  %v1275_v19 = vld [vmem:[#allocation9 + $0x28] sm:$0xff] }
 0x2b1   :  { %5647 = vmatpush1.bf16.msra.mxu0 %v7231_v5 }
 0x2b2   :  { %5693 = vmatpush3.bf16.msra.mxu1 %v7069_v42  ;;  %v1061_v42 = vld [vmem:[#allocation9 + $0x38] sm:$0xff] }
 0x2b3   :  { %5694 = vmatprep.subr.bf16.mxu1 %v6849_v21 }
 0x2b6   :  { %5696 = vmatpush3.bf16.msra.mxu1 %v7073_v46  ;;  %v1064_v46 = vld [vmem:[#allocation9 + $0x50] sm:$0xff] }
 0x2b7   :  { %5697 = vmatprep.subr.bf16.mxu1 %v6849_v21  ;;  %v7235_v11 = vpack.c.bf16 %v1064_v46, %v1061_v42  ;;  %v7270_v42 = vpack.c.bf16 %v1100_v32, %v1097_v25  ;;  %v1096_v46 = vld [vmem:[#allocation9 + $0x150] sm:$0xff]  ;;  %v1278_v32 = vld [vmem:[#allocation9 + $0x40] sm:$0xff] }
 0x2b9   :  { %5649 = vmatprep.subr.bf16.mxu0 %v7235_v11 }
 0x2ba   :  { %5699 = vmatpush3.bf16.msra.mxu1 %v7077_v49  ;;  %v1063_v49 = vld [vmem:[#allocation9 + $0x48] sm:$0xff] }
 0x2bb   :  { %5732 = vmatprep.subr.bf16.mxu1 %v6849_v21  ;;  %v7237_v23 = vpack.c.bf16 %v1063_v49, %v1060_v14  ;;  %v1099_v14 = vld [vmem:[#allocation9 + $0x168] sm:$0xff] }
 0x2bc   :  { %v7273_v49 = vpack.c.bf16 %v1099_v14, %v1096_v46  ;;  %v1281_v46 = vld [vmem:[#allocation9 + $0x58] sm:$0xff] }
 0x2bd   :  { %5651 = vmatpush1.bf16.msra.mxu0 %v7237_v23  ;;  %v7310_v14 = vpack.c.bf16 %v1281_v46, %v1278_v32 }
 0x2be   :  { %5653 = vmatprep.subr.bf16.mxu0 %v7241_v54 }
 0x2c1   :  { %5655 = vmatpush1.bf16.msra.mxu0 %v7243_v3 }
 0x2c2   :  { %5657 = vmatprep.subr.bf16.mxu0 %v7247_v13 }
 0x2c5   :  { %5659 = vmatpush1.bf16.msra.mxu0 %v7249_v35 }
 0x2c6   :  { %5661 = vmatprep.subr.bf16.mxu0 %v7253_v52 }
 0x2c9   :  { %5663 = vmatpush1.bf16.msra.mxu0 %v7255_v6 }
 0x2ca   :  { %5665 = vmatprep.subr.bf16.mxu0 %v7258_v34 }
 0x2cd   :  { %5667 = vmatpush1.bf16.msra.mxu0 %v7261_v10 }
 0x2ce   :  { %5669 = vmatprep.subr.bf16.mxu0 %v7264_v48 }
 0x2d1   :  { %5671 = vmatpush1.bf16.msra.mxu0 %v7267_v37 }
 0x2d2   :  { %5673 = vmatprep.subr.bf16.mxu0 %v7270_v42 }
 0x2d5   :  { %5675 = vmatpush1.bf16.msra.mxu0 %v7273_v49 }
 0x2d6   :  { %5701 = vmatprep.subr.bf16.mxu0 %v7229_v30 }
 0x370   :  { %v952_v56 = vpop.f32.mrb[4].mxu0  ;;  %v1023_v33 = vpop.f32.mrb[28].mxu1 }
 0x371   :  { %v1027_v43 = vadd.f32 %v952_v56, %v7116_v12  ;;  %v954_v4 = vpop.f32.mrb[5].mxu0  ;;  %v4868_v59 = vpop.f32.mrb[29].mxu1  ;;  %v1041_v1 = vadd.f32 %v7160_v2, %v1023_v33  ;;  %v1284_v56 = vld [vmem:[#allocation9 + $0x70] sm:$0xff]  ;;  %v1287_v33 = vld [vmem:[#allocation9 + $0x88] sm:$0xff] }
 0x372   :  { %v1034_v61 = vadd.f32 %v954_v4, %v7118_v16  ;;  %v1290_v4 = vld [vmem:[#allocation9 + $0xa0] sm:$0xff]  ;;  %v1293_v59 = vld [vmem:[#allocation9 + $0xb8] sm:$0xff] }
 0x373   :  { %v4344_v22 = vmul.f32 -1.442695, %v1027_v43  ;;  %v7314_v43 = vpack.c.bf16 %v1287_v33, %v1284_v56 }
 0x374   :  { %v4345_v26 = vmul.f32 -1.442695, %v1034_v61  ;;  %v7318_v61 = vpack.c.bf16 %v1293_v59, %v1290_v4 }
 0x375   :  { %6564 = vpow2.f32 %v4344_v22  ;;  %v1296_v22 = vld [vmem:[#allocation9 + $0xd0] sm:$0xff] }
 0x376   :  { %6566 = vpow2.f32 %v4345_v26  ;;  %v1299_v26 = vld [vmem:[#allocation9 + $0xe8] sm:$0xff] }
 0x37f   :  { %v6565_v39 = vpop.eup %6564 }
 0x380   :  { %v1031_v44 = vadd.f32 1.0, %v6565_v39  ;;  %v6567_v57 = vpop.eup %6566  ;;  %v7322_v39 = vpack.c.bf16 %v1299_v26, %v1296_v22 }
 0x381   :  { %v1038_v41 = vadd.f32 1.0, %v6567_v57  ;;  %v1305_v57 = vld [vmem:[#allocation9 + $0x118] sm:$0xff] }
 0x382   :  { %6568 = vrcp.f32 %v1031_v44  ;;  %v1302_v44 = vld [vmem:[#allocation9 + $0x100] sm:$0xff] }
 0x38c   :  { %v6569_v15 = vpop.eup %6568 }
 0x38d   :  { %v1042_v20 = vmul.f32 %v6569_v15, %v1041_v1  ;;  %v7325_v1 = vpack.c.bf16 %v1305_v57, %v1302_v44  ;;  %v1308_v15 = vld [vmem:[#allocation9 + $0x130] sm:$0xff] }
 0x38f   :  { %v1043_v29 = vadd.f32 %v1042_v20, %v7147_v27  ;;  %v1272_v27 = vld [vmem:[#allocation9 + $0x10] sm:$0xff]  ;;  %v1311_v20 = vld [vmem:[#allocation9 + $0x148] sm:$0xff] }
 0x390   :  { %v7306_v25 = vpack.c.bf16 %v1275_v19, %v1272_v27 }
 0x391   :  { %6570 = vtanh.f32 %v1043_v29  ;;  %v7329_v29 = vpack.c.bf16 %v1311_v20, %v1308_v15 }
 0x392   :  { %6572 = vrcp.f32 %v1038_v41  ;;  %v1314_v41 = vld [vmem:[#allocation9 + $0x160] sm:$0xff] }
 0x39b   :  { %v6571_v12 = vpop.eup %6570 }
 0x39c   :  { %v1045_v16 = vsub.f32 %v7206_v8, %v6571_v12  ;;  %v6573_v55 = vpop.eup %6572 }
 0x39e   :  { %v1046_v7 = vmul.f32 %v6573_v55, %v1045_v16 }
 0x3a0   :  { %v7283_v62 = vadd.f32 %v6571_v12, %v1046_v7  ;;  %v1317_v12 = vld [vmem:[#allocation9 + $0x178] sm:$0xff] }
 0x3a1   :  { %v7333_v16 = vpack.c.bf16 %v1317_v12, %v1314_v41 }
 0x3a2   :  { %1167 = vmatmul.mubr.f32.vlgmr.msra.gmra.mrb[6].mxu0 %v7283_v62  ;;  %4902 = vmatmul.mubr.f32.vlgmr.msra.gmra.mrb[30].mxu1 %v7283_v62 }
 0x3a3   :  { %5703 = vmatpush1.bf16.msra.mxu0 %v7231_v5  ;;  %1382 = vmatprep.mubr.f32.mxu0 %v6848_v0 }
 0x3a4   :  { %5705 = vmatprep.subr.bf16.mxu0 %v7235_v11  ;;  %4936 = vmatprep.mubr.msk.f32.mxu1 %vm6850_vm0, %v6848_v0 }
 0x3a5   :  { %5734 = vmatpush3.bf16.msra.mxu1 %v7306_v25 }
 0x3a6   :  { %5735 = vmatprep.subr.bf16.mxu1 %v6849_v21 }
 0x3a7   :  { %5707 = vmatpush1.bf16.msra.mxu0 %v7237_v23 }
 0x3a8   :  { %5709 = vmatprep.subr.bf16.mxu0 %v7241_v54 }
 0x3a9   :  { %5737 = vmatpush3.bf16.msra.mxu1 %v7310_v14 }
 0x3aa   :  { %5738 = vmatprep.subr.bf16.mxu1 %v6849_v21 }
 0x3ab   :  { %5711 = vmatpush1.bf16.msra.mxu0 %v7243_v3 }
 0x3ac   :  { %5713 = vmatprep.subr.bf16.mxu0 %v7247_v13 }
 0x3ad   :  { %5740 = vmatpush3.bf16.msra.mxu1 %v7314_v43 }
 0x3ae   :  { %5741 = vmatprep.subr.bf16.mxu1 %v6849_v21 }
 0x3af   :  { %5715 = vmatpush1.bf16.msra.mxu0 %v7249_v35 }
 0x3b0   :  { %5717 = vmatprep.subr.bf16.mxu0 %v7253_v52 }
 0x3b1   :  { %5743 = vmatpush3.bf16.msra.mxu1 %v7318_v61 }
 0x3b2   :  { %5744 = vmatprep.subr.bf16.mxu1 %v6849_v21 }
 0x3b3   :  { %5719 = vmatpush1.bf16.msra.mxu0 %v7255_v6 }
 0x3b4   :  { %5721 = vmatprep.subr.bf16.mxu0 %v7258_v34 }
 0x3b5   :  { %5746 = vmatpush3.bf16.msra.mxu1 %v7322_v39 }
 0x3b6   :  { %5747 = vmatprep.subr.bf16.mxu1 %v6849_v21 }
 0x3b7   :  { %5723 = vmatpush1.bf16.msra.mxu0 %v7261_v10 }
 0x3b8   :  { %5725 = vmatprep.subr.bf16.mxu0 %v7264_v48 }
 0x3b9   :  { %5749 = vmatpush3.bf16.msra.mxu1 %v7325_v1 }
 0x3ba   :  { %5750 = vmatprep.subr.bf16.mxu1 %v6849_v21 }
 0x3bb   :  { %5727 = vmatpush1.bf16.msra.mxu0 %v7267_v37 }
 0x3bc   :  { %5729 = vmatprep.subr.bf16.mxu0 %v7270_v42 }
 0x3bd   :  { %5752 = vmatpush3.bf16.msra.mxu1 %v7329_v29 }
 0x3be   :  { %5753 = vmatprep.subr.bf16.mxu1 %v6849_v21 }
 0x3bf   :  { %5731 = vmatpush1.bf16.msra.mxu0 %v7273_v49 }
 0x3c0   :  { %5757 = vmatprep.subr.bf16.mxu0 %v7229_v30 }
 0x3c1   :  { %5755 = vmatpush3.bf16.msra.mxu1 %v7333_v16 }
 0x3c2   :  { %5788 = vmatprep.subr.bf16.mxu1 %v6849_v21 }
 0x475   :  { %v1168_v55 = vpop.f32.mrb[6].mxu0  ;;  %v1239_v7 = vpop.f32.mrb[30].mxu1 }
 0x476   :  { %v1243_v27 = vadd.f32 %v1168_v55, %v7120_v18  ;;  %v1170_v19 = vpop.f32.mrb[7].mxu0  ;;  %v4903_v32 = vpop.f32.mrb[31].mxu1  ;;  %v1257_v26 = vadd.f32 %v7160_v2, %v1239_v7 }
 0x477   :  { %v1250_v46 = vadd.f32 %v1170_v19, %v7122_v24 }
 0x478   :  { %v4346_v56 = vmul.f32 -1.442695, %v1243_v27 }
 0x479   :  { %v4347_v33 = vmul.f32 -1.442695, %v1250_v46 }
 0x47a   :  { %6574 = vpow2.f32 %v4346_v56 }
 0x47b   :  { %6576 = vpow2.f32 %v4347_v33 }
 0x484   :  { %v6575_v4 = vpop.eup %6574 }
 0x485   :  { %v1247_v59 = vadd.f32 1.0, %v6575_v4  ;;  %v6577_v22 = vpop.eup %6576 }
 0x486   :  { %v1254_v20 = vadd.f32 1.0, %v6577_v22 }
 0x487   :  { %6578 = vrcp.f32 %v1247_v59 }
 0x491   :  { %v6579_v44 = vpop.eup %6578 }
 0x492   :  { %v1258_v57 = vmul.f32 %v6579_v44, %v1257_v26 }
 0x494   :  { %v1259_v15 = vadd.f32 %v1258_v57, %v7145_v17 }
 0x496   :  { %6580 = vtanh.f32 %v1259_v15 }
 0x497   :  { %6582 = vrcp.f32 %v1254_v20 }
 0x4a0   :  { %v6581_v18 = vpop.eup %6580 }
 0x4a1   :  { %v1261_v24 = vsub.f32 %v7283_v62, %v6581_v18  ;;  %v6583_v41 = vpop.eup %6582 }
 0x4a3   :  { %v1262_v12 = vmul.f32 %v6583_v41, %v1261_v24 }
 0x4a5   :  { %v7343_v55 = vadd.f32 %v6581_v18, %v1262_v12 }
 0x4a7   :  { %1383 = vmatmul.mubr.f32.vlgmr.msra.gmra.mrb[8].mxu0 %v7343_v55  ;;  %4937 = vmatmul.mubr.f32.vlgmr.msra.gmra.mrb[32].mxu1 %v7343_v55 }
 0x4a8   :  { %5759 = vmatpush1.bf16.msra.mxu0 %v7231_v5  ;;  %5790 = vmatpush3.bf16.msra.mxu1 %v7306_v25 }
 0x4a9   :  { %5761 = vmatprep.subr.bf16.mxu0 %v7235_v11  ;;  %5791 = vmatprep.subr.bf16.mxu1 %v6849_v21 }
 0x4aa   :  { %1598 = vmatprep.mubr.f32.mxu0 %v6848_v0  ;;  %4971 = vmatprep.mubr.msk.f32.mxu1 %vm6850_vm0, %v6848_v0 }
 0x4ac   :  { %5763 = vmatpush1.bf16.msra.mxu0 %v7237_v23  ;;  %5793 = vmatpush3.bf16.msra.mxu1 %v7310_v14 }
 0x4ad   :  { %5765 = vmatprep.subr.bf16.mxu0 %v7241_v54  ;;  %5794 = vmatprep.subr.bf16.mxu1 %v6849_v21 }
 0x4b0   :  { %5767 = vmatpush1.bf16.msra.mxu0 %v7243_v3  ;;  %5796 = vmatpush3.bf16.msra.mxu1 %v7314_v43 }
 0x4b1   :  { %5769 = vmatprep.subr.bf16.mxu0 %v7247_v13  ;;  %5797 = vmatprep.subr.bf16.mxu1 %v6849_v21 }
 0x4b4   :  { %5771 = vmatpush1.bf16.msra.mxu0 %v7249_v35  ;;  %5799 = vmatpush3.bf16.msra.mxu1 %v7318_v61 }
 0x4b5   :  { %5773 = vmatprep.subr.bf16.mxu0 %v7253_v52  ;;  %5800 = vmatprep.subr.bf16.mxu1 %v6849_v21 }
 0x4b8   :  { %5775 = vmatpush1.bf16.msra.mxu0 %v7255_v6  ;;  %5802 = vmatpush3.bf16.msra.mxu1 %v7322_v39 }
 0x4b9   :  { %5777 = vmatprep.subr.bf16.mxu0 %v7258_v34  ;;  %5803 = vmatprep.subr.bf16.mxu1 %v6849_v21 }
 0x4bc   :  { %5779 = vmatpush1.bf16.msra.mxu0 %v7261_v10  ;;  %5805 = vmatpush3.bf16.msra.mxu1 %v7325_v1 }
 0x4bd   :  { %5781 = vmatprep.subr.bf16.mxu0 %v7264_v48  ;;  %5806 = vmatprep.subr.bf16.mxu1 %v6849_v21 }
 0x4c0   :  { %5783 = vmatpush1.bf16.msra.mxu0 %v7267_v37  ;;  %5808 = vmatpush3.bf16.msra.mxu1 %v7329_v29 }
 0x4c1   :  { %5785 = vmatprep.subr.bf16.mxu0 %v7270_v42  ;;  %5809 = vmatprep.subr.bf16.mxu1 %v6849_v21 }
 0x4c4   :  { %5787 = vmatpush1.bf16.msra.mxu0 %v7273_v49  ;;  %5811 = vmatpush3.bf16.msra.mxu1 %v7333_v16 }
 0x4c5   :  { %5813 = vmatprep.subr.bf16.mxu0 %v7229_v30  ;;  %5844 = vmatprep.subr.bf16.mxu1 %v6849_v21 }
 0x57a   :  { %v1384_v17 = vpop.f32.mrb[8].mxu0  ;;  %v1455_v7 = vpop.f32.mrb[32].mxu1 }
 0x57b   :  { %v1459_v27 = vadd.f32 %v1384_v17, %v7124_v28  ;;  %v1386_v19 = vpop.f32.mrb[9].mxu0  ;;  %v4938_v32 = vpop.f32.mrb[33].mxu1  ;;  %v1473_v30 = vadd.f32 %v7160_v2, %v1455_v7 }
 0x57c   :  { %v1466_v46 = vadd.f32 %v1386_v19, %v7126_v9  ;;  %v1927_v32 = vld [vmem:[#allocation9 + $0x48] sm:$0xff] }
 0x57d   :  { %v4348_v56 = vmul.f32 -1.442695, %v1459_v27  ;;  %v1928_v27 = vld [vmem:[#allocation9 + $0x50] sm:$0xff] }
 0x57e   :  { %v4349_v33 = vmul.f32 -1.442695, %v1466_v46 }
 0x57f   :  { %6584 = vpow2.f32 %v4348_v56  ;;  %v1934_v56 = vld [vmem:[#allocation9 + $0x80] sm:$0xff] }
 0x580   :  { %6586 = vpow2.f32 %v4349_v33 }
 0x589   :  { %v6585_v4 = vpop.eup %6584 }
 0x58a   :  { %v1463_v59 = vadd.f32 1.0, %v6585_v4  ;;  %v6587_v22 = vpop.eup %6586  ;;  %v1933_v4 = vld [vmem:[#allocation9 + $0x78] sm:$0xff] }
 0x58b   :  { %v1470_v15 = vadd.f32 1.0, %v6587_v22  ;;  %v1937_v22 = vld [vmem:[#allocation9 + $0x98] sm:$0xff] }
 0x58c   :  { %6588 = vrcp.f32 %v1463_v59 }
 0x596   :  { %v6589_v26 = vpop.eup %6588 }
 0x597   :  { %v1474_v44 = vmul.f32 %v6589_v26, %v1473_v30  ;;  %v1940_v30 = vld [vmem:[#allocation9 + $0xb0] sm:$0xff] }
 0x598   :  { %v5880_v26 = vpack.c.bf16 %v1940_v30, %v1937_v22 }
 0x599   :  { %v1475_v57 = vadd.f32 %v1474_v44, %v7151_v38  ;;  %v1936_v44 = vld [vmem:[#allocation9 + $0x90] sm:$0xff] }
 0x59b   :  { %6590 = vtanh.f32 %v1475_v57  ;;  %v1939_v57 = vld [vmem:[#allocation9 + $0xa8] sm:$0xff] }
 0x59c   :  { %6592 = vrcp.f32 %v1470_v15  ;;  %v5882_v15 = vpack.c.bf16 %v1939_v57, %v1936_v44  ;;  %v2139_v57 = vld [vmem:[#allocation7 + $0x180] sm:$0xff] }
 0x5a5   :  { %v6591_v28 = vpop.eup %6590 }
 0x5a6   :  { %v1477_v9 = vsub.f32 %v7343_v55, %v6591_v28  ;;  %v6593_v20 = vpop.eup %6592 }
 0x5a8   :  { %v1478_v18 = vmul.f32 %v6593_v20, %v1477_v9  ;;  %v1946_v9 = vld [vmem:[#allocation9 + $0xe0] sm:$0xff] }
 0x5aa   :  { %v7387_v24 = vadd.f32 %v6591_v28, %v1478_v18  ;;  %v1943_v28 = vld [vmem:[#allocation9 + $0xc8] sm:$0xff]  ;;  %v1942_v18 = vld [vmem:[#allocation9 + $0xc0] sm:$0xff] }
 0x5ab   :  { %v5884_v20 = vpack.c.bf16 %v1946_v9, %v1943_v28  ;;  %v2146_v9 = vld [vmem:[#allocation7 + $0x1b8] sm:$0xff] }
 0x5ac   :  { %1599 = vmatmul.mubr.f32.vlgmr.msra.gmra.mrb[10].mxu0 %v7387_v24  ;;  %4972 = vmatmul.mubr.f32.vlgmr.msra.gmra.mrb[34].mxu1 %v7387_v24 }
 0x5ad   :  { %5815 = vmatpush1.bf16.msra.mxu0 %v7231_v5  ;;  %5846 = vmatpush3.bf16.msra.mxu1 %v7306_v25 }
 0x5ae   :  { %5817 = vmatprep.subr.bf16.mxu0 %v7235_v11  ;;  %5847 = vmatprep.subr.bf16.mxu1 %v6849_v21 }
 0x5af   :  { %1814 = vmatprep.mubr.f32.mxu0 %v6848_v0  ;;  %5006 = vmatprep.mubr.msk.f32.mxu1 %vm6850_vm0, %v6848_v0 }
 0x5b1   :  { %5819 = vmatpush1.bf16.msra.mxu0 %v7237_v23  ;;  %5849 = vmatpush3.bf16.msra.mxu1 %v7310_v14 }
 0x5b2   :  { %5821 = vmatprep.subr.bf16.mxu0 %v7241_v54  ;;  %5850 = vmatprep.subr.bf16.mxu1 %v6849_v21 }
 0x5b5   :  { %5823 = vmatpush1.bf16.msra.mxu0 %v7243_v3  ;;  %5852 = vmatpush3.bf16.msra.mxu1 %v7314_v43 }
 0x5b6   :  { %5825 = vmatprep.subr.bf16.mxu0 %v7247_v13  ;;  %5853 = vmatprep.subr.bf16.mxu1 %v6849_v21 }
 0x5b9   :  { %5827 = vmatpush1.bf16.msra.mxu0 %v7249_v35  ;;  %5855 = vmatpush3.bf16.msra.mxu1 %v7318_v61 }
 0x5ba   :  { %5829 = vmatprep.subr.bf16.mxu0 %v7253_v52  ;;  %5856 = vmatprep.subr.bf16.mxu1 %v6849_v21 }
 0x5bd   :  { %5831 = vmatpush1.bf16.msra.mxu0 %v7255_v6  ;;  %5858 = vmatpush3.bf16.msra.mxu1 %v7322_v39 }
 0x5be   :  { %5833 = vmatprep.subr.bf16.mxu0 %v7258_v34  ;;  %5859 = vmatprep.subr.bf16.mxu1 %v6849_v21 }
 0x5c1   :  { %5835 = vmatpush1.bf16.msra.mxu0 %v7261_v10  ;;  %5861 = vmatpush3.bf16.msra.mxu1 %v7325_v1 }
 0x5c2   :  { %5837 = vmatprep.subr.bf16.mxu0 %v7264_v48  ;;  %5862 = vmatprep.subr.bf16.mxu1 %v6849_v21 }
 0x5c5   :  { %5839 = vmatpush1.bf16.msra.mxu0 %v7267_v37  ;;  %5864 = vmatpush3.bf16.msra.mxu1 %v7329_v29 }
 0x5c6   :  { %5841 = vmatprep.subr.bf16.mxu0 %v7270_v42  ;;  %5865 = vmatprep.subr.bf16.mxu1 %v6849_v21 }
 0x5c9   :  { %5843 = vmatpush1.bf16.msra.mxu0 %v7273_v49  ;;  %5867 = vmatpush3.bf16.msra.mxu1 %v7333_v16 }
 0x5ca   :  { %5900 = vmatprep.subr.bf16.mxu1 %v6849_v21 }
 0x67f   :  { %v1600_v38 = vpop.f32.mrb[10].mxu0  ;;  %v1671_v5 = vpop.f32.mrb[34].mxu1 }
 0x680   :  { %v1675_v11 = vadd.f32 %v1600_v38, %v7128_v36  ;;  %v1602_v23 = vpop.f32.mrb[11].mxu0  ;;  %v4973_v54 = vpop.f32.mrb[35].mxu1  ;;  %v1689_v10 = vadd.f32 %v7160_v2, %v1671_v5  ;;  %v1945_v38 = vld [vmem:[#allocation9 + $0xd8] sm:$0xff] }
 0x681   :  { %v1682_v3 = vadd.f32 %v1602_v23, %v7130_v40  ;;  %v5886_v5 = vpack.c.bf16 %v1945_v38, %v1942_v18  ;;  %v1952_v23 = vld [vmem:[#allocation9 + $0x110] sm:$0xff]  ;;  %v2147_v38 = vld [vmem:[#allocation7 + $0x1c0] sm:$0xff] }
 0x682   :  { %v4350_v13 = vmul.f32 -1.442695, %v1675_v11  ;;  %v1949_v11 = vld [vmem:[#allocation9 + $0xf8] sm:$0xff]  ;;  %v1948_v54 = vld [vmem:[#allocation9 + $0xf0] sm:$0xff] }
 0x683   :  { %v4351_v35 = vmul.f32 -1.442695, %v1682_v3  ;;  %v5888_v3 = vpack.c.bf16 %v1952_v23, %v1949_v11 }
 0x684   :  { %6594 = vpow2.f32 %v4350_v13  ;;  %v1951_v13 = vld [vmem:[#allocation9 + $0x108] sm:$0xff] }
 0x685   :  { %6596 = vpow2.f32 %v4351_v35  ;;  %v1955_v35 = vld [vmem:[#allocation9 + $0x128] sm:$0xff] }
 0x68e   :  { %v6595_v52 = vpop.eup %6594 }
 0x68f   :  { %v1679_v6 = vadd.f32 1.0, %v6595_v52  ;;  %v6597_v34 = vpop.eup %6596  ;;  %v1958_v52 = vld [vmem:[#allocation9 + $0x140] sm:$0xff] }
 0x690   :  { %v1686_v49 = vadd.f32 1.0, %v6597_v34  ;;  %v5892_v34 = vpack.c.bf16 %v1958_v52, %v1955_v35  ;;  %v2155_v35 = vld [vmem:[#allocation7 + $0x200] sm:$0xff]  ;;  %v2153_v52 = vld [vmem:[#allocation7 + $0x1f0] sm:$0xff] }
 0x691   :  { %6598 = vrcp.f32 %v1679_v6  ;;  %v5890_v6 = vpack.c.bf16 %v1951_v13, %v1948_v54  ;;  %v2145_v54 = vld [vmem:[#allocation7 + $0x1b0] sm:$0xff] }
 0x69b   :  { %v6599_v48 = vpop.eup %6598 }
 0x69c   :  { %v1690_v37 = vmul.f32 %v6599_v48, %v1689_v10  ;;  %v1954_v10 = vld [vmem:[#allocation9 + $0x120] sm:$0xff]  ;;  %v1957_v48 = vld [vmem:[#allocation9 + $0x138] sm:$0xff] }
 0x69e   :  { %v1691_v42 = vadd.f32 %v1690_v37, %v7149_v31  ;;  %v1919_v31 = vld [vmem:[#allocation9 + $0x8] sm:$0xff]  ;;  %v1961_v37 = vld [vmem:[#allocation9 + $0x158] sm:$0xff] }
 0x6a0   :  { %6600 = vtanh.f32 %v1691_v42  ;;  %v1964_v42 = vld [vmem:[#allocation9 + $0x170] sm:$0xff] }
 0x6a1   :  { %6602 = vrcp.f32 %v1686_v49  ;;  %v2141_v49 = vld [vmem:[#allocation7 + $0x190] sm:$0xff] }
 0x6aa   :  { %v6601_v36 = vpop.eup %6600 }
 0x6ab   :  { %v1693_v40 = vsub.f32 %v7387_v24, %v6601_v36  ;;  %v6603_v41 = vpop.eup %6602 }
 0x6ad   :  { %v1694_v12 = vmul.f32 %v6603_v41, %v1693_v40  ;;  %v2144_v40 = vld [vmem:[#allocation7 + $0x1a8] sm:$0xff]  ;;  %v5896_v41 = vpack.c.bf16 %v1964_v42, %v1961_v37  ;;  %v2151_v37 = vld [vmem:[#allocation7 + $0x1e0] sm:$0xff]  ;;  %v2154_v42 = vld [vmem:[#allocation7 + $0x1f8] sm:$0xff] }
 0x6af   :  { %v7430_v17 = vadd.f32 %v6601_v36, %v1694_v12  ;;  %v5894_v36 = vpack.c.bf16 %v1957_v48, %v1954_v10  ;;  %v1960_v12 = vld [vmem:[#allocation9 + $0x150] sm:$0xff] }
 0x6b1   :  { %1815 = vmatmul.mubr.f32.vlgmr.msra.gmra.mrb[12].mxu0 %v7430_v17  ;;  %5007 = vmatmul.mubr.f32.vlgmr.msra.gmra.mrb[36].mxu1 %v7430_v17 }
 0x6b2   :  { %5902 = vmatpush3.bf16.msra.mxu1 %v7306_v25  ;;  %2030 = vmatprep.mubr.f32.mxu0 %v6848_v0  ;;  %v1922_v25 = vld [vmem:[#allocation9 + $0x20] sm:$0xff] }
 0x6b3   :  { %5903 = vmatprep.subr.bf16.mxu1 %v6849_v21  ;;  %5041 = vmatprep.mubr.msk.f32.mxu1 %vm6850_vm0, %v6848_v0 }
 0x6b6   :  { %5905 = vmatpush3.bf16.msra.mxu1 %v7310_v14  ;;  %v5868_v14 = vpack.c.bf16 %v1922_v25, %v1919_v31  ;;  %v1963_v31 = vld [vmem:[#allocation9 + $0x168] sm:$0xff]  ;;  %v5956_v25 = vpack.c.bf16 %v2144_v40, %v2141_v49  ;;  %v2158_v49 = vld [vmem:[#allocation7 + $0x218] sm:$0xff]  ;;  %v2159_v40 = vld [vmem:[#allocation7 + $0x220] sm:$0xff] }
 0x6b7   :  { %5906 = vmatprep.subr.bf16.mxu1 %v6849_v21 }
 0x6b8   :  { %5869 = vmatprep.subr.bf16.mxu0 %v5868_v14  ;;  %v2140_v14 = vld [vmem:[#allocation7 + $0x188] sm:$0xff] }
 0x6ba   :  { %5908 = vmatpush3.bf16.msra.mxu1 %v7314_v43  ;;  %v1918_v43 = vld [vmem:[#allocation9] sm:$0xff] }
 0x6bb   :  { %5909 = vmatprep.subr.bf16.mxu1 %v6849_v21 }
 0x6be   :  { %5911 = vmatpush3.bf16.msra.mxu1 %v7318_v61  ;;  %v1921_v61 = vld [vmem:[#allocation9 + $0x18] sm:$0xff] }
 0x6bf   :  { %5912 = vmatprep.subr.bf16.mxu1 %v6849_v21  ;;  %v5870_v7 = vpack.c.bf16 %v1921_v61, %v1918_v43  ;;  %v2143_v43 = vld [vmem:[#allocation7 + $0x1a0] sm:$0xff]  ;;  %v5898_v61 = vpack.c.bf16 %v1963_v31, %v1960_v12  ;;  %v5934_v12 = vpack.c.bf16 %v2154_v42, %v2151_v37  ;;  %v2459_v37 = vld [vmem:[#allocation9 + $0x1b0] sm:$0xff]  ;;  %v2462_v42 = vld [vmem:[#allocation9 + $0x1c8] sm:$0xff] }
 0x6c1   :  { %5871 = vmatpush1.bf16.msra.mxu0 %v5870_v7  ;;  %v5924_v7 = vpack.c.bf16 %v2143_v43, %v2140_v14  ;;  %v2157_v14 = vld [vmem:[#allocation7 + $0x210] sm:$0xff]  ;;  %v2160_v43 = vld [vmem:[#allocation7 + $0x228] sm:$0xff] }
 0x6c2   :  { %5914 = vmatpush3.bf16.msra.mxu1 %v7322_v39  ;;  %v1925_v39 = vld [vmem:[#allocation9 + $0x38] sm:$0xff] }
 0x6c3   :  { %5915 = vmatprep.subr.bf16.mxu1 %v6849_v21  ;;  %v5872_v19 = vpack.c.bf16 %v1928_v27, %v1925_v39 }
 0x6c5   :  { %5873 = vmatprep.subr.bf16.mxu0 %v5872_v19 }
 0x6c6   :  { %5917 = vmatpush3.bf16.msra.mxu1 %v7325_v1  ;;  %v1924_v1 = vld [vmem:[#allocation9 + $0x30] sm:$0xff] }
 0x6c7   :  { %5918 = vmatprep.subr.bf16.mxu1 %v6849_v21  ;;  %v5874_v46 = vpack.c.bf16 %v1927_v32, %v1924_v1 }
 0x6c9   :  { %5875 = vmatpush1.bf16.msra.mxu0 %v5874_v46 }
 0x6ca   :  { %5920 = vmatpush3.bf16.msra.mxu1 %v7329_v29  ;;  %v1931_v29 = vld [vmem:[#allocation9 + $0x68] sm:$0xff] }
 0x6cb   :  { %5921 = vmatprep.subr.bf16.mxu1 %v6849_v21  ;;  %v5876_v33 = vpack.c.bf16 %v1934_v56, %v1931_v29 }
 0x6cd   :  { %5877 = vmatprep.subr.bf16.mxu0 %v5876_v33 }
 0x6ce   :  { %5923 = vmatpush3.bf16.msra.mxu1 %v7333_v16  ;;  %v1930_v16 = vld [vmem:[#allocation9 + $0x60] sm:$0xff] }
 0x6cf   :  { %v5878_v59 = vpack.c.bf16 %v1933_v4, %v1930_v16  ;;  %5957 = vmatprep.subr.bf16.mxu1 %v5956_v25 }
 0x6d1   :  { %5879 = vmatpush1.bf16.msra.mxu0 %v5878_v59 }
 0x6d2   :  { %5881 = vmatprep.subr.bf16.mxu0 %v5880_v26 }
 0x6d5   :  { %5883 = vmatpush1.bf16.msra.mxu0 %v5882_v15  ;;  %v2142_v15 = vld [vmem:[#allocation7 + $0x198] sm:$0xff] }
 0x6d6   :  { %5885 = vmatprep.subr.bf16.mxu0 %v5884_v20  ;;  %v2149_v20 = vld [vmem:[#allocation7 + $0x1d0] sm:$0xff]  ;;  %v5926_v11 = vpack.c.bf16 %v2142_v15, %v2139_v57  ;;  %v2180_v15 = vld [vmem:[#allocation7 + $0x2c8] sm:$0xff] }
 0x6d7   :  { %v5928_v23 = vpack.c.bf16 %v2149_v20, %v2146_v9  ;;  %v2177_v57 = vld [vmem:[#allocation7 + $0x2b0] sm:$0xff] }
 0x6d8   :  { %v5980_v20 = vpack.c.bf16 %v2180_v15, %v2177_v57  ;;  %v2492_v57 = vld [vmem:[#allocation9 + $0x2b8] sm:$0xff]  ;;  %v2455_v15 = vld [vmem:[#allocation9 + $0x190] sm:$0xff] }
 0x6d9   :  { %5887 = vmatpush1.bf16.msra.mxu0 %v5886_v5  ;;  %v2150_v5 = vld [vmem:[#allocation7 + $0x1d8] sm:$0xff] }
 0x6da   :  { %5889 = vmatprep.subr.bf16.mxu0 %v5888_v3  ;;  %v2152_v3 = vld [vmem:[#allocation7 + $0x1e8] sm:$0xff]  ;;  %v5960_v13 = vpack.c.bf16 %v2150_v5, %v2147_v38  ;;  %v2178_v38 = vld [vmem:[#allocation7 + $0x2b8] sm:$0xff] }
 0x6db   :  { %v5932_v10 = vpack.c.bf16 %v2155_v35, %v2152_v3  ;;  %v2182_v5 = vld [vmem:[#allocation7 + $0x2d8] sm:$0xff]  ;;  %v2181_v35 = vld [vmem:[#allocation7 + $0x2d0] sm:$0xff] }
 0x6dd   :  { %5891 = vmatpush1.bf16.msra.mxu0 %v5890_v6  ;;  %v2156_v6 = vld [vmem:[#allocation7 + $0x208] sm:$0xff] }
 0x6de   :  { %5893 = vmatprep.subr.bf16.mxu0 %v5892_v34  ;;  %v5964_v48 = vpack.c.bf16 %v2156_v6, %v2153_v52  ;;  %v2184_v52 = vld [vmem:[#allocation7 + $0x2e8] sm:$0xff] }
 0x6df   :  { %v5954_v6 = vpack.c.bf16 %v2184_v52, %v2181_v35  ;;  %v2467_v35 = vld [vmem:[#allocation9 + $0x1f0] sm:$0xff]  ;;  %v2470_v52 = vld [vmem:[#allocation9 + $0x208] sm:$0xff] }
 0x6e1   :  { %5895 = vmatpush1.bf16.msra.mxu0 %v5894_v36  ;;  %v2161_v36 = vld [vmem:[#allocation7 + $0x230] sm:$0xff] }
 0x6e2   :  { %5897 = vmatprep.subr.bf16.mxu0 %v5896_v41  ;;  %v2162_v41 = vld [vmem:[#allocation7 + $0x238] sm:$0xff]  ;;  %v5936_v31 = vpack.c.bf16 %v2161_v36, %v2158_v49  ;;  %v7492_v49 = vpack.c.bf16 %v2462_v42, %v2459_v37  ;;  %v2466_v36 = vld [vmem:[#allocation9 + $0x1e8] sm:$0xff]  ;;  %v2485_v37 = vld [vmem:[#allocation9 + $0x280] sm:$0xff] }
 0x6e3   :  { %v2488_v42 = vld [vmem:[#allocation9 + $0x298] sm:$0xff] }
 0x6e5   :  { %5899 = vmatpush1.bf16.msra.mxu0 %v5898_v61  ;;  %v2164_v61 = vld [vmem:[#allocation7 + $0x248] sm:$0xff] }
 0x6e6   :  { %5925 = vmatprep.subr.bf16.mxu0 %v5924_v7  ;;  %v2167_v7 = vld [vmem:[#allocation7 + $0x260] sm:$0xff] }
 0x784   :  { %v1816_v39 = vpop.f32.mrb[12].mxu0  ;;  %v1887_v27 = vpop.f32.mrb[36].mxu1 }
 0x785   :  { %v1891_v19 = vadd.f32 %v1816_v39, %v7132_v45  ;;  %v1818_v1 = vpop.f32.mrb[13].mxu0  ;;  %v5008_v32 = vpop.f32.mrb[37].mxu1  ;;  %v1905_v59 = vadd.f32 %v7160_v2, %v1887_v27  ;;  %v2165_v39 = vld [vmem:[#allocation7 + $0x250] sm:$0xff]  ;;  %v2168_v27 = vld [vmem:[#allocation7 + $0x268] sm:$0xff] }
 0x786   :  { %v1898_v46 = vadd.f32 %v1818_v1, %v7135_v50  ;;  %v5940_v1 = vpack.c.bf16 %v2167_v7, %v2164_v61  ;;  %v5972_v32 = vpack.c.bf16 %v2168_v27, %v2165_v39  ;;  %v2471_v7 = vld [vmem:[#allocation9 + $0x210] sm:$0xff]  ;;  %v2474_v39 = vld [vmem:[#allocation9 + $0x228] sm:$0xff] }
 0x787   :  { %v4352_v29 = vmul.f32 -1.442695, %v1891_v19  ;;  %v5938_v19 = vpack.c.bf16 %v2160_v43, %v2157_v14  ;;  %v2472_v14 = vld [vmem:[#allocation9 + $0x218] sm:$0xff]  ;;  %v2475_v43 = vld [vmem:[#allocation9 + $0x230] sm:$0xff]  ;;  %v7504_v27 = vpack.c.bf16 %v2474_v39, %v2471_v7 }
 0x788   :  { %v4353_v56 = vmul.f32 -1.442695, %v1898_v46  ;;  %v2163_v46 = vld [vmem:[#allocation7 + $0x240] sm:$0xff]  ;;  %v7502_v61 = vpack.c.bf16 %v2475_v43, %v2472_v14  ;;  %v2500_v43 = vld [vmem:[#allocation9 + $0x2f8] sm:$0xff] }
 0x789   :  { %6604 = vpow2.f32 %v4352_v29  ;;  %v2166_v29 = vld [vmem:[#allocation7 + $0x258] sm:$0xff]  ;;  %v2497_v14 = vld [vmem:[#allocation9 + $0x2e0] sm:$0xff] }
 0x78a   :  { %6606 = vpow2.f32 %v4353_v56  ;;  %v2170_v56 = vld [vmem:[#allocation7 + $0x278] sm:$0xff]  ;;  %v7560_v7 = vpack.c.bf16 %v2500_v43, %v2497_v14 }
 0x793   :  { %v6605_v33 = vpop.eup %6604 }
 0x794   :  { %v1895_v16 = vadd.f32 1.0, %v6605_v33  ;;  %v6607_v4 = vpop.eup %6606  ;;  %v2173_v33 = vld [vmem:[#allocation7 + $0x290] sm:$0xff] }
 0x795   :  { %v1902_v44 = vadd.f32 1.0, %v6607_v4  ;;  %v2174_v4 = vld [vmem:[#allocation7 + $0x298] sm:$0xff] }
 0x796   :  { %6608 = vrcp.f32 %v1895_v16  ;;  %v2171_v16 = vld [vmem:[#allocation7 + $0x280] sm:$0xff] }
 0x7a0   :  { %v6609_v22 = vpop.eup %6608 }
 0x7a1   :  { %v1906_v30 = vmul.f32 %v6609_v22, %v1905_v59  ;;  %v5942_v59 = vpack.c.bf16 %v2166_v29, %v2163_v46  ;;  %v5944_v22 = vpack.c.bf16 %v2173_v33, %v2170_v56  ;;  %v2477_v46 = vld [vmem:[#allocation9 + $0x240] sm:$0xff]  ;;  %v2480_v29 = vld [vmem:[#allocation9 + $0x258] sm:$0xff] }
 0x7a2   :  { %v7510_v56 = vpack.c.bf16 %v2480_v29, %v2477_v46  ;;  %v2484_v33 = vld [vmem:[#allocation9 + $0x278] sm:$0xff] }
 0x7a3   :  { %v1907_v26 = vadd.f32 %v1906_v30, %v7155_v47  ;;  %v2148_v47 = vld [vmem:[#allocation7 + $0x1c8] sm:$0xff]  ;;  %v5976_v30 = vpack.c.bf16 %v2174_v4, %v2171_v16  ;;  %v2487_v16 = vld [vmem:[#allocation9 + $0x290] sm:$0xff] }
 0x7a4   :  { %v5930_v34 = vpack.c.bf16 %v2148_v47, %v2145_v54  ;;  %v2186_v54 = vld [vmem:[#allocation7 + $0x2f8] sm:$0xff]  ;;  %v7514_v4 = vpack.c.bf16 %v2487_v16, %v2484_v33 }
 0x7a5   :  { %6610 = vtanh.f32 %v1907_v26  ;;  %v2169_v26 = vld [vmem:[#allocation7 + $0x270] sm:$0xff] }
 0x7a6   :  { %6612 = vrcp.f32 %v1902_v44  ;;  %v2172_v44 = vld [vmem:[#allocation7 + $0x288] sm:$0xff] }
 0x7af   :  { %v6611_v45 = vpop.eup %6610 }
 0x7b0   :  { %v1909_v50 = vsub.f32 %v7430_v17, %v6611_v45  ;;  %v6613_v28 = vpop.eup %6612 }
 0x7b2   :  { %v1910_v18 = vmul.f32 %v6613_v28, %v1909_v50  ;;  %v2179_v50 = vld [vmem:[#allocation7 + $0x2c0] sm:$0xff]  ;;  %v5946_v28 = vpack.c.bf16 %v2172_v44, %v2169_v26  ;;  %v2490_v26 = vld [vmem:[#allocation9 + $0x2a8] sm:$0xff] }
 0x7b3   :  { %v2493_v44 = vld [vmem:[#allocation9 + $0x2c0] sm:$0xff] }
 0x7b4   :  { %v7457_v2 = vadd.f32 %v6611_v45, %v1910_v18  ;;  %v2176_v45 = vld [vmem:[#allocation7 + $0x2a8] sm:$0xff]  ;;  %v2175_v18 = vld [vmem:[#allocation7 + $0x2a0] sm:$0xff] }
 0x7b5   :  { %v5948_v9 = vpack.c.bf16 %v2179_v50, %v2176_v45  ;;  %v5950_v47 = vpack.c.bf16 %v2178_v38, %v2175_v18  ;;  %v2489_v45 = vld [vmem:[#allocation9 + $0x2a0] sm:$0xff]  ;;  %v7519_v50 = vpack.c.bf16 %v2493_v44, %v2490_v26  ;;  %v2496_v18 = vld [vmem:[#allocation9 + $0x2d8] sm:$0xff]  ;;  %v2499_v38 = vld [vmem:[#allocation9 + $0x2f0] sm:$0xff] }
 0x7b6   :  { %2031 = vmatmul.mubr.f32.vlgmr.msra.gmra.mrb[14].mxu0 %v7457_v2  ;;  %5042 = vmatmul.mubr.f32.vlgmr.msra.gmra.mrb[38].mxu1 %v7457_v2 }
 0x7b7   :  { %5927 = vmatpush1.bf16.msra.mxu0 %v5926_v11  ;;  %5959 = vmatpush3.bf16.msra.mxu1 %v5956_v25  ;;  %v5968_v25 = vpack.c.bf16 %v2162_v41, %v2159_v40  ;;  %v2185_v11 = vld [vmem:[#allocation7 + $0x2f0] sm:$0xff]  ;;  %v2469_v40 = vld [vmem:[#allocation9 + $0x200] sm:$0xff] }
 0x7b8   :  { %5076 = vmatprep.mubr.f32.mxu1 %v7163_v53  ;;  %5929 = vmatprep.subr.bf16.mxu0 %v5928_v23  ;;  %v2183_v23 = vld [vmem:[#allocation7 + $0x2e0] sm:$0xff]  ;;  %v5952_v3 = vpack.c.bf16 %v2185_v11, %v2182_v5  ;;  %v7496_v41 = vpack.c.bf16 %v2469_v40, %v2466_v36  ;;  %v7527_v5 = vpack.c.bf16 %v2499_v38, %v2496_v18  ;;  %v2495_v11 = vld [vmem:[#allocation9 + $0x2d0] sm:$0xff] }
 0x7b9   :  { %5961 = vmatprep.subr.bf16.mxu1 %v5960_v13  ;;  %2269 = vmatprep.mubr.f32.mxu0 %v6848_v0  ;;  %v7552_v36 = vpack.c.bf16 %v2488_v42, %v2485_v37  ;;  %v2491_v40 = vld [vmem:[#allocation9 + $0x2b0] sm:$0xff]  ;;  %v8017_v37 = vsub.s32 0, %v7101_v51 }
 0x7bb   :  { %5931 = vmatpush1.bf16.msra.mxu0 %v5930_v34  ;;  %5963 = vmatpush3.bf16.msra.mxu1 %v5960_v13  ;;  %v5984_v13 = vpack.c.bf16 %v2186_v54, %v2183_v23  ;;  %v2453_v34 = vld [vmem:[#allocation9 + $0x180] sm:$0xff]  ;;  %v2498_v23 = vld [vmem:[#allocation9 + $0x2e8] sm:$0xff] }
 0x7bc   :  { %5933 = vmatprep.subr.bf16.mxu0 %v5932_v10  ;;  %5965 = vmatprep.subr.bf16.mxu1 %v5964_v48  ;;  %v7533_v54 = vpack.c.bf16 %v2498_v23, %v2495_v11 }
 0x7bf   :  { %5935 = vmatpush1.bf16.msra.mxu0 %v5934_v12  ;;  %5967 = vmatpush3.bf16.msra.mxu1 %v5964_v48  ;;  %v2465_v12 = vld [vmem:[#allocation9 + $0x1e0] sm:$0xff] }
 0x7c0   :  { %5937 = vmatprep.subr.bf16.mxu0 %v5936_v31  ;;  %5969 = vmatprep.subr.bf16.mxu1 %v5968_v25  ;;  %v2468_v31 = vld [vmem:[#allocation9 + $0x1f8] sm:$0xff] }
 0x7c3   :  { %5939 = vmatpush1.bf16.msra.mxu0 %v5938_v19  ;;  %5971 = vmatpush3.bf16.msra.mxu1 %v5968_v25  ;;  %v7498_v25 = vpack.c.bf16 %v2468_v31, %v2465_v12  ;;  %v2478_v19 = vld [vmem:[#allocation9 + $0x248] sm:$0xff] }
 0x7c4   :  { %5941 = vmatprep.subr.bf16.mxu0 %v5940_v1  ;;  %5973 = vmatprep.subr.bf16.mxu1 %v5972_v32  ;;  %v2481_v1 = vld [vmem:[#allocation9 + $0x260] sm:$0xff]  ;;  %v2494_v12 = vld [vmem:[#allocation9 + $0x2c8] sm:$0xff] }
 0x7c5   :  { %v7556_v31 = vpack.c.bf16 %v2494_v12, %v2491_v40 }
 0x7c7   :  { %5943 = vmatpush1.bf16.msra.mxu0 %v5942_v59  ;;  %5975 = vmatpush3.bf16.msra.mxu1 %v5972_v32  ;;  %v7508_v32 = vpack.c.bf16 %v2481_v1, %v2478_v19  ;;  %v2483_v59 = vld [vmem:[#allocation9 + $0x270] sm:$0xff] }
 0x7c8   :  { %5945 = vmatprep.subr.bf16.mxu0 %v5944_v22  ;;  %5977 = vmatprep.subr.bf16.mxu1 %v5976_v30  ;;  %v2486_v22 = vld [vmem:[#allocation9 + $0x288] sm:$0xff] }
 0x7cb   :  { %5947 = vmatpush1.bf16.msra.mxu0 %v5946_v28  ;;  %5979 = vmatpush3.bf16.msra.mxu1 %v5976_v30  ;;  %v7516_v30 = vpack.c.bf16 %v2486_v22, %v2483_v59  ;;  %v2458_v28 = vld [vmem:[#allocation9 + $0x1a8] sm:$0xff] }
 0x7cc   :  { %5949 = vmatprep.subr.bf16.mxu0 %v5948_v9  ;;  %5981 = vmatprep.subr.bf16.mxu1 %v5980_v20  ;;  %v7522_v9 = vpack.c.bf16 %v2492_v57, %v2489_v45  ;;  %v6720_v45 = vld [vmem:[%s8010_s4] ss:$0 sm:$0xff] }
 0x7cf   :  { %5951 = vmatpush1.bf16.msra.mxu0 %v5950_v47  ;;  %5983 = vmatpush3.bf16.msra.mxu1 %v5980_v20  ;;  %v7524_v20 = vpack.c.bf16 %v2458_v28, %v2455_v15  ;;  %v2461_v47 = vld [vmem:[#allocation9 + $0x1c0] sm:$0xff] }
 0x7d0   :  { %5953 = vmatprep.subr.bf16.mxu0 %v5952_v3  ;;  %5985 = vmatprep.subr.bf16.mxu1 %v5984_v13  ;;  %v2464_v3 = vld [vmem:[#allocation9 + $0x1d8] sm:$0xff] }
 0x7d3   :  { %5955 = vmatpush1.bf16.msra.mxu0 %v5954_v6  ;;  %5987 = vmatpush3.bf16.msra.mxu1 %v5984_v13  ;;  %v7535_v13 = vpack.c.bf16 %v2464_v3, %v2461_v47  ;;  %v2473_v6 = vld [vmem:[#allocation9 + $0x220] sm:$0xff] }
 0x7d4   :  { %6020 = vmatprep.subr.bf16.mxu1 %v6849_v21 }
 0x7d6   :  { %2270 = vmatmul.mubr.f32.vlgmr.msra.gmra.mrb[16].mxu0 %v7163_v53  ;;  %5077 = vmatmul.mubr.f32.vlgmr.msra.gmra.mrb[40].mxu1 %v7206_v8  ;;  %v2454_v53 = vld [vmem:[#allocation9 + $0x188] sm:$0xff] }
 0x7d7   :  { %5079 = vmatprep.mubr.f32.mxu1 %v7283_v62  ;;  %2275 = vmatprep.mubr.f32.mxu0 %v6848_v0 }
 0x7d8   :  { %6022 = vmatpush3.bf16.msra.mxu1 %v7524_v20 }
 0x7d9   :  { %6023 = vmatprep.subr.bf16.mxu1 %v6849_v21 }
 0x7da   :  { %2276 = vmatmul.mubr.f32.gmra.mrb[18].mxu0 %v7206_v8  ;;  %5080 = vmatmul.mubr.f32.gmra.mrb[42].mxu1 %v7343_v55  ;;  %v2457_v8 = vld [vmem:[#allocation9 + $0x1a0] sm:$0xff] }
 0x7db   :  { %5082 = vmatprep.mubr.f32.mxu1 %v7387_v24  ;;  %2281 = vmatprep.mubr.f32.mxu0 %v6848_v0 }
 0x7dc   :  { %6025 = vmatpush3.bf16.msra.mxu1 %v7535_v13 }
 0x7dd   :  { %6026 = vmatprep.subr.bf16.mxu1 %v6849_v21 }
 0x7de   :  { %2282 = vmatmul.mubr.f32.gmra.mrb[20].mxu0 %v7283_v62  ;;  %5083 = vmatmul.mubr.f32.gmra.mrb[44].mxu1 %v7430_v17  ;;  %v7484_v62 = vpack.c.bf16 %v2457_v8, %v2454_v53  ;;  %v7541_v53 = vpack.c.bf16 %v2470_v52, %v2467_v35  ;;  %v2476_v8 = vld [vmem:[#allocation9 + $0x238] sm:$0xff] }
 0x7df   :  { %5085 = vmatprep.mubr.f32.mxu1 %v7457_v2  ;;  %2287 = vmatprep.mubr.f32.mxu0 %v6848_v0 }
 0x7e0   :  { %5989 = vmatprep.subr.bf16.mxu0 %v7484_v62  ;;  %6028 = vmatpush3.bf16.msra.mxu1 %v7541_v53 }
 0x7e1   :  { %6029 = vmatprep.subr.bf16.mxu1 %v6849_v21 }
 0x7e2   :  { %2288 = vmatmul.mubr.f32.gmra.mrb[22].mxu0 %v7343_v55  ;;  %v2456_v55 = vld [vmem:[#allocation9 + $0x198] sm:$0xff] }
 0x7e3   :  { %2293 = vmatprep.mubr.f32.mxu0 %v6848_v0  ;;  %v7486_v10 = vpack.c.bf16 %v2456_v55, %v2453_v34  ;;  %v7544_v34 = vpack.c.bf16 %v2476_v8, %v2473_v6  ;;  %v2479_v55 = vld [vmem:[#allocation9 + $0x250] sm:$0xff] }
 0x7e5   :  { %5991 = vmatpush1.bf16.msra.mxu0 %v7486_v10  ;;  %6031 = vmatpush3.bf16.msra.mxu1 %v7544_v34 }
 0x7e6   :  { %2294 = vmatmul.mubr.f32.gmra.mrb[24].mxu0 %v7387_v24  ;;  %v2460_v24 = vld [vmem:[#allocation9 + $0x1b8] sm:$0xff]  ;;  %6032 = vmatprep.subr.bf16.mxu1 %v6849_v21 }
 0x7e7   :  { %2299 = vmatprep.mubr.f32.mxu0 %v6848_v0 }
 0x7ea   :  { %2300 = vmatmul.mubr.f32.gmra.mrb[26].mxu0 %v7430_v17  ;;  %v2463_v17 = vld [vmem:[#allocation9 + $0x1d0] sm:$0xff] }
 0x7eb   :  { %2305 = vmatprep.mubr.f32.mxu0 %v6848_v0  ;;  %v7490_v48 = vpack.c.bf16 %v2463_v17, %v2460_v24  ;;  %v2482_v24 = vld [vmem:[#allocation9 + $0x268] sm:$0xff] }
 0x7ec   :  { %v7548_v17 = vpack.c.bf16 %v2482_v24, %v2479_v55 }
 0x7ed   :  { %5993 = vmatprep.subr.bf16.mxu0 %v7490_v48 }
 0x7ee   :  { %2306 = vmatmul.mubr.f32.gmra.mrb[28].mxu0 %v7457_v2  ;;  %6034 = vmatpush3.bf16.msra.mxu1 %v7548_v17 }
 0x7ef   :  { %2311 = vmatprep.mubr.f32.mxu0 %v6848_v0  ;;  %5995 = vmatpush1.bf16.msra.mxu0 %v7492_v49 }
 0x7f0   :  { %5997 = vmatprep.subr.bf16.mxu0 %v7496_v41  ;;  %6035 = vmatprep.subr.bf16.mxu1 %v6849_v21 }
 0x7f2   :  { %6037 = vmatpush3.bf16.msra.mxu1 %v7552_v36 }
 0x7f3   :  { %5999 = vmatpush1.bf16.msra.mxu0 %v7498_v25  ;;  %6038 = vmatprep.subr.bf16.mxu1 %v6849_v21 }
 0x7f4   :  { %6001 = vmatprep.subr.bf16.mxu0 %v7502_v61 }
 0x7f6   :  { %6040 = vmatpush3.bf16.msra.mxu1 %v7556_v31 }
 0x7f7   :  { %6003 = vmatpush1.bf16.msra.mxu0 %v7504_v27  ;;  %6041 = vmatprep.subr.bf16.mxu1 %v6849_v21 }
 0x7f8   :  { %6005 = vmatprep.subr.bf16.mxu0 %v7508_v32 }
 0x7fa   :  { %6043 = vmatpush3.bf16.msra.mxu1 %v7560_v7 }
 0x7fb   :  { %6007 = vmatpush1.bf16.msra.mxu0 %v7510_v56  ;;  %6076 = vmatprep.subr.bf16.mxu1 %v6849_v21 }
 0x7fc   :  { %6009 = vmatprep.subr.bf16.mxu0 %v7514_v4 }
 0x7ff   :  { %6011 = vmatpush1.bf16.msra.mxu0 %v7516_v30 }
 0x800   :  { %6013 = vmatprep.subr.bf16.mxu0 %v7519_v50 }
 0x803   :  { %6015 = vmatpush1.bf16.msra.mxu0 %v7522_v9 }
 0x804   :  { %6017 = vmatprep.subr.bf16.mxu0 %v7527_v5 }
 0x807   :  { %6019 = vmatpush1.bf16.msra.mxu0 %v7533_v54 }
 0x808   :  { %6045 = vmatprep.subr.bf16.mxu0 %v7484_v62 }
 0x889   :  { %v2032_v39 = vpop.f32.mrb[14].mxu0  ;;  %v2103_v19 = vpop.f32.mrb[38].mxu1 }
 0x88a   :  { %v2107_v1 = vadd.f32 %v2032_v39, %v7137_v60  ;;  %v2034_v46 = vpop.f32.mrb[15].mxu0  ;;  %v5043_v29 = vpop.f32.mrb[39].mxu1  ;;  %v2121_v57 = vadd.f32 %v6720_v45, %v2103_v19 }
 0x88b   :  { %v2114_v33 = vadd.f32 %v2034_v46, %v7141_v63 }
 0x88c   :  { %v4354_v16 = vmul.f32 -1.442695, %v2107_v1  ;;  %v8018_v1 = vsub.s32 1, %v7101_v51 }
 0x88d   :  { %v4355_v59 = vmul.f32 -1.442695, %v2114_v33 }
 0x88e   :  { %6614 = vpow2.f32 %v4354_v16 }
 0x88f   :  { %6616 = vpow2.f32 %v4355_v59 }
 0x898   :  { %v6615_v22 = vpop.eup %6614 }
 0x899   :  { %v2111_v26 = vadd.f32 1.0, %v6615_v22  ;;  %v6617_v44 = vpop.eup %6616  ;;  %v7644_v22 = vld [vmem:[%s8010_s4 + $0x1] ss:$0 sm:$0xff] }
 0x89a   :  { %v2118_v18 = vadd.f32 1.0, %v6617_v44 }
 0x89b   :  { %6618 = vrcp.f32 %v2111_v26  ;;  %v8019_v26 = vsub.s32 2, %v7101_v51 }
 0x8a5   :  { %v6619_v15 = vpop.eup %6618 }
 0x8a6   :  { %v2122_v28 = vmul.f32 %v6619_v15, %v2121_v57 }
 0x8a8   :  { %v2123_v60 = vadd.f32 %v2122_v28, %v7153_v58 }
 0x8a9   :  { %v7571_v38 = vpop.f32.mrb[40].mxu1 }
 0x8aa   :  { %6620 = vtanh.f32 %v2123_v60  ;;  %v7573_v63 = vpop.f32.mrb[41].mxu1 }
 0x8ab   :  { %6622 = vrcp.f32 %v2118_v18 }
 0x8ad   :  { %v7575_v11 = vpop.f32.mrb[42].mxu1 }
 0x8ae   :  { %v7577_v23 = vpop.f32.mrb[43].mxu1 }
 0x8b1   :  { %v7579_v47 = vpop.f32.mrb[44].mxu1 }
 0x8b2   :  { %v7581_v3 = vpop.f32.mrb[45].mxu1 }
 0x8b4   :  { %v6621_v35 = vpop.eup %6620 }
 0x8b5   :  { %v2125_v52 = vsub.f32 %v7457_v2, %v6621_v35  ;;  %v6623_v6 = vpop.eup %6622  ;;  %v4356_v2 = vld [vmem:[%s8009_s3 + $0x3] sm:$0x7] }
 0x8b6   :  { %v7633_v42 = vrot.slane %v4356_v2, %v8017_v37  ;;  %v7638_v46 = vrot.slane %v4356_v2, %v8018_v1  ;;  %v7648_v44 = vrot.slane %v4356_v2, %v8019_v26 }
 0x8b7   :  { %v2126_v58 = vmul.f32 %v6623_v6, %v2125_v52 }
 0x8b8   :  { %v2385_v28 = vadd.f32 %v7573_v63, %v7648_v44 }
 0x8b9   :  { %v2127_v8 = vadd.f32 %v6621_v35, %v2126_v58 }
 0x8bb   :  { %2312 = vmatmul.mubr.f32.gmra.mrb[30].mxu0 %v2127_v8  ;;  %5086 = vmatmul.mubr.f32.gmra.mrb[46].mxu1 %v2127_v8 }
 0x8bc   :  { %2565 = vmatprep.mubr.f32.mxu0 %v6848_v0  ;;  %5120 = vmatprep.mubr.msk.f32.mxu1 %vm6850_vm0, %v6848_v0 }
 0x8bf   :  { %2566 = vmatmul.mubr.f32.vlgmr.msra.gmra.mrb[16].mxu0 %v6848_v0  ;;  %5121 = vmatmul.mubr.f32.vlgmr.msra.gmra.mrb[48].mxu1 %v6848_v0 }
 0x8c0   :  { %6047 = vmatpush1.bf16.msra.mxu0 %v7486_v10  ;;  %6078 = vmatpush3.bf16.msra.mxu1 %v7524_v20 }
 0x8c1   :  { %6049 = vmatprep.subr.bf16.mxu0 %v7490_v48  ;;  %6079 = vmatprep.subr.bf16.mxu1 %v6849_v21 }
 0x8c2   :  { %2785 = vmatprep.mubr.f32.mxu0 %v6848_v0  ;;  %5155 = vmatprep.mubr.msk.f32.mxu1 %vm6850_vm0, %v6848_v0 }
 0x8c4   :  { %6051 = vmatpush1.bf16.msra.mxu0 %v7492_v49  ;;  %6081 = vmatpush3.bf16.msra.mxu1 %v7535_v13 }
 0x8c5   :  { %6053 = vmatprep.subr.bf16.mxu0 %v7496_v41  ;;  %6082 = vmatprep.subr.bf16.mxu1 %v6849_v21 }
 0x8c8   :  { %6055 = vmatpush1.bf16.msra.mxu0 %v7498_v25  ;;  %6084 = vmatpush3.bf16.msra.mxu1 %v7541_v53 }
 0x8c9   :  { %6057 = vmatprep.subr.bf16.mxu0 %v7502_v61  ;;  %6085 = vmatprep.subr.bf16.mxu1 %v6849_v21 }
 0x8cc   :  { %6059 = vmatpush1.bf16.msra.mxu0 %v7504_v27  ;;  %6087 = vmatpush3.bf16.msra.mxu1 %v7544_v34 }
 0x8cd   :  { %6061 = vmatprep.subr.bf16.mxu0 %v7508_v32  ;;  %6088 = vmatprep.subr.bf16.mxu1 %v6849_v21 }
 0x8d0   :  { %6063 = vmatpush1.bf16.msra.mxu0 %v7510_v56  ;;  %6090 = vmatpush3.bf16.msra.mxu1 %v7548_v17 }
 0x8d1   :  { %6065 = vmatprep.subr.bf16.mxu0 %v7514_v4  ;;  %6091 = vmatprep.subr.bf16.mxu1 %v6849_v21 }
 0x8d4   :  { %6067 = vmatpush1.bf16.msra.mxu0 %v7516_v30  ;;  %6093 = vmatpush3.bf16.msra.mxu1 %v7552_v36 }
 0x8d5   :  { %6069 = vmatprep.subr.bf16.mxu0 %v7519_v50  ;;  %6094 = vmatprep.subr.bf16.mxu1 %v6849_v21 }
 0x8d8   :  { %6071 = vmatpush1.bf16.msra.mxu0 %v7522_v9  ;;  %6096 = vmatpush3.bf16.msra.mxu1 %v7556_v31 }
 0x8d9   :  { %6073 = vmatprep.subr.bf16.mxu0 %v7527_v5  ;;  %6097 = vmatprep.subr.bf16.mxu1 %v6849_v21 }
 0x8dc   :  { %6075 = vmatpush1.bf16.msra.mxu0 %v7533_v54  ;;  %6099 = vmatpush3.bf16.msra.mxu1 %v7560_v7 }
 0x8dd   :  { %6101 = vmatprep.subr.bf16.mxu0 %v7484_v62  ;;  %6132 = vmatprep.subr.bf16.mxu1 %v6849_v21 }
 0x98e   :  { %v7627_v55 = vpop.f32.mrb[46].mxu1 }
 0x98f   :  { %v7629_v24 = vpop.f32.mrb[47].mxu1 }
 0x992   :  { %v2567_v40 = vpop.f32.mrb[16].mxu0  ;;  %v2638_v12 = vpop.f32.mrb[48].mxu1 }
 0x993   :  { %v6500_v14 = vadd.f32 %v2567_v40, %v7633_v42  ;;  %v2569_v43 = vpop.f32.mrb[17].mxu0  ;;  %v5122_v39 = vpop.f32.mrb[49].mxu1  ;;  %v2662_v45 = vadd.f32 %v7644_v22, %v2638_v12 }
 0x994   :  { %v6501_v29 = vadd.f32 %v2569_v43, %v7638_v46 }
 0x995   :  { %v4358_v19 = vmul.f32 -1.442695, %v6500_v14 }
 0x996   :  { %v4359_v33 = vmul.f32 -1.442695, %v6501_v29 }
 0x997   :  { %6624 = vpow2.f32 %v4358_v19 }
 0x998   :  { %6626 = vpow2.f32 %v4359_v33 }
 0x9a1   :  { %v6625_v16 = vpop.eup %6624 }
 0x9a2   :  { %v2646_v59 = vadd.f32 1.0, %v6625_v16  ;;  %v6627_v57 = vpop.eup %6626  ;;  %v2390_v16 = vadd.f32 %v7571_v38, %v7648_v44 }
 0x9a3   :  { %v2653_v18 = vadd.f32 1.0, %v6627_v57 }
 0x9a4   :  { %6628 = vrcp.f32 %v2646_v59 }
 0x9ae   :  { %v6629_v15 = vpop.eup %6628 }
 0x9af   :  { %v2663_v60 = vmul.f32 %v6629_v15, %v2662_v45 }
 0x9b1   :  { %v2664_v35 = vadd.f32 %v2663_v60, %v2385_v28 }
 0x9b3   :  { %6630 = vtanh.f32 %v2664_v35 }
 0x9b4   :  { %6632 = vrcp.f32 %v2653_v18 }
 0x9bd   :  { %v6631_v52 = vpop.eup %6630 }
 0x9be   :  { %v2666_v6 = vsub.f32 0.0, %v6631_v52  ;;  %v6633_v58 = vpop.eup %6632 }
 0x9c0   :  { %v2667_v8 = vmul.f32 %v6633_v58, %v2666_v6 }
 0x9c2   :  { %v7653_v37 = vadd.f32 %v6631_v52, %v2667_v8 }
 0x9c4   :  { %2786 = vmatmul.mubr.f32.vlgmr.msra.gmra.mrb[18].mxu0 %v7653_v37  ;;  %5156 = vmatmul.mubr.f32.vlgmr.msra.gmra.mrb[50].mxu1 %v7653_v37 }
 0x9c5   :  { %6103 = vmatpush1.bf16.msra.mxu0 %v7486_v10  ;;  %6134 = vmatpush3.bf16.msra.mxu1 %v7524_v20 }
 0x9c6   :  { %6105 = vmatprep.subr.bf16.mxu0 %v7490_v48  ;;  %6135 = vmatprep.subr.bf16.mxu1 %v6849_v21 }
 0x9c7   :  { %2999 = vmatprep.mubr.f32.mxu0 %v6848_v0  ;;  %5190 = vmatprep.mubr.msk.f32.mxu1 %vm6850_vm0, %v6848_v0 }
 0x9c9   :  { %6107 = vmatpush1.bf16.msra.mxu0 %v7492_v49  ;;  %6137 = vmatpush3.bf16.msra.mxu1 %v7535_v13 }
 0x9ca   :  { %6109 = vmatprep.subr.bf16.mxu0 %v7496_v41  ;;  %6138 = vmatprep.subr.bf16.mxu1 %v6849_v21 }
 0x9cd   :  { %6111 = vmatpush1.bf16.msra.mxu0 %v7498_v25  ;;  %6140 = vmatpush3.bf16.msra.mxu1 %v7541_v53 }
 0x9ce   :  { %6113 = vmatprep.subr.bf16.mxu0 %v7502_v61  ;;  %6141 = vmatprep.subr.bf16.mxu1 %v6849_v21 }
 0x9d1   :  { %6115 = vmatpush1.bf16.msra.mxu0 %v7504_v27  ;;  %6143 = vmatpush3.bf16.msra.mxu1 %v7544_v34 }
 0x9d2   :  { %6117 = vmatprep.subr.bf16.mxu0 %v7508_v32  ;;  %6144 = vmatprep.subr.bf16.mxu1 %v6849_v21 }
 0x9d5   :  { %6119 = vmatpush1.bf16.msra.mxu0 %v7510_v56  ;;  %6146 = vmatpush3.bf16.msra.mxu1 %v7548_v17 }
 0x9d6   :  { %6121 = vmatprep.subr.bf16.mxu0 %v7514_v4  ;;  %6147 = vmatprep.subr.bf16.mxu1 %v6849_v21 }
 0x9d9   :  { %6123 = vmatpush1.bf16.msra.mxu0 %v7516_v30  ;;  %6149 = vmatpush3.bf16.msra.mxu1 %v7552_v36 }
 0x9da   :  { %6125 = vmatprep.subr.bf16.mxu0 %v7519_v50  ;;  %6150 = vmatprep.subr.bf16.mxu1 %v6849_v21 }
 0x9dd   :  { %6127 = vmatpush1.bf16.msra.mxu0 %v7522_v9  ;;  %6152 = vmatpush3.bf16.msra.mxu1 %v7556_v31 }
 0x9de   :  { %6129 = vmatprep.subr.bf16.mxu0 %v7527_v5  ;;  %6153 = vmatprep.subr.bf16.mxu1 %v6849_v21 }
 0x9e1   :  { %6131 = vmatpush1.bf16.msra.mxu0 %v7533_v54  ;;  %6155 = vmatpush3.bf16.msra.mxu1 %v7560_v7 }
 0x9e2   :  { %6157 = vmatprep.subr.bf16.mxu0 %v7484_v62  ;;  %6188 = vmatprep.subr.bf16.mxu1 %v6849_v21 }
 0xa97   :  { %v2787_v51 = vpop.f32.mrb[18].mxu0  ;;  %v2858_v63 = vpop.f32.mrb[50].mxu1 }
 0xa98   :  { %v6502_v2 = vadd.f32 %v2787_v51, %v7633_v42  ;;  %v2789_v40 = vpop.f32.mrb[19].mxu0  ;;  %v5157_v12 = vpop.f32.mrb[51].mxu1  ;;  %v2876_v62 = vadd.f32 %v7644_v22, %v2858_v63 }
 0xa99   :  { %v6503_v43 = vadd.f32 %v2789_v40, %v7638_v46  ;;  %v3328_v12 = vld [vmem:[#allocation9 + $0x1e8] sm:$0xff] }
 0xa9a   :  { %v4361_v14 = vmul.f32 -1.442695, %v6502_v2  ;;  %v3321_v2 = vld [vmem:[#allocation9 + $0x1b0] sm:$0xff] }
 0xa9b   :  { %v4362_v39 = vmul.f32 -1.442695, %v6503_v43 }
 0xa9c   :  { %6634 = vpow2.f32 %v4361_v14  ;;  %v3331_v14 = vld [vmem:[#allocation9 + $0x200] sm:$0xff] }
 0xa9d   :  { %6636 = vpow2.f32 %v4362_v39  ;;  %v7775_v43 = vpack.c.bf16 %v3331_v14, %v3328_v12  ;;  %v3327_v39 = vld [vmem:[#allocation9 + $0x1e0] sm:$0xff] }
 0xaa6   :  { %v6635_v19 = vpop.eup %6634 }
 0xaa7   :  { %v2866_v1 = vadd.f32 1.0, %v6635_v19  ;;  %v6637_v29 = vpop.eup %6636  ;;  %v3330_v19 = vld [vmem:[#allocation9 + $0x1f8] sm:$0xff] }
 0xaa8   :  { %v2873_v45 = vadd.f32 1.0, %v6637_v29  ;;  %v3334_v29 = vld [vmem:[#allocation9 + $0x218] sm:$0xff] }
 0xaa9   :  { %6638 = vrcp.f32 %v2866_v1  ;;  %v7777_v1 = vpack.c.bf16 %v3330_v19, %v3327_v39 }
 0xab3   :  { %v6639_v33 = vpop.eup %6638 }
 0xab4   :  { %v2877_v59 = vmul.f32 %v6639_v33, %v2876_v62  ;;  %v3337_v62 = vld [vmem:[#allocation9 + $0x230] sm:$0xff] }
 0xab5   :  { %v7781_v33 = vpack.c.bf16 %v3337_v62, %v3334_v29 }
 0xab6   :  { %v2878_v26 = vadd.f32 %v2877_v59, %v2390_v16  ;;  %v3333_v16 = vld [vmem:[#allocation9 + $0x210] sm:$0xff]  ;;  %v3336_v59 = vld [vmem:[#allocation9 + $0x228] sm:$0xff] }
 0xab8   :  { %6640 = vtanh.f32 %v2878_v26  ;;  %v7783_v26 = vpack.c.bf16 %v3336_v59, %v3333_v16  ;;  %v2400_v16 = vadd.f32 %v7575_v11, %v7648_v44  ;;  %v3531_v11 = vld [vmem:[#allocation9 + $0x190] sm:$0xff] }
 0xab9   :  { %6642 = vrcp.f32 %v2873_v45  ;;  %v3340_v45 = vld [vmem:[#allocation9 + $0x248] sm:$0xff] }
 0xac2   :  { %v6641_v57 = vpop.eup %6640 }
 0xac3   :  { %v2880_v15 = vsub.f32 %v7653_v37, %v6641_v57  ;;  %v6643_v28 = vpop.eup %6642 }
 0xac5   :  { %v2881_v60 = vmul.f32 %v6643_v28, %v2880_v15  ;;  %v3339_v28 = vld [vmem:[#allocation9 + $0x240] sm:$0xff] }
 0xac7   :  { %v7698_v18 = vadd.f32 %v6641_v57, %v2881_v60  ;;  %v3343_v57 = vld [vmem:[#allocation9 + $0x260] sm:$0xff]  ;;  %v3342_v60 = vld [vmem:[#allocation9 + $0x258] sm:$0xff] }
 0xac8   :  { %v7787_v15 = vpack.c.bf16 %v3343_v57, %v3340_v45 }
 0xac9   :  { %3000 = vmatmul.mubr.f32.vlgmr.msra.gmra.mrb[20].mxu0 %v7698_v18  ;;  %5191 = vmatmul.mubr.f32.vlgmr.msra.gmra.mrb[52].mxu1 %v7698_v18 }
 0xaca   :  { %6159 = vmatpush1.bf16.msra.mxu0 %v7486_v10  ;;  %6190 = vmatpush3.bf16.msra.mxu1 %v7524_v20 }
 0xacb   :  { %6161 = vmatprep.subr.bf16.mxu0 %v7490_v48  ;;  %6191 = vmatprep.subr.bf16.mxu1 %v6849_v21 }
 0xacc   :  { %3213 = vmatprep.mubr.f32.mxu0 %v6848_v0  ;;  %5225 = vmatprep.mubr.msk.f32.mxu1 %vm6850_vm0, %v6848_v0 }
 0xace   :  { %6163 = vmatpush1.bf16.msra.mxu0 %v7492_v49  ;;  %6193 = vmatpush3.bf16.msra.mxu1 %v7535_v13 }
 0xacf   :  { %6165 = vmatprep.subr.bf16.mxu0 %v7496_v41  ;;  %6194 = vmatprep.subr.bf16.mxu1 %v6849_v21 }
 0xad2   :  { %6167 = vmatpush1.bf16.msra.mxu0 %v7498_v25  ;;  %6196 = vmatpush3.bf16.msra.mxu1 %v7541_v53 }
 0xad3   :  { %6169 = vmatprep.subr.bf16.mxu0 %v7502_v61  ;;  %6197 = vmatprep.subr.bf16.mxu1 %v6849_v21 }
 0xad6   :  { %6171 = vmatpush1.bf16.msra.mxu0 %v7504_v27  ;;  %6199 = vmatpush3.bf16.msra.mxu1 %v7544_v34 }
 0xad7   :  { %6173 = vmatprep.subr.bf16.mxu0 %v7508_v32  ;;  %6200 = vmatprep.subr.bf16.mxu1 %v6849_v21 }
 0xada   :  { %6175 = vmatpush1.bf16.msra.mxu0 %v7510_v56  ;;  %6202 = vmatpush3.bf16.msra.mxu1 %v7548_v17 }
 0xadb   :  { %6177 = vmatprep.subr.bf16.mxu0 %v7514_v4  ;;  %6203 = vmatprep.subr.bf16.mxu1 %v6849_v21 }
 0xade   :  { %6179 = vmatpush1.bf16.msra.mxu0 %v7516_v30  ;;  %6205 = vmatpush3.bf16.msra.mxu1 %v7552_v36 }
 0xadf   :  { %6181 = vmatprep.subr.bf16.mxu0 %v7519_v50  ;;  %6206 = vmatprep.subr.bf16.mxu1 %v6849_v21 }
 0xae2   :  { %6183 = vmatpush1.bf16.msra.mxu0 %v7522_v9  ;;  %6208 = vmatpush3.bf16.msra.mxu1 %v7556_v31 }
 0xae3   :  { %6185 = vmatprep.subr.bf16.mxu0 %v7527_v5  ;;  %6209 = vmatprep.subr.bf16.mxu1 %v6849_v21  ;;  %v2395_v5 = vadd.f32 %v7577_v23, %v7648_v44  ;;  %v3315_v23 = vld [vmem:[#allocation9 + $0x180] sm:$0xff] }
 0xae6   :  { %6187 = vmatpush1.bf16.msra.mxu0 %v7533_v54  ;;  %6211 = vmatpush3.bf16.msra.mxu1 %v7560_v7 }
 0xae7   :  { %6244 = vmatprep.subr.bf16.mxu1 %v6849_v21 }
 0xb9c   :  { %v3001_v10 = vpop.f32.mrb[20].mxu0  ;;  %v3072_v48 = vpop.f32.mrb[52].mxu1 }
 0xb9d   :  { %v6504_v49 = vadd.f32 %v3001_v10, %v7633_v42  ;;  %v3003_v41 = vpop.f32.mrb[21].mxu0  ;;  %v5192_v25 = vpop.f32.mrb[53].mxu1  ;;  %v3090_v50 = vadd.f32 %v7644_v22, %v3072_v48  ;;  %v3346_v10 = vld [vmem:[#allocation9 + $0x278] sm:$0xff]  ;;  %v7789_v48 = vpack.c.bf16 %v3342_v60, %v3339_v28 }
 0xb9e   :  { %v6505_v27 = vadd.f32 %v3003_v41, %v7638_v46  ;;  %v3345_v41 = vld [vmem:[#allocation9 + $0x270] sm:$0xff]  ;;  %v3348_v25 = vld [vmem:[#allocation9 + $0x288] sm:$0xff] }
 0xb9f   :  { %v4363_v61 = vmul.f32 -1.442695, %v6504_v49  ;;  %v3349_v49 = vld [vmem:[#allocation9 + $0x290] sm:$0xff] }
 0xba0   :  { %v4364_v32 = vmul.f32 -1.442695, %v6505_v27  ;;  %v3352_v27 = vld [vmem:[#allocation9 + $0x2a8] sm:$0xff] }
 0xba1   :  { %6644 = vpow2.f32 %v4363_v61  ;;  %v7792_v61 = vpack.c.bf16 %v3349_v49, %v3346_v10 }
 0xba2   :  { %6646 = vpow2.f32 %v4364_v32  ;;  %v3355_v32 = vld [vmem:[#allocation9 + $0x2c0] sm:$0xff] }
 0xbab   :  { %v6645_v56 = vpop.eup %6644 }
 0xbac   :  { %v3080_v4 = vadd.f32 1.0, %v6645_v56  ;;  %v6647_v30 = vpop.eup %6646  ;;  %v7795_v56 = vpack.c.bf16 %v3348_v25, %v3345_v41  ;;  %v3534_v25 = vld [vmem:[#allocation9 + $0x1a8] sm:$0xff] }
 0xbad   :  { %v3087_v38 = vadd.f32 1.0, %v6647_v30  ;;  %v3351_v30 = vld [vmem:[#allocation9 + $0x2a0] sm:$0xff] }
 0xbae   :  { %6648 = vrcp.f32 %v3080_v4  ;;  %v7798_v4 = vpack.c.bf16 %v3355_v32, %v3352_v27  ;;  %v7845_v27 = vpack.c.bf16 %v3534_v25, %v3531_v11  ;;  %v3537_v32 = vld [vmem:[#allocation9 + $0x1c0] sm:$0xff]  ;;  %v2405_v25 = vadd.f32 %v7581_v3, %v7648_v44 }
 0xbb8   :  { %v6649_v9 = vpop.eup %6648 }
 0xbb9   :  { %v3091_v54 = vmul.f32 %v6649_v9, %v3090_v50  ;;  %v3354_v50 = vld [vmem:[#allocation9 + $0x2b8] sm:$0xff]  ;;  %v3359_v9 = vld [vmem:[#allocation9 + $0x2e0] sm:$0xff] }
 0xbbb   :  { %v3092_v7 = vadd.f32 %v3091_v54, %v2395_v5  ;;  %v3358_v5 = vld [vmem:[#allocation9 + $0x2d8] sm:$0xff]  ;;  %v3361_v54 = vld [vmem:[#allocation9 + $0x2f0] sm:$0xff] }
 0xbbd   :  { %6650 = vtanh.f32 %v3092_v7  ;;  %v3362_v7 = vld [vmem:[#allocation9 + $0x2f8] sm:$0xff] }
 0xbbe   :  { %6652 = vrcp.f32 %v3087_v38  ;;  %v7800_v38 = vpack.c.bf16 %v3362_v7, %v3359_v9  ;;  %v3543_v9 = vld [vmem:[#allocation9 + $0x1f0] sm:$0xff]  ;;  %v3549_v7 = vld [vmem:[#allocation9 + $0x220] sm:$0xff] }
 0xbc7   :  { %v6651_v35 = vpop.eup %6650 }
 0xbc8   :  { %v3094_v52 = vsub.f32 %v7698_v18, %v6651_v35  ;;  %v6653_v6 = vpop.eup %6652 }
 0xbca   :  { %v3095_v58 = vmul.f32 %v6653_v6, %v3094_v52  ;;  %v7806_v52 = vpack.c.bf16 %v3361_v54, %v3358_v5  ;;  %v3357_v6 = vld [vmem:[#allocation9 + $0x2d0] sm:$0xff]  ;;  %v3546_v5 = vld [vmem:[#allocation9 + $0x208] sm:$0xff] }
 0xbcb   :  { %v7853_v54 = vpack.c.bf16 %v3546_v5, %v3543_v9 }
 0xbcc   :  { %v7742_v8 = vadd.f32 %v6651_v35, %v3095_v58  ;;  %v7803_v35 = vpack.c.bf16 %v3354_v50, %v3351_v30  ;;  %v3360_v58 = vld [vmem:[#allocation9 + $0x2e8] sm:$0xff]  ;;  %v3540_v30 = vld [vmem:[#allocation9 + $0x1d8] sm:$0xff] }
 0xbcd   :  { %v7849_v50 = vpack.c.bf16 %v3540_v30, %v3537_v32 }
 0xbce   :  { %3214 = vmatmul.mubr.f32.vlgmr.msra.gmra.mrb[22].mxu0 %v7742_v8  ;;  %5226 = vmatmul.mubr.f32.vlgmr.msra.gmra.mrb[54].mxu1 %v7742_v8 }
 0xbcf   :  { %6246 = vmatpush3.bf16.msra.mxu1 %v7524_v20  ;;  %3427 = vmatprep.mubr.f32.mxu0 %v6848_v0  ;;  %v3316_v20 = vld [vmem:[#allocation9 + $0x188] sm:$0xff] }
 0xbd0   :  { %6247 = vmatprep.subr.bf16.mxu1 %v6849_v21  ;;  %5260 = vmatprep.mubr.msk.f32.mxu1 %vm6850_vm0, %v6848_v0 }
 0xbd3   :  { %6249 = vmatpush3.bf16.msra.mxu1 %v7535_v13  ;;  %v3319_v13 = vld [vmem:[#allocation9 + $0x1a0] sm:$0xff] }
 0xbd4   :  { %6250 = vmatprep.subr.bf16.mxu1 %v6849_v21 }
 0xbd7   :  { %6252 = vmatpush3.bf16.msra.mxu1 %v7541_v53  ;;  %v7763_v53 = vpack.c.bf16 %v3319_v13, %v3316_v20  ;;  %v7811_v20 = vpack.c.bf16 %v3360_v58, %v3357_v6  ;;  %v3552_v6 = vld [vmem:[#allocation9 + $0x238] sm:$0xff] }
 0xbd8   :  { %6253 = vmatprep.subr.bf16.mxu1 %v6849_v21  ;;  %v7857_v58 = vpack.c.bf16 %v3552_v6, %v3549_v7 }
 0xbd9   :  { %6213 = vmatprep.subr.bf16.mxu0 %v7763_v53 }
 0xbdb   :  { %6255 = vmatpush3.bf16.msra.mxu1 %v7544_v34  ;;  %v3318_v34 = vld [vmem:[#allocation9 + $0x198] sm:$0xff] }
 0xbdc   :  { %6256 = vmatprep.subr.bf16.mxu1 %v6849_v21  ;;  %v7765_v51 = vpack.c.bf16 %v3318_v34, %v3315_v23 }
 0xbde   :  { %6215 = vmatpush1.bf16.msra.mxu0 %v7765_v51 }
 0xbdf   :  { %6258 = vmatpush3.bf16.msra.mxu1 %v7548_v17  ;;  %v3322_v17 = vld [vmem:[#allocation9 + $0x1b8] sm:$0xff] }
 0xbe0   :  { %6259 = vmatprep.subr.bf16.mxu1 %v6849_v21 }
 0xbe3   :  { %6261 = vmatpush3.bf16.msra.mxu1 %v7552_v36  ;;  %v3325_v36 = vld [vmem:[#allocation9 + $0x1d0] sm:$0xff] }
 0xbe4   :  { %6262 = vmatprep.subr.bf16.mxu1 %v6849_v21  ;;  %v7769_v63 = vpack.c.bf16 %v3325_v36, %v3322_v17 }
 0xbe6   :  { %6217 = vmatprep.subr.bf16.mxu0 %v7769_v63 }
 0xbe7   :  { %6264 = vmatpush3.bf16.msra.mxu1 %v7556_v31  ;;  %v3324_v31 = vld [vmem:[#allocation9 + $0x1c8] sm:$0xff] }
 0xbe8   :  { %6265 = vmatprep.subr.bf16.mxu1 %v6849_v21  ;;  %v7771_v40 = vpack.c.bf16 %v3324_v31, %v3321_v2 }
 0xbea   :  { %6219 = vmatpush1.bf16.msra.mxu0 %v7771_v40 }
 0xbeb   :  { %6221 = vmatprep.subr.bf16.mxu0 %v7775_v43  ;;  %6267 = vmatpush3.bf16.msra.mxu1 %v7800_v38 }
 0xbec   :  { %6300 = vmatprep.subr.bf16.mxu1 %v6849_v21 }
 0xbee   :  { %6223 = vmatpush1.bf16.msra.mxu0 %v7777_v1 }
 0xbef   :  { %6225 = vmatprep.subr.bf16.mxu0 %v7781_v33 }
 0xbf2   :  { %6227 = vmatpush1.bf16.msra.mxu0 %v7783_v26 }
 0xbf3   :  { %6229 = vmatprep.subr.bf16.mxu0 %v7787_v15 }
 0xbf6   :  { %6231 = vmatpush1.bf16.msra.mxu0 %v7789_v48 }
 0xbf7   :  { %6233 = vmatprep.subr.bf16.mxu0 %v7792_v61 }
 0xbfa   :  { %6235 = vmatpush1.bf16.msra.mxu0 %v7795_v56 }
 0xbfb   :  { %6237 = vmatprep.subr.bf16.mxu0 %v7798_v4 }
 0xbfe   :  { %6239 = vmatpush1.bf16.msra.mxu0 %v7803_v35 }
 0xbff   :  { %6241 = vmatprep.subr.bf16.mxu0 %v7806_v52 }
 0xc02   :  { %6243 = vmatpush1.bf16.msra.mxu0 %v7811_v20 }
 0xc03   :  { %6269 = vmatprep.subr.bf16.mxu0 %v7763_v53 }
 0xca1   :  { %v3215_v13 = vpop.f32.mrb[22].mxu0  ;;  %v3286_v23 = vpop.f32.mrb[54].mxu1 }
 0xca2   :  { %v6506_v34 = vadd.f32 %v3215_v13, %v7633_v42  ;;  %v3217_v17 = vpop.f32.mrb[23].mxu0  ;;  %v5227_v36 = vpop.f32.mrb[55].mxu1  ;;  %v3304_v29 = vadd.f32 %v7644_v22, %v3286_v23  ;;  %v3555_v13 = vld [vmem:[#allocation9 + $0x250] sm:$0xff]  ;;  %v3558_v23 = vld [vmem:[#allocation9 + $0x268] sm:$0xff] }
 0xca3   :  { %v6507_v31 = vadd.f32 %v3217_v17, %v7638_v46  ;;  %v7861_v17 = vpack.c.bf16 %v3558_v23, %v3555_v13  ;;  %v3564_v36 = vld [vmem:[#allocation9 + $0x298] sm:$0xff] }
 0xca4   :  { %v4365_v2 = vmul.f32 -1.442695, %v6506_v34  ;;  %v3561_v34 = vld [vmem:[#allocation9 + $0x280] sm:$0xff] }
 0xca5   :  { %v4366_v12 = vmul.f32 -1.442695, %v6507_v31  ;;  %v3567_v31 = vld [vmem:[#allocation9 + $0x2b0] sm:$0xff] }
 0xca6   :  { %6654 = vpow2.f32 %v4365_v2  ;;  %v7864_v2 = vpack.c.bf16 %v3564_v36, %v3561_v34 }
 0xca7   :  { %6656 = vpow2.f32 %v4366_v12  ;;  %v3570_v12 = vld [vmem:[#allocation9 + $0x2c8] sm:$0xff] }
 0xcb0   :  { %v6655_v14 = vpop.eup %6654 }
 0xcb1   :  { %v3294_v39 = vadd.f32 1.0, %v6655_v14  ;;  %v6657_v19 = vpop.eup %6656  ;;  %v7868_v14 = vpack.c.bf16 %v3570_v12, %v3567_v31 }
 0xcb2   :  { %v3301_v57 = vadd.f32 1.0, %v6657_v19 }
 0xcb3   :  { %6658 = vrcp.f32 %v3294_v39 }
 0xcbd   :  { %v6659_v62 = vpop.eup %6658 }
 0xcbe   :  { %v3305_v59 = vmul.f32 %v6659_v62, %v3304_v29 }
 0xcc0   :  { %v3306_v45 = vadd.f32 %v3305_v59, %v2400_v16 }
 0xcc2   :  { %6660 = vtanh.f32 %v3306_v45 }
 0xcc3   :  { %6662 = vrcp.f32 %v3301_v57 }
 0xccc   :  { %v6661_v28 = vpop.eup %6660 }
 0xccd   :  { %v3308_v60 = vsub.f32 %v7742_v8, %v6661_v28  ;;  %v6663_v10 = vpop.eup %6662 }
 0xccf   :  { %v3309_v49 = vmul.f32 %v6663_v10, %v3308_v60 }
 0xcd1   :  { %v7822_v41 = vadd.f32 %v6661_v28, %v3309_v49 }
 0xcd3   :  { %3428 = vmatmul.mubr.f32.vlgmr.msra.gmra.mrb[24].mxu0 %v7822_v41  ;;  %5261 = vmatmul.mubr.f32.vlgmr.msra.gmra.mrb[56].mxu1 %v7822_v41 }
 0xcd4   :  { %6271 = vmatpush1.bf16.msra.mxu0 %v7765_v51  ;;  %3641 = vmatprep.mubr.f32.mxu0 %v6848_v0 }
 0xcd5   :  { %6273 = vmatprep.subr.bf16.mxu0 %v7769_v63  ;;  %5295 = vmatprep.mubr.msk.f32.mxu1 %vm6850_vm0, %v6848_v0 }
 0xcd6   :  { %6302 = vmatpush3.bf16.msra.mxu1 %v7845_v27 }
 0xcd7   :  { %6303 = vmatprep.subr.bf16.mxu1 %v6849_v21 }
 0xcd8   :  { %6275 = vmatpush1.bf16.msra.mxu0 %v7771_v40 }
 0xcd9   :  { %6277 = vmatprep.subr.bf16.mxu0 %v7775_v43 }
 0xcda   :  { %6305 = vmatpush3.bf16.msra.mxu1 %v7849_v50 }
 0xcdb   :  { %6306 = vmatprep.subr.bf16.mxu1 %v6849_v21 }
 0xcdc   :  { %6279 = vmatpush1.bf16.msra.mxu0 %v7777_v1 }
 0xcdd   :  { %6281 = vmatprep.subr.bf16.mxu0 %v7781_v33 }
 0xcde   :  { %6308 = vmatpush3.bf16.msra.mxu1 %v7853_v54 }
 0xcdf   :  { %6309 = vmatprep.subr.bf16.mxu1 %v6849_v21 }
 0xce0   :  { %6283 = vmatpush1.bf16.msra.mxu0 %v7783_v26 }
 0xce1   :  { %6285 = vmatprep.subr.bf16.mxu0 %v7787_v15 }
 0xce2   :  { %6311 = vmatpush3.bf16.msra.mxu1 %v7857_v58 }
 0xce3   :  { %6312 = vmatprep.subr.bf16.mxu1 %v6849_v21 }
 0xce4   :  { %6287 = vmatpush1.bf16.msra.mxu0 %v7789_v48 }
 0xce5   :  { %6289 = vmatprep.subr.bf16.mxu0 %v7792_v61 }
 0xce6   :  { %6314 = vmatpush3.bf16.msra.mxu1 %v7861_v17 }
 0xce7   :  { %6315 = vmatprep.subr.bf16.mxu1 %v6849_v21 }
 0xce8   :  { %6291 = vmatpush1.bf16.msra.mxu0 %v7795_v56 }
 0xce9   :  { %6293 = vmatprep.subr.bf16.mxu0 %v7798_v4 }
 0xcea   :  { %6317 = vmatpush3.bf16.msra.mxu1 %v7864_v2 }
 0xceb   :  { %6318 = vmatprep.subr.bf16.mxu1 %v6849_v21 }
 0xcec   :  { %6295 = vmatpush1.bf16.msra.mxu0 %v7803_v35 }
 0xced   :  { %6297 = vmatprep.subr.bf16.mxu0 %v7806_v52 }
 0xcee   :  { %6320 = vmatpush3.bf16.msra.mxu1 %v7868_v14 }
 0xcef   :  { %6321 = vmatprep.subr.bf16.mxu1 %v6849_v21 }
 0xcf0   :  { %6299 = vmatpush1.bf16.msra.mxu0 %v7811_v20 }
 0xcf1   :  { %6325 = vmatprep.subr.bf16.mxu0 %v7763_v53 }
 0xcf2   :  { %6323 = vmatpush3.bf16.msra.mxu1 %v7800_v38 }
 0xcf3   :  { %6356 = vmatprep.subr.bf16.mxu1 %v6849_v21 }
 0xda6   :  { %v3429_v39 = vpop.f32.mrb[24].mxu0  ;;  %v3500_v19 = vpop.f32.mrb[56].mxu1 }
 0xda7   :  { %v6508_v29 = vadd.f32 %v3429_v39, %v7633_v42  ;;  %v3431_v62 = vpop.f32.mrb[25].mxu0  ;;  %v5262_v16 = vpop.f32.mrb[57].mxu1  ;;  %v3518_v49 = vadd.f32 %v7644_v22, %v3500_v19 }
 0xda8   :  { %v6509_v45 = vadd.f32 %v3431_v62, %v7638_v46 }
 0xda9   :  { %v4367_v59 = vmul.f32 -1.442695, %v6508_v29 }
 0xdaa   :  { %v4368_v57 = vmul.f32 -1.442695, %v6509_v45 }
 0xdab   :  { %6664 = vpow2.f32 %v4367_v59 }
 0xdac   :  { %6666 = vpow2.f32 %v4368_v57  ;;  %v2410_v57 = vadd.f32 %v7579_v47, %v7648_v44  ;;  %v4177_v47 = vld [vmem:[#allocation10 + $0x8] sm:$0xff] }
 0xdb5   :  { %v6665_v28 = vpop.eup %6664 }
 0xdb6   :  { %v3508_v60 = vadd.f32 1.0, %v6665_v28  ;;  %v6667_v10 = vpop.eup %6666 }
 0xdb7   :  { %v3515_v9 = vadd.f32 1.0, %v6667_v10 }
 0xdb8   :  { %6668 = vrcp.f32 %v3508_v60 }
 0xdc2   :  { %v6669_v11 = vpop.eup %6668 }
 0xdc3   :  { %v3519_v32 = vmul.f32 %v6669_v11, %v3518_v49 }
 0xdc5   :  { %v3520_v30 = vadd.f32 %v3519_v32, %v2405_v25 }
 0xdc7   :  { %6670 = vtanh.f32 %v3520_v30 }
 0xdc8   :  { %6672 = vrcp.f32 %v3515_v9 }
 0xdd1   :  { %v6671_v5 = vpop.eup %6670 }
 0xdd2   :  { %v3522_v7 = vsub.f32 %v7822_v41, %v6671_v5  ;;  %v6673_v6 = vpop.eup %6672 }
 0xdd4   :  { %v3523_v13 = vmul.f32 %v6673_v6, %v3522_v7  ;;  %v4181_v7 = vld [vmem:[#allocation10 + $0x28] sm:$0xff]  ;;  %v4182_v6 = vld [vmem:[#allocation10 + $0x30] sm:$0xff] }
 0xdd6   :  { %v7881_v23 = vadd.f32 %v6671_v5, %v3523_v13  ;;  %v4183_v13 = vld [vmem:[#allocation10 + $0x38] sm:$0xff] }
 0xdd8   :  { %3642 = vmatmul.mubr.f32.vlgmr.msra.gmra.mrb[26].mxu0 %v7881_v23  ;;  %5296 = vmatmul.mubr.f32.vlgmr.msra.gmra.mrb[58].mxu1 %v7881_v23 }
 0xdd9   :  { %6327 = vmatpush1.bf16.msra.mxu0 %v7765_v51  ;;  %6358 = vmatpush3.bf16.msra.mxu1 %v7845_v27 }
 0xdda   :  { %6329 = vmatprep.subr.bf16.mxu0 %v7769_v63  ;;  %6359 = vmatprep.subr.bf16.mxu1 %v6849_v21 }
 0xddb   :  { %3855 = vmatprep.mubr.f32.mxu0 %v6848_v0  ;;  %5330 = vmatprep.mubr.msk.f32.mxu1 %vm6850_vm0, %v6848_v0 }
 0xddd   :  { %6331 = vmatpush1.bf16.msra.mxu0 %v7771_v40  ;;  %6361 = vmatpush3.bf16.msra.mxu1 %v7849_v50 }
 0xdde   :  { %6333 = vmatprep.subr.bf16.mxu0 %v7775_v43  ;;  %6362 = vmatprep.subr.bf16.mxu1 %v6849_v21 }
 0xde1   :  { %6335 = vmatpush1.bf16.msra.mxu0 %v7777_v1  ;;  %6364 = vmatpush3.bf16.msra.mxu1 %v7853_v54 }
 0xde2   :  { %6337 = vmatprep.subr.bf16.mxu0 %v7781_v33  ;;  %6365 = vmatprep.subr.bf16.mxu1 %v6849_v21 }
 0xde5   :  { %6339 = vmatpush1.bf16.msra.mxu0 %v7783_v26  ;;  %6367 = vmatpush3.bf16.msra.mxu1 %v7857_v58 }
 0xde6   :  { %6341 = vmatprep.subr.bf16.mxu0 %v7787_v15  ;;  %6368 = vmatprep.subr.bf16.mxu1 %v6849_v21 }
 0xde9   :  { %6343 = vmatpush1.bf16.msra.mxu0 %v7789_v48  ;;  %6370 = vmatpush3.bf16.msra.mxu1 %v7861_v17 }
 0xdea   :  { %6345 = vmatprep.subr.bf16.mxu0 %v7792_v61  ;;  %6371 = vmatprep.subr.bf16.mxu1 %v6849_v21 }
 0xded   :  { %6347 = vmatpush1.bf16.msra.mxu0 %v7795_v56  ;;  %6373 = vmatpush3.bf16.msra.mxu1 %v7864_v2 }
 0xdee   :  { %6349 = vmatprep.subr.bf16.mxu0 %v7798_v4  ;;  %6374 = vmatprep.subr.bf16.mxu1 %v6849_v21 }
 0xdf1   :  { %6351 = vmatpush1.bf16.msra.mxu0 %v7803_v35  ;;  %6376 = vmatpush3.bf16.msra.mxu1 %v7868_v14 }
 0xdf2   :  { %6353 = vmatprep.subr.bf16.mxu0 %v7806_v52  ;;  %6377 = vmatprep.subr.bf16.mxu1 %v6849_v21 }
 0xdf5   :  { %6355 = vmatpush1.bf16.msra.mxu0 %v7811_v20  ;;  %6379 = vmatpush3.bf16.msra.mxu1 %v7800_v38 }
 0xdf6   :  { %6381 = vmatprep.subr.bf16.mxu0 %v7763_v53  ;;  %6412 = vmatprep.subr.bf16.mxu1 %v6849_v21 }
 0xeab   :  { %v3643_v3 = vpop.f32.mrb[26].mxu0  ;;  %v3714_v34 = vpop.f32.mrb[58].mxu1 }
 0xeac   :  { %v6510_v36 = vadd.f32 %v3643_v3, %v7633_v42  ;;  %v3645_v31 = vpop.f32.mrb[27].mxu0  ;;  %v5297_v12 = vpop.f32.mrb[59].mxu1  ;;  %v3732_v53 = vadd.f32 %v7644_v22, %v3714_v34  ;;  %v6448_v3 = vpack.c.bf16 %v4183_v13, %v4182_v6  ;;  %v4184_v34 = vld [vmem:[#allocation10 + $0x40] sm:$0xff] }
 0xead   :  { %v6511_v19 = vadd.f32 %v3645_v31, %v7638_v46  ;;  %v4186_v12 = vld [vmem:[#allocation10 + $0x50] sm:$0xff] }
 0xeae   :  { %v4369_v39 = vmul.f32 -1.442695, %v6510_v36  ;;  %v4185_v36 = vld [vmem:[#allocation10 + $0x48] sm:$0xff] }
 0xeaf   :  { %v4370_v29 = vmul.f32 -1.442695, %v6511_v19  ;;  %v6452_v31 = vpack.c.bf16 %v4185_v36, %v4184_v34 }
 0xeb0   :  { %6674 = vpow2.f32 %v4369_v39  ;;  %v4187_v39 = vld [vmem:[#allocation10 + $0x58] sm:$0xff] }
 0xeb1   :  { %6676 = vpow2.f32 %v4370_v29  ;;  %v6456_v19 = vpack.c.bf16 %v4187_v39, %v4186_v12  ;;  %v4188_v29 = vld [vmem:[#allocation10 + $0x60] sm:$0xff] }
 0xeba   :  { %v6675_v62 = vpop.eup %6674 }
 0xebb   :  { %v3722_v16 = vadd.f32 1.0, %v6675_v62  ;;  %v6677_v59 = vpop.eup %6676  ;;  %v4189_v62 = vld [vmem:[#allocation10 + $0x68] sm:$0xff] }
 0xebc   :  { %v3729_v10 = vadd.f32 1.0, %v6677_v59  ;;  %v4191_v59 = vld [vmem:[#allocation10 + $0x78] sm:$0xff] }
 0xebd   :  { %6678 = vrcp.f32 %v3722_v16  ;;  %v4190_v16 = vld [vmem:[#allocation10 + $0x70] sm:$0xff] }
 0xec7   :  { %v6679_v45 = vpop.eup %6678 }
 0xec8   :  { %v3733_v28 = vmul.f32 %v6679_v45, %v3732_v53  ;;  %v6464_v53 = vpack.c.bf16 %v4191_v59, %v4190_v16 }
 0xeca   :  { %v3734_v60 = vadd.f32 %v3733_v28, %v2410_v57 }
 0xecc   :  { %6680 = vtanh.f32 %v3734_v60 }
 0xecd   :  { %6682 = vrcp.f32 %v3729_v10 }
 0xed6   :  { %v6681_v49 = vpop.eup %6680 }
 0xed7   :  { %v3736_v11 = vsub.f32 %v7881_v23, %v6681_v49  ;;  %v6683_v25 = vpop.eup %6682 }
 0xed9   :  { %v3737_v32 = vmul.f32 %v6683_v25, %v3736_v11 }
 0xedb   :  { %v7926_v30 = vadd.f32 %v6681_v49, %v3737_v32 }
 0xedd   :  { %3856 = vmatmul.mubr.f32.vlgmr.msra.gmra.mrb[28].mxu0 %v7926_v30  ;;  %5331 = vmatmul.mubr.f32.vlgmr.msra.gmra.mrb[60].mxu1 %v7926_v30 }
 0xede   :  { %6383 = vmatpush1.bf16.msra.mxu0 %v7765_v51  ;;  %6414 = vmatpush3.bf16.msra.mxu1 %v7845_v27 }
 0xedf   :  { %6385 = vmatprep.subr.bf16.mxu0 %v7769_v63  ;;  %6415 = vmatprep.subr.bf16.mxu1 %v6849_v21 }
 0xee0   :  { %4069 = vmatprep.mubr.f32.mxu0 %v6848_v0  ;;  %5365 = vmatprep.mubr.msk.f32.mxu1 %vm6850_vm0, %v6848_v0  ;;  %v4176_v0 = vld [vmem:[#allocation10] sm:$0xff] }
 0xee1   :  { %v6436_v51 = vpack.c.bf16 %v4177_v47, %v4176_v0 }
 0xee2   :  { %6387 = vmatpush1.bf16.msra.mxu0 %v7771_v40  ;;  %6417 = vmatpush3.bf16.msra.mxu1 %v7849_v50 }
 0xee3   :  { %6389 = vmatprep.subr.bf16.mxu0 %v7775_v43  ;;  %6418 = vmatprep.subr.bf16.mxu1 %v6849_v21 }
 0xee6   :  { %6391 = vmatpush1.bf16.msra.mxu0 %v7777_v1  ;;  %6420 = vmatpush3.bf16.msra.mxu1 %v7853_v54 }
 0xee7   :  { %6393 = vmatprep.subr.bf16.mxu0 %v7781_v33  ;;  %6421 = vmatprep.subr.bf16.mxu1 %v6849_v21 }
 0xeea   :  { %6395 = vmatpush1.bf16.msra.mxu0 %v7783_v26  ;;  %6423 = vmatpush3.bf16.msra.mxu1 %v7857_v58 }
 0xeeb   :  { %6397 = vmatprep.subr.bf16.mxu0 %v7787_v15  ;;  %6424 = vmatprep.subr.bf16.mxu1 %v6849_v21 }
 0xeee   :  { %6399 = vmatpush1.bf16.msra.mxu0 %v7789_v48  ;;  %6426 = vmatpush3.bf16.msra.mxu1 %v7861_v17  ;;  %v4178_v17 = vld [vmem:[#allocation10 + $0x10] sm:$0xff] }
 0xeef   :  { %6401 = vmatprep.subr.bf16.mxu0 %v7792_v61  ;;  %6427 = vmatprep.subr.bf16.mxu1 %v6849_v21 }
 0xef2   :  { %6403 = vmatpush1.bf16.msra.mxu0 %v7795_v56  ;;  %6429 = vmatpush3.bf16.msra.mxu1 %v7864_v2  ;;  %v4179_v2 = vld [vmem:[#allocation10 + $0x18] sm:$0xff] }
 0xef3   :  { %6405 = vmatprep.subr.bf16.mxu0 %v7798_v4  ;;  %6430 = vmatprep.subr.bf16.mxu1 %v6849_v21  ;;  %v6440_v5 = vpack.c.bf16 %v4179_v2, %v4178_v17 }
 0xef6   :  { %6407 = vmatpush1.bf16.msra.mxu0 %v7803_v35  ;;  %6432 = vmatpush3.bf16.msra.mxu1 %v7868_v14  ;;  %v2415_v35 = vadd.f32 %v7629_v24, %v7648_v44 }
 0xef7   :  { %6409 = vmatprep.subr.bf16.mxu0 %v7806_v52  ;;  %6433 = vmatprep.subr.bf16.mxu1 %v6849_v21 }
 0xefa   :  { %6411 = vmatpush1.bf16.msra.mxu0 %v7811_v20  ;;  %6435 = vmatpush3.bf16.msra.mxu1 %v7800_v38 }
 0xefb   :  { %6437 = vmatprep.subr.bf16.mxu0 %v6436_v51 }
 0xfb0   :  { %v3857_v63 = vpop.f32.mrb[28].mxu0  ;;  %v3928_v40 = vpop.f32.mrb[60].mxu1 }
 0xfb1   :  { %v6512_v43 = vadd.f32 %v3857_v63, %v7633_v42  ;;  %v3859_v1 = vpop.f32.mrb[29].mxu0  ;;  %v5332_v33 = vpop.f32.mrb[61].mxu1  ;;  %v3946_v4 = vadd.f32 %v7644_v22, %v3928_v40  ;;  %v4180_v22 = vld [vmem:[#allocation10 + $0x20] sm:$0xff] }
 0xfb2   :  { %v6513_v15 = vadd.f32 %v3859_v1, %v7638_v46  ;;  %v6444_v24 = vpack.c.bf16 %v4181_v7, %v4180_v22 }
 0xfb3   :  { %v4371_v26 = vmul.f32 -1.442695, %v6512_v43 }
 0xfb4   :  { %v4372_v48 = vmul.f32 -1.442695, %v6513_v15 }
 0xfb5   :  { %6684 = vpow2.f32 %v4371_v26 }
 0xfb6   :  { %6686 = vpow2.f32 %v4372_v48 }
 0xfbf   :  { %v6685_v21 = vpop.eup %6684 }
 0xfc0   :  { %v3936_v61 = vadd.f32 1.0, %v6685_v21  ;;  %v6687_v56 = vpop.eup %6686 }
 0xfc1   :  { %v3943_v27 = vadd.f32 1.0, %v6687_v56 }
 0xfc2   :  { %6688 = vrcp.f32 %v3936_v61 }
 0xfcc   :  { %v6689_v38 = vpop.eup %6688 }
 0xfcd   :  { %v3947_v52 = vmul.f32 %v6689_v38, %v3946_v4 }
 0xfcf   :  { %v3948_v20 = vadd.f32 %v3947_v52, %v2415_v35 }
 0xfd1   :  { %6690 = vtanh.f32 %v3948_v20 }
 0xfd2   :  { %6692 = vrcp.f32 %v3943_v27 }
 0xfdb   :  { %v6691_v50 = vpop.eup %6690 }
 0xfdc   :  { %v3950_v54 = vsub.f32 %v7926_v30, %v6691_v50  ;;  %v6693_v58 = vpop.eup %6692 }
 0xfde   :  { %v3951_v14 = vmul.f32 %v6693_v58, %v3950_v54 }
 0xfe0   :  { %v7969_v9 = vadd.f32 %v6691_v50, %v3951_v14 }
 0xfe2   :  { %4070 = vmatmul.mubr.f32.vlgmr.msra.gmra.mrb[30].mxu0 %v7969_v9  ;;  %5366 = vmatmul.mubr.f32.vlgmr.msra.gmra.mrb[62].mxu1 %v7969_v9 }
 0xfe3   :  { %6439 = vmatpush3.bf16.msra.mxu0 %v6436_v51  ;;  %5400 = vmatprep.mubr.f32.mxu0 %v7653_v37  ;;  %v6460_v37 = vpack.c.bf16 %v4189_v62, %v4188_v29 }
 0xfe4   :  { %6441 = vmatprep.subr.bf16.mxu0 %v6440_v5 }
 0xfe7   :  { %6443 = vmatpush3.bf16.msra.mxu0 %v6440_v5 }
 0xfe8   :  { %6445 = vmatprep.subr.bf16.mxu0 %v6444_v24 }
 0xfeb   :  { %6447 = vmatpush3.bf16.msra.mxu0 %v6444_v24 }
 0xfec   :  { %6449 = vmatprep.subr.bf16.mxu0 %v6448_v3 }
 0xfef   :  { %6451 = vmatpush3.bf16.msra.mxu0 %v6448_v3 }
 0xff0   :  { %6453 = vmatprep.subr.bf16.mxu0 %v6452_v31 }
 0xff3   :  { %6455 = vmatpush3.bf16.msra.mxu0 %v6452_v31 }
 0xff4   :  { %6457 = vmatprep.subr.bf16.mxu0 %v6456_v19 }
 0xff7   :  { %6459 = vmatpush3.bf16.msra.mxu0 %v6456_v19 }
 0xff8   :  { %6461 = vmatprep.subr.bf16.mxu0 %v6460_v37 }
 0xffb   :  { %6463 = vmatpush3.bf16.msra.mxu0 %v6460_v37 }
 0xffc   :  { %6465 = vmatprep.subr.bf16.mxu0 %v6464_v53 }
 0xfff   :  { %6467 = vmatpush3.bf16.msra.mxu0 %v6464_v53 }
0x1002   :  { %5401 = vmatmul.mubr.f32.vlgmr.msra.gmra.mrb[32].mxu0 %v7698_v18 }
0x1003   :  { %5403 = vmatprep.mubr.f32.mxu0 %v7742_v8 }
0x1006   :  { %5404 = vmatmul.mubr.f32.gmra.mrb[34].mxu0 %v7822_v41 }
0x1007   :  { %5406 = vmatprep.mubr.f32.mxu0 %v7881_v23  ;;  %v6721_v23 = vld [vmem:[%s8010_s4 + $0x1] ss:$0 sm:$0xff]  ;;  %s6851_s4 = smov [#allocation12]  }
0x100a   :  { %5407 = vmatmul.mubr.f32.gmra.mrb[36].mxu0 %v7926_v30 }
0x100b   :  { %5409 = vmatprep.mubr.f32.mxu0 %v7969_v9 }
0x10b5   :  { %v4071_v45 = vpop.f32.mrb[30].mxu0  ;;  %v4142_v57 = vpop.f32.mrb[62].mxu1 }
0x10b6   :  { %v6514_v28 = vadd.f32 %v4071_v45, %v7633_v42  ;;  %v4073_v60 = vpop.f32.mrb[31].mxu0  ;;  %v5367_v10 = vpop.f32.mrb[63].mxu1  ;;  %v4160_v32 = vadd.f32 %v6721_v23, %v4142_v57  ;;  %v2420_v42 = vadd.f32 %v7627_v55, %v7648_v44 }
0x10b7   :  { %v6515_v18 = vadd.f32 %v4073_v60, %v7638_v46  ;;  %v4375_v46 = vld [vmem:[%s8012_s6] ss:$0 sm:$0xff]  ;;  %s4325_s6 = sshll.u32 %s6851_s4, 4  ;;  %s4326_s6 = int_to_ptr.vmem [resolvable:$true] %s4325_s6 }
0x10b8   :  { %v4373_v49 = vmul.f32 -1.442695, %v6514_v28  ;;  %s6810_s16 = scalar_lea.vmem %s4326_s6, 1024  ;;  %p6815_p5 = scmp.lt.s32.totalorder %s4326_s6, %s4326_s6 }
0x10b9   :  { %v4374_v11 = vmul.f32 -1.442695, %v6515_v18  ;;  %p6811_p4 = scmp.ne.s32.totalorder %s4326_s6, %s6810_s16  ;;  %p6816_p6 = scmp.lt.s32.totalorder %s6810_s16, %s6810_s16 }
0x10ba   :  { %6694 = vpow2.f32 %v4373_v49 }
0x10bb   :  { %6696 = vpow2.f32 %v4374_v11  ;;  %p6817_p7 = por %p6816_p6, %p6815_p5 }
0x10bd   :  { %p6818_p8 = pnand %p6817_p7, %p6811_p4 }
0x10c4   :  { %v6695_v8 = vpop.eup %6694 }
0x10c5   :  { %v4150_v25 = vadd.f32 1.0, %v6695_v8  ;;  %v6697_v41 = vpop.eup %6696 }
0x10c6   :  { %v4157_v47 = vadd.f32 1.0, %v6697_v41 }
0x10c7   :  { %6698 = vrcp.f32 %v4150_v25 }
0x10d1   :  { %v6699_v30 = vpop.eup %6698 }
0x10d2   :  { %v4161_v0 = vmul.f32 %v6699_v30, %v4160_v32 }
0x10d4   :  { %v4162_v51 = vadd.f32 %v4161_v0, %v2420_v42 }
0x10d5   :  { %v5402_v63 = vpop.f32.mrb[32].mxu0 }
0x10d6   :  { %6700 = vtanh.f32 %v4162_v51  ;;  %v4271_v40 = vadd.f32 %v5402_v63, %v4375_v46  ;;  %v4265_v43 = vpop.f32.mrb[33].mxu0 }
0x10d7   :  { %6702 = vrcp.f32 %v4157_v47  ;;  %v4266_v1 = vadd.f32 %v4375_v46, %v4265_v43 }
0x10d8   :  { %6704 = vtanh.f32 %v4271_v40 }
0x10d9   :  { %6706 = vtanh.f32 %v4266_v1  ;;  %v5405_v33 = vpop.f32.mrb[34].mxu0 }
0x10da   :  { %v4281_v26 = vadd.f32 %v5405_v33, %v4375_v46  ;;  %v4275_v15 = vpop.f32.mrb[35].mxu0 }
0x10db   :  { %v4276_v48 = vadd.f32 %v4375_v46, %v4275_v15 }
0x10dc   :  { %6708 = vtanh.f32 %v4281_v26 }
0x10dd   :  { %6710 = vtanh.f32 %v4276_v48  ;;  %v5408_v55 = vpop.f32.mrb[36].mxu0 }
0x10de   :  { %v4291_v44 = vadd.f32 %v5408_v55, %v4375_v46  ;;  %v4285_v21 = vpop.f32.mrb[37].mxu0 }
0x10df   :  { %v4286_v61 = vadd.f32 %v4375_v46, %v4285_v21 }
0x10e0   :  { %v6701_v56 = vpop.eup %6700  ;;  %6712 = vtanh.f32 %v4291_v44 }
0x10e1   :  { %v6703_v4 = vpop.eup %6702  ;;  %6714 = vtanh.f32 %v4286_v61  ;;  %v4164_v38 = vsub.f32 %v7969_v9, %v6701_v56 }
0x10e2   :  { %v6705_v35 = vpop.eup %6704 }
0x10e3   :  { %v6707_v52 = vpop.eup %6706  ;;  %4313 = vst [vmem:[#allocation12 + $0x8] sm:$0xff] %v6705_v35  ;;  %v4165_v20 = vmul.f32 %v6703_v4, %v4164_v38 }
0x10e4   :  { %4312 = vst [vmem:[#allocation12] sm:$0xff] %v6707_v52 }
0x10e5   :  { %v4166_v27 = vadd.f32 %v6701_v56, %v4165_v20 }
0x10e6   :  { %v6709_v50 = vpop.eup %6708 }
0x10e7   :  { %v6711_v54 = vpop.eup %6710  ;;  %4315 = vst [vmem:[#allocation12 + $0x18] sm:$0xff] %v6709_v50  ;;  %5410 = vmatmul.mubr.f32.gmra.mrb[38].mxu0 %v4166_v27 }
0x10e8   :  { %4314 = vst [vmem:[#allocation12 + $0x10] sm:$0xff] %v6711_v54 }
0x10ea   :  { %v6713_v58 = vpop.eup %6712 }
0x10eb   :  { %v6715_v17 = vpop.eup %6714  ;;  %4317 = vst [vmem:[#allocation12 + $0x28] sm:$0xff] %v6713_v58 }
0x10ec   :  { %4316 = vst [vmem:[#allocation12 + $0x20] sm:$0xff] %v6715_v17 }
0x11ba   :  { %v5411_v2 = vpop.f32.mrb[38].mxu0 }
0x11bb   :  { %v4301_v14 = vadd.f32 %v5411_v2, %v4375_v46  ;;  %v4295_v5 = vpop.f32.mrb[39].mxu0 }
0x11bc   :  { %v4296_v22 = vadd.f32 %v4375_v46, %v4295_v5 }
0x11bd   :  { %6716 = vtanh.f32 %v4301_v14 }
0x11be   :  { %6718 = vtanh.f32 %v4296_v22 }
0x11c7   :  { %v6717_v9 = vpop.eup %6716 }
0x11c8   :  { %v6719_v7 = vpop.eup %6718  ;;  %4319 = vst [vmem:[#allocation12 + $0x38] sm:$0xff] %v6717_v9 }
0x11c9   :  { %4318 = vst [vmem:[#allocation12 + $0x30] sm:$0xff] %v6719_v7 }
0x11ca   :  { %6821 = shalt.err (!%p6818_p8)
}
0x11cb   :  { %s6822_s21 = scalar_lea.hbm %s8013_s7, 1024 }
0x11cc   :  { %p6823_p9 = scmp.ne.s32.totalorder %s8013_s7, %s6822_s21  ;;  %p6826_p10 = scmp.lt.u32.totalorder %s6822_s21, %s8013_s7 }
0x11ce   :  { %p6828_p11 = pnand %p6826_p10, %p6823_p9 }
0x11d0   :  { %6831 = shalt.err (!%p6828_p11)
}
0x11d1   :  { %4331 = dma.vmem_to_hbm [thread:$0]  %s4326_s6, 1024, %s8013_s7, [#allocation6], %s6844_s1, %s6844_s1, %s6845_s25  }
0x11d2   :  { %6838 = dma.done.wait [#allocation6], 1024  }
0x11d3   :  { %6839 = vsyncadd [#allocation6], 4294966272 }
0x11d4   :  { %4335 = vsyncpa [#allocation5], 1 }
0x11d5   :  { %4336 = vsyncpa [#allocation8], 1 }
0x11d6   :  { %4337 = vsyncpa [#allocation11], 1 }
0x11d7   :  { %4338 = vsyncpa [#allocation6], 1 }

</bundles_post_ra>
